<compile_context>
chip_gen: v5e
topology: v5e:2x2
jax: 0.10.0
libtpu: 0.0.40
codegen_flags: <defaults>
</compile_context>

<pallas_src>
import math
import functools

import jax
import jax.numpy as jnp
from jax.experimental import pallas as pl
from jax.experimental.pallas import tpu as pltpu


def _layernorm(v, g, b, eps=1e-5):
    mu = jnp.mean(v, axis=-1, keepdims=True)
    var = jnp.mean((v - mu) ** 2, axis=-1, keepdims=True)
    return (v - mu) * jax.lax.rsqrt(var + eps) * g + b


def _gelu_exact(h):
    # nn.GELU() default is the exact erf formulation.
    return 0.5 * h * (1.0 + jax.lax.erf(h / math.sqrt(2.0)))


def transformer_block_kernel(
    x_ref,              # (tm, D)  f32   tile of the folded (B*S, D) slab
    g1_ref, be1_ref,    # (1, D)   f32   LayerNorm 1
    wqkv_ref,           # (D, 3D)  bf16  in_proj (pre-transposed, Q-scale folded in)
    bqkv_ref,           # (1, 3D)  f32
    wo_ref,             # (H, HD, D) bf16  out_proj: per-head rows of W_o^T
    bo_ref,             # (1, D)   f32
    g2_ref, be2_ref,    # (1, D)   f32   LayerNorm 2
    w1_ref, b1_ref,     # (D, Dh) bf16, (1, Dh) f32   MLP fc1
    w2_ref, b2_ref,     # (Dh, D) bf16, (1, D)  f32   MLP fc2
    o_ref,              # (tm, D)  f32
    *, seqs_per_tile, seq, dim, num_heads,
):
    n, S, D, H = seqs_per_tile, seq, dim, num_heads
    HD = D // H
    cdt = wqkv_ref.dtype          # MXU compute dtype (bf16); accumulation stays f32

    x = x_ref[...]                # (tm, D) f32, tm = n * S

    # ---- LayerNorm 1 (f32 stats) + fused QKV projection (bf16 MXU, f32 accum) ----
    normed = _layernorm(x, g1_ref[...], be1_ref[...])
    qkv = jnp.dot(normed.astype(cdt), wqkv_ref[...],
                  preferred_element_type=jnp.float32) + bqkv_ref[...]      # (tm, 3D) f32

    # ---- multi-head self-attention ----
    # 1/sqrt(HD) is already folded into the Q columns of wqkv/bqkv.  Heads are processed from
    # lane slices of qkv (no 4-D transposes / head relayouts); the out-projection is
    # accumulated per head, which is identical to concat-heads @ W_o^T.
    attn_acc = None
    for h in range(H):
        qh = qkv[:, 0 * D + h * HD:0 * D + (h + 1) * HD].reshape(n, S, HD)
        kh = qkv[:, 1 * D + h * HD:1 * D + (h + 1) * HD].reshape(n, S, HD)
        vh = qkv[:, 2 * D + h * HD:2 * D + (h + 1) * HD].reshape(n, S, HD)

        s = jnp.einsum('nqd,nkd->nqk', qh.astype(cdt), kh.astype(cdt),
                       preferred_element_type=jnp.float32)                 # (n, S, S) f32
        s = s - jnp.max(s, axis=-1, keepdims=True)
        p = jnp.exp(s)
        p = p * pl.reciprocal(jnp.sum(p, axis=-1, keepdims=True), approx=True)

        ctx_h = jnp.einsum('nqk,nkd->nqd', p.astype(cdt), vh.astype(cdt),
                           preferred_element_type=jnp.float32)              # (n, S, HD) f32
        contrib = jnp.dot(ctx_h.reshape(n * S, HD).astype(cdt), wo_ref[h],
                          preferred_element_type=jnp.float32)               # (tm, D) f32
        attn_acc = contrib if attn_acc is None else attn_acc + contrib

    x = x + attn_acc + bo_ref[...]

    # ---- LayerNorm 2 + MLP (bf16 MXU, f32 accum, exact-erf GELU in f32) ----
    n2 = _layernorm(x, g2_ref[...], be2_ref[...])
    hidden = jnp.dot(n2.astype(cdt), w1_ref[...],
                     preferred_element_type=jnp.float32) + b1_ref[...]
    hidden = _gelu_exact(hidden)
    y = jnp.dot(hidden.astype(cdt), w2_ref[...],
                preferred_element_type=jnp.float32) + b2_ref[...]

    o_ref[...] = (x + y).astype(o_ref.dtype)


def _choose_seqs_per_tile(batch, seq, target_rows=256):
    """Whole sequences per row tile: keeps attention local to a tile, keeps the row block
    sublane-aligned, and (when possible) leaves >= 2 grid steps so the pipeline / megacore
    axis is actually exercised."""
    candidates = []
    for d in range(1, batch + 1):
        if batch % d:
            continue
        rows = d * seq
        if rows % 8 != 0 and rows != batch * seq:
            continue        # would violate the (8, 128) sublane constraint
        candidates.append(d)
    if not candidates:
        return batch
    pipelined = [d for d in candidates if d * seq <= target_rows and batch // d >= 2]
    if pipelined:
        return max(pipelined)
    under = [d for d in candidates if d * seq <= target_rows]
    if under:
        return max(under)
    return min(candidates)


def prepare_params(params, *, num_heads, compute_dtype=jnp.bfloat16):
    """One-time host-side prep:
       * pre-transpose every weight to (in, out) layout,
       * fold 1/sqrt(head_dim) into the Q columns of the in-projection (in f32, then cast),
       * store matmul weights in bf16 (MXU operands); biases / LayerNorm params stay f32,
       * re-layout W_o^T as (H, HD, D) so the per-head out-projection needs no in-kernel
         transpose or unaligned weight slicing."""
    D = params['w_o'].shape[0]
    H = num_heads
    HD = D // H
    scale = 1.0 / math.sqrt(HD)
    col_scale = jnp.concatenate(
        [jnp.full((D,), scale, jnp.float32), jnp.ones((2 * D,), jnp.float32)])
    w_qkv_t = params['w_qkv'].T * col_scale[None, :]               # fold in f32
    return {
        'ln1_g': params['ln1_g'], 'ln1_b': params['ln1_b'],
        'w_qkv_t':   w_qkv_t.astype(compute_dtype),                # (D, 3D)
        'b_qkv':     params['b_qkv'] * col_scale[None, :],          # (1, 3D) f32
        'w_o_heads': params['w_o'].T.reshape(H, HD, D).astype(compute_dtype),
        'b_o':       params['b_o'],
        'ln2_g': params['ln2_g'], 'ln2_b': params['ln2_b'],
        'w_fc1_t': params['w_fc1'].T.astype(compute_dtype),        # (D, Dh)
        'b_fc1':   params['b_fc1'],
        'w_fc2_t': params['w_fc2'].T.astype(compute_dtype),        # (Dh, D)
        'b_fc2':   params['b_fc2'],
    }


def transformer_block(x, kparams, *, num_heads):
    B, S, D = x.shape
    xf = x.reshape(B * S, D)              # fold batch into the matmul M dimension

    seqs_per_tile = _choose_seqs_per_tile(B, S)
    tm = seqs_per_tile * S
    n_tiles = (B * S) // tm

    kern = functools.partial(
        transformer_block_kernel,
        seqs_per_tile=seqs_per_tile, seq=S, dim=D, num_heads=num_heads)

    weight_args = (
        kparams['ln1_g'], kparams['ln1_b'],
        kparams['w_qkv_t'], kparams['b_qkv'],
        kparams['w_o_heads'], kparams['b_o'],
        kparams['ln2_g'], kparams['ln2_b'],
        kparams['w_fc1_t'], kparams['b_fc1'],
        kparams['w_fc2_t'], kparams['b_fc2'],
    )

    def resident_spec(a):                  # full block, constant index_map -> DMA'd once
        nd = a.ndim
        return pl.BlockSpec(a.shape, lambda i, _nd=nd: (0,) * _nd)

    row_spec = pl.BlockSpec((tm, D), lambda i: (i, 0))

    try:                                    # re-derive the VMEM budget per chip generation
        vmem_limit = int(pltpu.get_tpu_info().vmem_capacity_bytes * 3 // 4)
    except Exception:
        vmem_limit = 64 * 1024 * 1024

    out = pl.pallas_call(
        kern,
        out_shape=jax.ShapeDtypeStruct((B * S, D), x.dtype),
        grid_spec=pltpu.PrefetchScalarGridSpec(
            num_scalar_prefetch=0,
            grid=(n_tiles,),
            in_specs=[row_spec] + [resident_spec(a) for a in weight_args],
            out_specs=row_spec,
        ),
        input_output_aliases={0: 0},        # x slab / output: same shape, disjoint per-step rows
        compiler_params=pltpu.CompilerParams(
            dimension_semantics=("parallel",),   # shard row tiles across v7x's 2 TensorCores
            vmem_limit_bytes=vmem_limit,
        ),
    )(xf, *weight_args)

    return out.reshape(B, S, D)


def reference_block(x, params, *, num_heads):
    B, S, D = x.shape
    H, HD = num_heads, D // num_heads
    scale = 1.0 / math.sqrt(HD)

    def ln(v, g, b):
        mu = jnp.mean(v, -1, keepdims=True)
        var = jnp.mean((v - mu) ** 2, -1, keepdims=True)
        return (v - mu) / jnp.sqrt(var + 1e-5) * g + b

    normed = ln(x, params['ln1_g'][0], params['ln1_b'][0])
    qkv = normed @ params['w_qkv'].T + params['b_qkv'][0]
    q, k, v = qkv[..., :D], qkv[..., D:2 * D], qkv[..., 2 * D:]
    q = q.reshape(B, S, H, HD).transpose(0, 2, 1, 3) * scale
    k = k.reshape(B, S, H, HD).transpose(0, 2, 1, 3)
    v = v.reshape(B, S, H, HD).transpose(0, 2, 1, 3)
    p = jax.nn.softmax(jnp.einsum('bhqd,bhkd->bhqk', q, k), axis=-1)
    ctx = jnp.einsum('bhqk,bhkd->bhqd', p, v).transpose(0, 2, 1, 3).reshape(B, S, D)
    attn_out = ctx @ params['w_o'].T + params['b_o'][0]
    x = x + attn_out
    n2 = ln(x, params['ln2_g'][0], params['ln2_b'][0])
    h = jax.nn.gelu(n2 @ params['w_fc1'].T + params['b_fc1'][0], approximate=False)
    return x + (h @ params['w_fc2'].T + params['b_fc2'][0])


def init_params(key, dim, num_heads, mlp_ratio=4.0):
    hidden = int(dim * mlp_ratio)
    ks = jax.random.split(key, 4)
    s = 0.02
    return {
        'ln1_g': jnp.ones((1, dim), jnp.float32),
        'ln1_b': jnp.zeros((1, dim), jnp.float32),
        'w_qkv': s * jax.random.normal(ks[0], (3 * dim, dim), jnp.float32),
        'b_qkv': jnp.zeros((1, 3 * dim), jnp.float32),
        'w_o':   s * jax.random.normal(ks[1], (dim, dim), jnp.float32),
        'b_o':   jnp.zeros((1, dim), jnp.float32),
        'ln2_g': jnp.ones((1, dim), jnp.float32),
        'ln2_b': jnp.zeros((1, dim), jnp.float32),
        'w_fc1': s * jax.random.normal(ks[2], (hidden, dim), jnp.float32),
        'b_fc1': jnp.zeros((1, hidden), jnp.float32),
        'w_fc2': s * jax.random.normal(ks[3], (dim, hidden), jnp.float32),
        'b_fc2': jnp.zeros((1, dim), jnp.float32),
    }


if __name__ == "__main__":
    # Small demo dims, lane-dense feature dim (D multiple of 128); num_heads=16 is the module
    # default -> head_dim = 8.
    B, S, D = 2, 8, 128
    NUM_HEADS = 16

    key = jax.random.PRNGKey(0)
    kx, kp = jax.random.split(key)
    x = jax.random.normal(kx, (B, S, D), jnp.float32)
    params = init_params(kp, D, NUM_HEADS)                  # PyTorch-layout params
    ref = reference_block(x, params, num_heads=NUM_HEADS)   # compute ref before the aliased call

    kparams = prepare_params(params, num_heads=NUM_HEADS)   # one-time kernel-layout prep
    out = transformer_block(x, kparams, num_heads=NUM_HEADS)
    out = jax.block_until_ready(out)

    assert out.shape == (B, S, D)
    # bf16 MXU operands + approx-EUP softmax reciprocal -> relaxed tolerance
    assert jnp.allclose(out, ref, atol=2e-2, rtol=2e-2), "mismatch vs reference"

    print("KERNEL_OK")
</pallas_src>

<mosaic_0001>
module attributes {stable_mosaic.version = 11 : i64} {
  func.func @transformer_block_kernel(%arg0: i32, %arg1: memref<8x128xf32, #tpu.memory_space<vmem>>, %arg2: memref<1x128xf32, #tpu.memory_space<vmem>>, %arg3: memref<1x128xf32, #tpu.memory_space<vmem>>, %arg4: memref<128x384xbf16, #tpu.memory_space<vmem>>, %arg5: memref<1x384xf32, #tpu.memory_space<vmem>>, %arg6: memref<16x8x128xbf16, #tpu.memory_space<vmem>>, %arg7: memref<1x128xf32, #tpu.memory_space<vmem>>, %arg8: memref<1x128xf32, #tpu.memory_space<vmem>>, %arg9: memref<1x128xf32, #tpu.memory_space<vmem>>, %arg10: memref<128x512xbf16, #tpu.memory_space<vmem>>, %arg11: memref<1x512xf32, #tpu.memory_space<vmem>>, %arg12: memref<512x128xbf16, #tpu.memory_space<vmem>>, %arg13: memref<1x128xf32, #tpu.memory_space<vmem>>, %arg14: memref<8x128xf32, #tpu.memory_space<vmem>>) attributes {dimension_semantics = [#tpu.dimension_semantics<parallel>], iteration_bounds = array<i64: 2>, scalar_prefetch = 0 : i64, scratch_operands = 0 : i64, tpu.core_type = #tpu.core_type<tc>, window_params = [{transform_indices = @transform_0, window_bounds = array<i64: 8, 128>}, {pipeline_mode = #tpu.pipeline_mode<synchronous>, transform_indices = @transform_1, window_bounds = array<i64: 1, 128>}, {pipeline_mode = #tpu.pipeline_mode<synchronous>, transform_indices = @transform_2, window_bounds = array<i64: 1, 128>}, {pipeline_mode = #tpu.pipeline_mode<synchronous>, transform_indices = @transform_3, window_bounds = array<i64: 128, 384>}, {pipeline_mode = #tpu.pipeline_mode<synchronous>, transform_indices = @transform_4, window_bounds = array<i64: 1, 384>}, {pipeline_mode = #tpu.pipeline_mode<synchronous>, transform_indices = @transform_5, window_bounds = array<i64: 16, 8, 128>}, {pipeline_mode = #tpu.pipeline_mode<synchronous>, transform_indices = @transform_6, window_bounds = array<i64: 1, 128>}, {pipeline_mode = #tpu.pipeline_mode<synchronous>, transform_indices = @transform_7, window_bounds = array<i64: 1, 128>}, {pipeline_mode = #tpu.pipeline_mode<synchronous>, transform_indices = @transform_8, window_bounds = array<i64: 1, 128>}, {pipeline_mode = #tpu.pipeline_mode<synchronous>, transform_indices = @transform_9, window_bounds = array<i64: 128, 512>}, {pipeline_mode = #tpu.pipeline_mode<synchronous>, transform_indices = @transform_10, window_bounds = array<i64: 1, 512>}, {pipeline_mode = #tpu.pipeline_mode<synchronous>, transform_indices = @transform_11, window_bounds = array<i64: 512, 128>}, {pipeline_mode = #tpu.pipeline_mode<synchronous>, transform_indices = @transform_12, window_bounds = array<i64: 1, 128>}, {transform_indices = @transform_13, window_bounds = array<i64: 8, 128>}]} {
    %c0 = arith.constant 0 : index
    %c0_0 = arith.constant 0 : index
    %0 = vector.load %arg1[%c0, %c0_0] : memref<8x128xf32, #tpu.memory_space<vmem>>, vector<8x128xf32>
    %c0_1 = arith.constant 0 : index
    %c0_2 = arith.constant 0 : index
    %1 = vector.load %arg2[%c0_1, %c0_2] : memref<1x128xf32, #tpu.memory_space<vmem>>, vector<1x128xf32>
    %c0_3 = arith.constant 0 : index
    %c0_4 = arith.constant 0 : index
    %2 = vector.load %arg3[%c0_3, %c0_4] : memref<1x128xf32, #tpu.memory_space<vmem>>, vector<1x128xf32>
    %cst = arith.constant dense<0.000000e+00> : vector<8xf32>
    %3 = vector.multi_reduction <add>, %0, %cst [1] : vector<8x128xf32> to vector<8xf32>
    %4 = vector.shape_cast %3 : vector<8xf32> to vector<8x1xf32>
    %cst_5 = arith.constant 1.280000e+02 : f32
    %5 = vector.broadcast %cst_5 : f32 to vector<8x1xf32>
    %6 = arith.divf %4, %5 : vector<8x1xf32>
    %7 = vector.broadcast %6 : vector<8x1xf32> to vector<8x128xf32>
    %8 = arith.subf %0, %7 : vector<8x128xf32>
    %9 = arith.mulf %8, %8 : vector<8x128xf32>
    %cst_6 = arith.constant dense<0.000000e+00> : vector<8xf32>
    %10 = vector.multi_reduction <add>, %9, %cst_6 [1] : vector<8x128xf32> to vector<8xf32>
    %11 = vector.shape_cast %10 : vector<8xf32> to vector<8x1xf32>
    %cst_7 = arith.constant 1.280000e+02 : f32
    %12 = vector.broadcast %cst_7 : f32 to vector<8x1xf32>
    %13 = arith.divf %11, %12 : vector<8x1xf32>
    %14 = vector.broadcast %6 : vector<8x1xf32> to vector<8x128xf32>
    %15 = arith.subf %0, %14 : vector<8x128xf32>
    %cst_8 = arith.constant 9.99999974E-6 : f32
    %16 = vector.broadcast %cst_8 : f32 to vector<8x1xf32>
    %17 = arith.addf %13, %16 : vector<8x1xf32>
    %18 = math.rsqrt %17 : vector<8x1xf32>
    %19 = vector.broadcast %18 : vector<8x1xf32> to vector<8x128xf32>
    %20 = arith.mulf %15, %19 : vector<8x128xf32>
    %21 = vector.broadcast %1 : vector<1x128xf32> to vector<8x128xf32>
    %22 = arith.mulf %20, %21 : vector<8x128xf32>
    %23 = vector.broadcast %2 : vector<1x128xf32> to vector<8x128xf32>
    %24 = arith.addf %22, %23 : vector<8x128xf32>
    %25 = arith.truncf %24 : vector<8x128xf32> to vector<8x128xbf16>
    %c0_9 = arith.constant 0 : index
    %c0_10 = arith.constant 0 : index
    %26 = vector.load %arg4[%c0_9, %c0_10] : memref<128x384xbf16, #tpu.memory_space<vmem>>, vector<128x384xbf16>
    %cst_11 = arith.constant dense<0.000000e+00> : vector<8x384xf32>
    %27 = tpu.matmul %25, %26, %cst_11 {dimension_numbers = #tpu.dot_dimension_numbers<[1], [0], [0], [1], [0, 0, 1, 1], [], []>} : vector<8x128xbf16>, vector<128x384xbf16>, vector<8x384xf32> -> vector<8x384xf32>
    %c0_12 = arith.constant 0 : index
    %c0_13 = arith.constant 0 : index
    %28 = vector.load %arg5[%c0_12, %c0_13] : memref<1x384xf32, #tpu.memory_space<vmem>>, vector<1x384xf32>
    %29 = vector.broadcast %28 : vector<1x384xf32> to vector<8x384xf32>
    %30 = arith.addf %27, %29 : vector<8x384xf32>
    %31 = vector.extract_strided_slice %30 {offsets = [0, 0], sizes = [8, 8], strides = [1, 1]} : vector<8x384xf32> to vector<8x8xf32>
    %32 = vector.shape_cast %31 : vector<8x8xf32> to vector<1x8x8xf32>
    %33 = vector.extract_strided_slice %30 {offsets = [0, 128], sizes = [8, 8], strides = [1, 1]} : vector<8x384xf32> to vector<8x8xf32>
    %34 = vector.shape_cast %33 : vector<8x8xf32> to vector<1x8x8xf32>
    %35 = vector.extract_strided_slice %30 {offsets = [0, 256], sizes = [8, 8], strides = [1, 1]} : vector<8x384xf32> to vector<8x8xf32>
    %36 = vector.shape_cast %35 : vector<8x8xf32> to vector<1x8x8xf32>
    %37 = arith.truncf %32 : vector<1x8x8xf32> to vector<1x8x8xbf16>
    %38 = arith.truncf %34 : vector<1x8x8xf32> to vector<1x8x8xbf16>
    "tpu.trace_start"() <{level = 10 : i32, message = "nqd,nkd->nqk"}> : () -> ()
    %cst_14 = arith.constant dense<0.000000e+00> : vector<1x8x8xf32>
    %39 = tpu.matmul %37, %38, %cst_14 {dimension_numbers = #tpu.dot_dimension_numbers<[2], [2], [1], [1], [0, 0, 0, 1, 1, 1], [0], [0]>} : vector<1x8x8xbf16>, vector<1x8x8xbf16>, vector<1x8x8xf32> -> vector<1x8x8xf32>
    "tpu.trace_stop"() : () -> ()
    %cst_15 = arith.constant dense<0xFF800000> : vector<1x8xf32>
    %40 = vector.multi_reduction <maximumf>, %39, %cst_15 [2] : vector<1x8x8xf32> to vector<1x8xf32>
    %41 = vector.shape_cast %40 : vector<1x8xf32> to vector<1x8x1xf32>
    %42 = vector.broadcast %41 : vector<1x8x1xf32> to vector<1x8x8xf32>
    %43 = arith.subf %39, %42 : vector<1x8x8xf32>
    %44 = math.exp %43 : vector<1x8x8xf32>
    %cst_16 = arith.constant dense<0.000000e+00> : vector<1x8xf32>
    %45 = vector.multi_reduction <add>, %44, %cst_16 [2] : vector<1x8x8xf32> to vector<1x8xf32>
    %46 = vector.shape_cast %45 : vector<1x8xf32> to vector<1x8x1xf32>
    %47 = tpu.reciprocal %46 {approx = true} : vector<1x8x1xf32> -> vector<1x8x1xf32>
    %48 = vector.broadcast %47 : vector<1x8x1xf32> to vector<1x8x8xf32>
    %49 = arith.mulf %44, %48 : vector<1x8x8xf32>
    %50 = arith.truncf %49 : vector<1x8x8xf32> to vector<1x8x8xbf16>
    %51 = arith.truncf %36 : vector<1x8x8xf32> to vector<1x8x8xbf16>
    "tpu.trace_start"() <{level = 10 : i32, message = "nqk,nkd->nqd"}> : () -> ()
    %cst_17 = arith.constant dense<0.000000e+00> : vector<1x8x8xf32>
    %52 = tpu.matmul %50, %51, %cst_17 {dimension_numbers = #tpu.dot_dimension_numbers<[2], [1], [1], [2], [0, 0, 0, 1, 1, 2], [0], [0]>} : vector<1x8x8xbf16>, vector<1x8x8xbf16>, vector<1x8x8xf32> -> vector<1x8x8xf32>
    "tpu.trace_stop"() : () -> ()
    %53 = vector.shape_cast %52 : vector<1x8x8xf32> to vector<8x8xf32>
    %54 = arith.truncf %53 : vector<8x8xf32> to vector<8x8xbf16>
    %c0_18 = arith.constant 0 : index
    %c0_19 = arith.constant 0 : index
    %c0_20 = arith.constant 0 : index
    %55 = vector.load %arg6[%c0_18, %c0_19, %c0_20] : memref<16x8x128xbf16, #tpu.memory_space<vmem>>, vector<1x8x128xbf16>
    %56 = vector.shape_cast %55 : vector<1x8x128xbf16> to vector<8x128xbf16>
    %cst_21 = arith.constant dense<0.000000e+00> : vector<8x128xf32>
    %57 = tpu.matmul %54, %56, %cst_21 {dimension_numbers = #tpu.dot_dimension_numbers<[1], [0], [0], [1], [0, 0, 1, 1], [], []>} : vector<8x8xbf16>, vector<8x128xbf16>, vector<8x128xf32> -> vector<8x128xf32>
    %58 = vector.extract_strided_slice %30 {offsets = [0, 8], sizes = [8, 8], strides = [1, 1]} : vector<8x384xf32> to vector<8x8xf32>
    %59 = vector.shape_cast %58 : vector<8x8xf32> to vector<1x8x8xf32>
    %60 = vector.extract_strided_slice %30 {offsets = [0, 136], sizes = [8, 8], strides = [1, 1]} : vector<8x384xf32> to vector<8x8xf32>
    %61 = vector.shape_cast %60 : vector<8x8xf32> to vector<1x8x8xf32>
    %62 = vector.extract_strided_slice %30 {offsets = [0, 264], sizes = [8, 8], strides = [1, 1]} : vector<8x384xf32> to vector<8x8xf32>
    %63 = vector.shape_cast %62 : vector<8x8xf32> to vector<1x8x8xf32>
    %64 = arith.truncf %59 : vector<1x8x8xf32> to vector<1x8x8xbf16>
    %65 = arith.truncf %61 : vector<1x8x8xf32> to vector<1x8x8xbf16>
    "tpu.trace_start"() <{level = 10 : i32, message = "nqd,nkd->nqk"}> : () -> ()
    %cst_22 = arith.constant dense<0.000000e+00> : vector<1x8x8xf32>
    %66 = tpu.matmul %64, %65, %cst_22 {dimension_numbers = #tpu.dot_dimension_numbers<[2], [2], [1], [1], [0, 0, 0, 1, 1, 1], [0], [0]>} : vector<1x8x8xbf16>, vector<1x8x8xbf16>, vector<1x8x8xf32> -> vector<1x8x8xf32>
    "tpu.trace_stop"() : () -> ()
    %cst_23 = arith.constant dense<0xFF800000> : vector<1x8xf32>
    %67 = vector.multi_reduction <maximumf>, %66, %cst_23 [2] : vector<1x8x8xf32> to vector<1x8xf32>
    %68 = vector.shape_cast %67 : vector<1x8xf32> to vector<1x8x1xf32>
    %69 = vector.broadcast %68 : vector<1x8x1xf32> to vector<1x8x8xf32>
    %70 = arith.subf %66, %69 : vector<1x8x8xf32>
    %71 = math.exp %70 : vector<1x8x8xf32>
    %cst_24 = arith.constant dense<0.000000e+00> : vector<1x8xf32>
    %72 = vector.multi_reduction <add>, %71, %cst_24 [2] : vector<1x8x8xf32> to vector<1x8xf32>
    %73 = vector.shape_cast %72 : vector<1x8xf32> to vector<1x8x1xf32>
    %74 = tpu.reciprocal %73 {approx = true} : vector<1x8x1xf32> -> vector<1x8x1xf32>
    %75 = vector.broadcast %74 : vector<1x8x1xf32> to vector<1x8x8xf32>
    %76 = arith.mulf %71, %75 : vector<1x8x8xf32>
    %77 = arith.truncf %76 : vector<1x8x8xf32> to vector<1x8x8xbf16>
    %78 = arith.truncf %63 : vector<1x8x8xf32> to vector<1x8x8xbf16>
    "tpu.trace_start"() <{level = 10 : i32, message = "nqk,nkd->nqd"}> : () -> ()
    %cst_25 = arith.constant dense<0.000000e+00> : vector<1x8x8xf32>
    %79 = tpu.matmul %77, %78, %cst_25 {dimension_numbers = #tpu.dot_dimension_numbers<[2], [1], [1], [2], [0, 0, 0, 1, 1, 2], [0], [0]>} : vector<1x8x8xbf16>, vector<1x8x8xbf16>, vector<1x8x8xf32> -> vector<1x8x8xf32>
    "tpu.trace_stop"() : () -> ()
    %80 = vector.shape_cast %79 : vector<1x8x8xf32> to vector<8x8xf32>
    %81 = arith.truncf %80 : vector<8x8xf32> to vector<8x8xbf16>
    %c1 = arith.constant 1 : index
    %c0_26 = arith.constant 0 : index
    %c0_27 = arith.constant 0 : index
    %82 = vector.load %arg6[%c1, %c0_26, %c0_27] : memref<16x8x128xbf16, #tpu.memory_space<vmem>>, vector<1x8x128xbf16>
    %83 = vector.shape_cast %82 : vector<1x8x128xbf16> to vector<8x128xbf16>
    %cst_28 = arith.constant dense<0.000000e+00> : vector<8x128xf32>
    %84 = tpu.matmul %81, %83, %cst_28 {dimension_numbers = #tpu.dot_dimension_numbers<[1], [0], [0], [1], [0, 0, 1, 1], [], []>} : vector<8x8xbf16>, vector<8x128xbf16>, vector<8x128xf32> -> vector<8x128xf32>
    %85 = arith.addf %57, %84 : vector<8x128xf32>
    %86 = vector.extract_strided_slice %30 {offsets = [0, 16], sizes = [8, 8], strides = [1, 1]} : vector<8x384xf32> to vector<8x8xf32>
    %87 = vector.shape_cast %86 : vector<8x8xf32> to vector<1x8x8xf32>
    %88 = vector.extract_strided_slice %30 {offsets = [0, 144], sizes = [8, 8], strides = [1, 1]} : vector<8x384xf32> to vector<8x8xf32>
    %89 = vector.shape_cast %88 : vector<8x8xf32> to vector<1x8x8xf32>
    %90 = vector.extract_strided_slice %30 {offsets = [0, 272], sizes = [8, 8], strides = [1, 1]} : vector<8x384xf32> to vector<8x8xf32>
    %91 = vector.shape_cast %90 : vector<8x8xf32> to vector<1x8x8xf32>
    %92 = arith.truncf %87 : vector<1x8x8xf32> to vector<1x8x8xbf16>
    %93 = arith.truncf %89 : vector<1x8x8xf32> to vector<1x8x8xbf16>
    "tpu.trace_start"() <{level = 10 : i32, message = "nqd,nkd->nqk"}> : () -> ()
    %cst_29 = arith.constant dense<0.000000e+00> : vector<1x8x8xf32>
    %94 = tpu.matmul %92, %93, %cst_29 {dimension_numbers = #tpu.dot_dimension_numbers<[2], [2], [1], [1], [0, 0, 0, 1, 1, 1], [0], [0]>} : vector<1x8x8xbf16>, vector<1x8x8xbf16>, vector<1x8x8xf32> -> vector<1x8x8xf32>
    "tpu.trace_stop"() : () -> ()
    %cst_30 = arith.constant dense<0xFF800000> : vector<1x8xf32>
    %95 = vector.multi_reduction <maximumf>, %94, %cst_30 [2] : vector<1x8x8xf32> to vector<1x8xf32>
    %96 = vector.shape_cast %95 : vector<1x8xf32> to vector<1x8x1xf32>
    %97 = vector.broadcast %96 : vector<1x8x1xf32> to vector<1x8x8xf32>
    %98 = arith.subf %94, %97 : vector<1x8x8xf32>
    %99 = math.exp %98 : vector<1x8x8xf32>
    %cst_31 = arith.constant dense<0.000000e+00> : vector<1x8xf32>
    %100 = vector.multi_reduction <add>, %99, %cst_31 [2] : vector<1x8x8xf32> to vector<1x8xf32>
    %101 = vector.shape_cast %100 : vector<1x8xf32> to vector<1x8x1xf32>
    %102 = tpu.reciprocal %101 {approx = true} : vector<1x8x1xf32> -> vector<1x8x1xf32>
    %103 = vector.broadcast %102 : vector<1x8x1xf32> to vector<1x8x8xf32>
    %104 = arith.mulf %99, %103 : vector<1x8x8xf32>
    %105 = arith.truncf %104 : vector<1x8x8xf32> to vector<1x8x8xbf16>
    %106 = arith.truncf %91 : vector<1x8x8xf32> to vector<1x8x8xbf16>
    "tpu.trace_start"() <{level = 10 : i32, message = "nqk,nkd->nqd"}> : () -> ()
    %cst_32 = arith.constant dense<0.000000e+00> : vector<1x8x8xf32>
    %107 = tpu.matmul %105, %106, %cst_32 {dimension_numbers = #tpu.dot_dimension_numbers<[2], [1], [1], [2], [0, 0, 0, 1, 1, 2], [0], [0]>} : vector<1x8x8xbf16>, vector<1x8x8xbf16>, vector<1x8x8xf32> -> vector<1x8x8xf32>
    "tpu.trace_stop"() : () -> ()
    %108 = vector.shape_cast %107 : vector<1x8x8xf32> to vector<8x8xf32>
    %109 = arith.truncf %108 : vector<8x8xf32> to vector<8x8xbf16>
    %c2 = arith.constant 2 : index
    %c0_33 = arith.constant 0 : index
    %c0_34 = arith.constant 0 : index
    %110 = vector.load %arg6[%c2, %c0_33, %c0_34] : memref<16x8x128xbf16, #tpu.memory_space<vmem>>, vector<1x8x128xbf16>
    %111 = vector.shape_cast %110 : vector<1x8x128xbf16> to vector<8x128xbf16>
    %cst_35 = arith.constant dense<0.000000e+00> : vector<8x128xf32>
    %112 = tpu.matmul %109, %111, %cst_35 {dimension_numbers = #tpu.dot_dimension_numbers<[1], [0], [0], [1], [0, 0, 1, 1], [], []>} : vector<8x8xbf16>, vector<8x128xbf16>, vector<8x128xf32> -> vector<8x128xf32>
    %113 = arith.addf %85, %112 : vector<8x128xf32>
    %114 = vector.extract_strided_slice %30 {offsets = [0, 24], sizes = [8, 8], strides = [1, 1]} : vector<8x384xf32> to vector<8x8xf32>
    %115 = vector.shape_cast %114 : vector<8x8xf32> to vector<1x8x8xf32>
    %116 = vector.extract_strided_slice %30 {offsets = [0, 152], sizes = [8, 8], strides = [1, 1]} : vector<8x384xf32> to vector<8x8xf32>
    %117 = vector.shape_cast %116 : vector<8x8xf32> to vector<1x8x8xf32>
    %118 = vector.extract_strided_slice %30 {offsets = [0, 280], sizes = [8, 8], strides = [1, 1]} : vector<8x384xf32> to vector<8x8xf32>
    %119 = vector.shape_cast %118 : vector<8x8xf32> to vector<1x8x8xf32>
    %120 = arith.truncf %115 : vector<1x8x8xf32> to vector<1x8x8xbf16>
    %121 = arith.truncf %117 : vector<1x8x8xf32> to vector<1x8x8xbf16>
    "tpu.trace_start"() <{level = 10 : i32, message = "nqd,nkd->nqk"}> : () -> ()
    %cst_36 = arith.constant dense<0.000000e+00> : vector<1x8x8xf32>
    %122 = tpu.matmul %120, %121, %cst_36 {dimension_numbers = #tpu.dot_dimension_numbers<[2], [2], [1], [1], [0, 0, 0, 1, 1, 1], [0], [0]>} : vector<1x8x8xbf16>, vector<1x8x8xbf16>, vector<1x8x8xf32> -> vector<1x8x8xf32>
    "tpu.trace_stop"() : () -> ()
    %cst_37 = arith.constant dense<0xFF800000> : vector<1x8xf32>
    %123 = vector.multi_reduction <maximumf>, %122, %cst_37 [2] : vector<1x8x8xf32> to vector<1x8xf32>
    %124 = vector.shape_cast %123 : vector<1x8xf32> to vector<1x8x1xf32>
    %125 = vector.broadcast %124 : vector<1x8x1xf32> to vector<1x8x8xf32>
    %126 = arith.subf %122, %125 : vector<1x8x8xf32>
    %127 = math.exp %126 : vector<1x8x8xf32>
    %cst_38 = arith.constant dense<0.000000e+00> : vector<1x8xf32>
    %128 = vector.multi_reduction <add>, %127, %cst_38 [2] : vector<1x8x8xf32> to vector<1x8xf32>
    %129 = vector.shape_cast %128 : vector<1x8xf32> to vector<1x8x1xf32>
    %130 = tpu.reciprocal %129 {approx = true} : vector<1x8x1xf32> -> vector<1x8x1xf32>
    %131 = vector.broadcast %130 : vector<1x8x1xf32> to vector<1x8x8xf32>
    %132 = arith.mulf %127, %131 : vector<1x8x8xf32>
    %133 = arith.truncf %132 : vector<1x8x8xf32> to vector<1x8x8xbf16>
    %134 = arith.truncf %119 : vector<1x8x8xf32> to vector<1x8x8xbf16>
    "tpu.trace_start"() <{level = 10 : i32, message = "nqk,nkd->nqd"}> : () -> ()
    %cst_39 = arith.constant dense<0.000000e+00> : vector<1x8x8xf32>
    %135 = tpu.matmul %133, %134, %cst_39 {dimension_numbers = #tpu.dot_dimension_numbers<[2], [1], [1], [2], [0, 0, 0, 1, 1, 2], [0], [0]>} : vector<1x8x8xbf16>, vector<1x8x8xbf16>, vector<1x8x8xf32> -> vector<1x8x8xf32>
    "tpu.trace_stop"() : () -> ()
    %136 = vector.shape_cast %135 : vector<1x8x8xf32> to vector<8x8xf32>
    %137 = arith.truncf %136 : vector<8x8xf32> to vector<8x8xbf16>
    %c3 = arith.constant 3 : index
    %c0_40 = arith.constant 0 : index
    %c0_41 = arith.constant 0 : index
    %138 = vector.load %arg6[%c3, %c0_40, %c0_41] : memref<16x8x128xbf16, #tpu.memory_space<vmem>>, vector<1x8x128xbf16>
    %139 = vector.shape_cast %138 : vector<1x8x128xbf16> to vector<8x128xbf16>
    %cst_42 = arith.constant dense<0.000000e+00> : vector<8x128xf32>
    %140 = tpu.matmul %137, %139, %cst_42 {dimension_numbers = #tpu.dot_dimension_numbers<[1], [0], [0], [1], [0, 0, 1, 1], [], []>} : vector<8x8xbf16>, vector<8x128xbf16>, vector<8x128xf32> -> vector<8x128xf32>
    %141 = arith.addf %113, %140 : vector<8x128xf32>
    %142 = vector.extract_strided_slice %30 {offsets = [0, 32], sizes = [8, 8], strides = [1, 1]} : vector<8x384xf32> to vector<8x8xf32>
    %143 = vector.shape_cast %142 : vector<8x8xf32> to vector<1x8x8xf32>
    %144 = vector.extract_strided_slice %30 {offsets = [0, 160], sizes = [8, 8], strides = [1, 1]} : vector<8x384xf32> to vector<8x8xf32>
    %145 = vector.shape_cast %144 : vector<8x8xf32> to vector<1x8x8xf32>
    %146 = vector.extract_strided_slice %30 {offsets = [0, 288], sizes = [8, 8], strides = [1, 1]} : vector<8x384xf32> to vector<8x8xf32>
    %147 = vector.shape_cast %146 : vector<8x8xf32> to vector<1x8x8xf32>
    %148 = arith.truncf %143 : vector<1x8x8xf32> to vector<1x8x8xbf16>
    %149 = arith.truncf %145 : vector<1x8x8xf32> to vector<1x8x8xbf16>
    "tpu.trace_start"() <{level = 10 : i32, message = "nqd,nkd->nqk"}> : () -> ()
    %cst_43 = arith.constant dense<0.000000e+00> : vector<1x8x8xf32>
    %150 = tpu.matmul %148, %149, %cst_43 {dimension_numbers = #tpu.dot_dimension_numbers<[2], [2], [1], [1], [0, 0, 0, 1, 1, 1], [0], [0]>} : vector<1x8x8xbf16>, vector<1x8x8xbf16>, vector<1x8x8xf32> -> vector<1x8x8xf32>
    "tpu.trace_stop"() : () -> ()
    %cst_44 = arith.constant dense<0xFF800000> : vector<1x8xf32>
    %151 = vector.multi_reduction <maximumf>, %150, %cst_44 [2] : vector<1x8x8xf32> to vector<1x8xf32>
    %152 = vector.shape_cast %151 : vector<1x8xf32> to vector<1x8x1xf32>
    %153 = vector.broadcast %152 : vector<1x8x1xf32> to vector<1x8x8xf32>
    %154 = arith.subf %150, %153 : vector<1x8x8xf32>
    %155 = math.exp %154 : vector<1x8x8xf32>
    %cst_45 = arith.constant dense<0.000000e+00> : vector<1x8xf32>
    %156 = vector.multi_reduction <add>, %155, %cst_45 [2] : vector<1x8x8xf32> to vector<1x8xf32>
    %157 = vector.shape_cast %156 : vector<1x8xf32> to vector<1x8x1xf32>
    %158 = tpu.reciprocal %157 {approx = true} : vector<1x8x1xf32> -> vector<1x8x1xf32>
    %159 = vector.broadcast %158 : vector<1x8x1xf32> to vector<1x8x8xf32>
    %160 = arith.mulf %155, %159 : vector<1x8x8xf32>
    %161 = arith.truncf %160 : vector<1x8x8xf32> to vector<1x8x8xbf16>
    %162 = arith.truncf %147 : vector<1x8x8xf32> to vector<1x8x8xbf16>
    "tpu.trace_start"() <{level = 10 : i32, message = "nqk,nkd->nqd"}> : () -> ()
    %cst_46 = arith.constant dense<0.000000e+00> : vector<1x8x8xf32>
    %163 = tpu.matmul %161, %162, %cst_46 {dimension_numbers = #tpu.dot_dimension_numbers<[2], [1], [1], [2], [0, 0, 0, 1, 1, 2], [0], [0]>} : vector<1x8x8xbf16>, vector<1x8x8xbf16>, vector<1x8x8xf32> -> vector<1x8x8xf32>
    "tpu.trace_stop"() : () -> ()
    %164 = vector.shape_cast %163 : vector<1x8x8xf32> to vector<8x8xf32>
    %165 = arith.truncf %164 : vector<8x8xf32> to vector<8x8xbf16>
    %c4 = arith.constant 4 : index
    %c0_47 = arith.constant 0 : index
    %c0_48 = arith.constant 0 : index
    %166 = vector.load %arg6[%c4, %c0_47, %c0_48] : memref<16x8x128xbf16, #tpu.memory_space<vmem>>, vector<1x8x128xbf16>
    %167 = vector.shape_cast %166 : vector<1x8x128xbf16> to vector<8x128xbf16>
    %cst_49 = arith.constant dense<0.000000e+00> : vector<8x128xf32>
    %168 = tpu.matmul %165, %167, %cst_49 {dimension_numbers = #tpu.dot_dimension_numbers<[1], [0], [0], [1], [0, 0, 1, 1], [], []>} : vector<8x8xbf16>, vector<8x128xbf16>, vector<8x128xf32> -> vector<8x128xf32>
    %169 = arith.addf %141, %168 : vector<8x128xf32>
    %170 = vector.extract_strided_slice %30 {offsets = [0, 40], sizes = [8, 8], strides = [1, 1]} : vector<8x384xf32> to vector<8x8xf32>
    %171 = vector.shape_cast %170 : vector<8x8xf32> to vector<1x8x8xf32>
    %172 = vector.extract_strided_slice %30 {offsets = [0, 168], sizes = [8, 8], strides = [1, 1]} : vector<8x384xf32> to vector<8x8xf32>
    %173 = vector.shape_cast %172 : vector<8x8xf32> to vector<1x8x8xf32>
    %174 = vector.extract_strided_slice %30 {offsets = [0, 296], sizes = [8, 8], strides = [1, 1]} : vector<8x384xf32> to vector<8x8xf32>
    %175 = vector.shape_cast %174 : vector<8x8xf32> to vector<1x8x8xf32>
    %176 = arith.truncf %171 : vector<1x8x8xf32> to vector<1x8x8xbf16>
    %177 = arith.truncf %173 : vector<1x8x8xf32> to vector<1x8x8xbf16>
    "tpu.trace_start"() <{level = 10 : i32, message = "nqd,nkd->nqk"}> : () -> ()
    %cst_50 = arith.constant dense<0.000000e+00> : vector<1x8x8xf32>
    %178 = tpu.matmul %176, %177, %cst_50 {dimension_numbers = #tpu.dot_dimension_numbers<[2], [2], [1], [1], [0, 0, 0, 1, 1, 1], [0], [0]>} : vector<1x8x8xbf16>, vector<1x8x8xbf16>, vector<1x8x8xf32> -> vector<1x8x8xf32>
    "tpu.trace_stop"() : () -> ()
    %cst_51 = arith.constant dense<0xFF800000> : vector<1x8xf32>
    %179 = vector.multi_reduction <maximumf>, %178, %cst_51 [2] : vector<1x8x8xf32> to vector<1x8xf32>
    %180 = vector.shape_cast %179 : vector<1x8xf32> to vector<1x8x1xf32>
    %181 = vector.broadcast %180 : vector<1x8x1xf32> to vector<1x8x8xf32>
    %182 = arith.subf %178, %181 : vector<1x8x8xf32>
    %183 = math.exp %182 : vector<1x8x8xf32>
    %cst_52 = arith.constant dense<0.000000e+00> : vector<1x8xf32>
    %184 = vector.multi_reduction <add>, %183, %cst_52 [2] : vector<1x8x8xf32> to vector<1x8xf32>
    %185 = vector.shape_cast %184 : vector<1x8xf32> to vector<1x8x1xf32>
    %186 = tpu.reciprocal %185 {approx = true} : vector<1x8x1xf32> -> vector<1x8x1xf32>
    %187 = vector.broadcast %186 : vector<1x8x1xf32> to vector<1x8x8xf32>
    %188 = arith.mulf %183, %187 : vector<1x8x8xf32>
    %189 = arith.truncf %188 : vector<1x8x8xf32> to vector<1x8x8xbf16>
    %190 = arith.truncf %175 : vector<1x8x8xf32> to vector<1x8x8xbf16>
    "tpu.trace_start"() <{level = 10 : i32, message = "nqk,nkd->nqd"}> : () -> ()
    %cst_53 = arith.constant dense<0.000000e+00> : vector<1x8x8xf32>
    %191 = tpu.matmul %189, %190, %cst_53 {dimension_numbers = #tpu.dot_dimension_numbers<[2], [1], [1], [2], [0, 0, 0, 1, 1, 2], [0], [0]>} : vector<1x8x8xbf16>, vector<1x8x8xbf16>, vector<1x8x8xf32> -> vector<1x8x8xf32>
    "tpu.trace_stop"() : () -> ()
    %192 = vector.shape_cast %191 : vector<1x8x8xf32> to vector<8x8xf32>
    %193 = arith.truncf %192 : vector<8x8xf32> to vector<8x8xbf16>
    %c5 = arith.constant 5 : index
    %c0_54 = arith.constant 0 : index
    %c0_55 = arith.constant 0 : index
    %194 = vector.load %arg6[%c5, %c0_54, %c0_55] : memref<16x8x128xbf16, #tpu.memory_space<vmem>>, vector<1x8x128xbf16>
    %195 = vector.shape_cast %194 : vector<1x8x128xbf16> to vector<8x128xbf16>
    %cst_56 = arith.constant dense<0.000000e+00> : vector<8x128xf32>
    %196 = tpu.matmul %193, %195, %cst_56 {dimension_numbers = #tpu.dot_dimension_numbers<[1], [0], [0], [1], [0, 0, 1, 1], [], []>} : vector<8x8xbf16>, vector<8x128xbf16>, vector<8x128xf32> -> vector<8x128xf32>
    %197 = arith.addf %169, %196 : vector<8x128xf32>
    %198 = vector.extract_strided_slice %30 {offsets = [0, 48], sizes = [8, 8], strides = [1, 1]} : vector<8x384xf32> to vector<8x8xf32>
    %199 = vector.shape_cast %198 : vector<8x8xf32> to vector<1x8x8xf32>
    %200 = vector.extract_strided_slice %30 {offsets = [0, 176], sizes = [8, 8], strides = [1, 1]} : vector<8x384xf32> to vector<8x8xf32>
    %201 = vector.shape_cast %200 : vector<8x8xf32> to vector<1x8x8xf32>
    %202 = vector.extract_strided_slice %30 {offsets = [0, 304], sizes = [8, 8], strides = [1, 1]} : vector<8x384xf32> to vector<8x8xf32>
    %203 = vector.shape_cast %202 : vector<8x8xf32> to vector<1x8x8xf32>
    %204 = arith.truncf %199 : vector<1x8x8xf32> to vector<1x8x8xbf16>
    %205 = arith.truncf %201 : vector<1x8x8xf32> to vector<1x8x8xbf16>
    "tpu.trace_start"() <{level = 10 : i32, message = "nqd,nkd->nqk"}> : () -> ()
    %cst_57 = arith.constant dense<0.000000e+00> : vector<1x8x8xf32>
    %206 = tpu.matmul %204, %205, %cst_57 {dimension_numbers = #tpu.dot_dimension_numbers<[2], [2], [1], [1], [0, 0, 0, 1, 1, 1], [0], [0]>} : vector<1x8x8xbf16>, vector<1x8x8xbf16>, vector<1x8x8xf32> -> vector<1x8x8xf32>
    "tpu.trace_stop"() : () -> ()
    %cst_58 = arith.constant dense<0xFF800000> : vector<1x8xf32>
    %207 = vector.multi_reduction <maximumf>, %206, %cst_58 [2] : vector<1x8x8xf32> to vector<1x8xf32>
    %208 = vector.shape_cast %207 : vector<1x8xf32> to vector<1x8x1xf32>
    %209 = vector.broadcast %208 : vector<1x8x1xf32> to vector<1x8x8xf32>
    %210 = arith.subf %206, %209 : vector<1x8x8xf32>
    %211 = math.exp %210 : vector<1x8x8xf32>
    %cst_59 = arith.constant dense<0.000000e+00> : vector<1x8xf32>
    %212 = vector.multi_reduction <add>, %211, %cst_59 [2] : vector<1x8x8xf32> to vector<1x8xf32>
    %213 = vector.shape_cast %212 : vector<1x8xf32> to vector<1x8x1xf32>
    %214 = tpu.reciprocal %213 {approx = true} : vector<1x8x1xf32> -> vector<1x8x1xf32>
    %215 = vector.broadcast %214 : vector<1x8x1xf32> to vector<1x8x8xf32>
    %216 = arith.mulf %211, %215 : vector<1x8x8xf32>
    %217 = arith.truncf %216 : vector<1x8x8xf32> to vector<1x8x8xbf16>
    %218 = arith.truncf %203 : vector<1x8x8xf32> to vector<1x8x8xbf16>
    "tpu.trace_start"() <{level = 10 : i32, message = "nqk,nkd->nqd"}> : () -> ()
    %cst_60 = arith.constant dense<0.000000e+00> : vector<1x8x8xf32>
    %219 = tpu.matmul %217, %218, %cst_60 {dimension_numbers = #tpu.dot_dimension_numbers<[2], [1], [1], [2], [0, 0, 0, 1, 1, 2], [0], [0]>} : vector<1x8x8xbf16>, vector<1x8x8xbf16>, vector<1x8x8xf32> -> vector<1x8x8xf32>
    "tpu.trace_stop"() : () -> ()
    %220 = vector.shape_cast %219 : vector<1x8x8xf32> to vector<8x8xf32>
    %221 = arith.truncf %220 : vector<8x8xf32> to vector<8x8xbf16>
    %c6 = arith.constant 6 : index
    %c0_61 = arith.constant 0 : index
    %c0_62 = arith.constant 0 : index
    %222 = vector.load %arg6[%c6, %c0_61, %c0_62] : memref<16x8x128xbf16, #tpu.memory_space<vmem>>, vector<1x8x128xbf16>
    %223 = vector.shape_cast %222 : vector<1x8x128xbf16> to vector<8x128xbf16>
    %cst_63 = arith.constant dense<0.000000e+00> : vector<8x128xf32>
    %224 = tpu.matmul %221, %223, %cst_63 {dimension_numbers = #tpu.dot_dimension_numbers<[1], [0], [0], [1], [0, 0, 1, 1], [], []>} : vector<8x8xbf16>, vector<8x128xbf16>, vector<8x128xf32> -> vector<8x128xf32>
    %225 = arith.addf %197, %224 : vector<8x128xf32>
    %226 = vector.extract_strided_slice %30 {offsets = [0, 56], sizes = [8, 8], strides = [1, 1]} : vector<8x384xf32> to vector<8x8xf32>
    %227 = vector.shape_cast %226 : vector<8x8xf32> to vector<1x8x8xf32>
    %228 = vector.extract_strided_slice %30 {offsets = [0, 184], sizes = [8, 8], strides = [1, 1]} : vector<8x384xf32> to vector<8x8xf32>
    %229 = vector.shape_cast %228 : vector<8x8xf32> to vector<1x8x8xf32>
    %230 = vector.extract_strided_slice %30 {offsets = [0, 312], sizes = [8, 8], strides = [1, 1]} : vector<8x384xf32> to vector<8x8xf32>
    %231 = vector.shape_cast %230 : vector<8x8xf32> to vector<1x8x8xf32>
    %232 = arith.truncf %227 : vector<1x8x8xf32> to vector<1x8x8xbf16>
    %233 = arith.truncf %229 : vector<1x8x8xf32> to vector<1x8x8xbf16>
    "tpu.trace_start"() <{level = 10 : i32, message = "nqd,nkd->nqk"}> : () -> ()
    %cst_64 = arith.constant dense<0.000000e+00> : vector<1x8x8xf32>
    %234 = tpu.matmul %232, %233, %cst_64 {dimension_numbers = #tpu.dot_dimension_numbers<[2], [2], [1], [1], [0, 0, 0, 1, 1, 1], [0], [0]>} : vector<1x8x8xbf16>, vector<1x8x8xbf16>, vector<1x8x8xf32> -> vector<1x8x8xf32>
    "tpu.trace_stop"() : () -> ()
    %cst_65 = arith.constant dense<0xFF800000> : vector<1x8xf32>
    %235 = vector.multi_reduction <maximumf>, %234, %cst_65 [2] : vector<1x8x8xf32> to vector<1x8xf32>
    %236 = vector.shape_cast %235 : vector<1x8xf32> to vector<1x8x1xf32>
    %237 = vector.broadcast %236 : vector<1x8x1xf32> to vector<1x8x8xf32>
    %238 = arith.subf %234, %237 : vector<1x8x8xf32>
    %239 = math.exp %238 : vector<1x8x8xf32>
    %cst_66 = arith.constant dense<0.000000e+00> : vector<1x8xf32>
    %240 = vector.multi_reduction <add>, %239, %cst_66 [2] : vector<1x8x8xf32> to vector<1x8xf32>
    %241 = vector.shape_cast %240 : vector<1x8xf32> to vector<1x8x1xf32>
    %242 = tpu.reciprocal %241 {approx = true} : vector<1x8x1xf32> -> vector<1x8x1xf32>
    %243 = vector.broadcast %242 : vector<1x8x1xf32> to vector<1x8x8xf32>
    %244 = arith.mulf %239, %243 : vector<1x8x8xf32>
    %245 = arith.truncf %244 : vector<1x8x8xf32> to vector<1x8x8xbf16>
    %246 = arith.truncf %231 : vector<1x8x8xf32> to vector<1x8x8xbf16>
    "tpu.trace_start"() <{level = 10 : i32, message = "nqk,nkd->nqd"}> : () -> ()
    %cst_67 = arith.constant dense<0.000000e+00> : vector<1x8x8xf32>
    %247 = tpu.matmul %245, %246, %cst_67 {dimension_numbers = #tpu.dot_dimension_numbers<[2], [1], [1], [2], [0, 0, 0, 1, 1, 2], [0], [0]>} : vector<1x8x8xbf16>, vector<1x8x8xbf16>, vector<1x8x8xf32> -> vector<1x8x8xf32>
    "tpu.trace_stop"() : () -> ()
    %248 = vector.shape_cast %247 : vector<1x8x8xf32> to vector<8x8xf32>
    %249 = arith.truncf %248 : vector<8x8xf32> to vector<8x8xbf16>
    %c7 = arith.constant 7 : index
    %c0_68 = arith.constant 0 : index
    %c0_69 = arith.constant 0 : index
    %250 = vector.load %arg6[%c7, %c0_68, %c0_69] : memref<16x8x128xbf16, #tpu.memory_space<vmem>>, vector<1x8x128xbf16>
    %251 = vector.shape_cast %250 : vector<1x8x128xbf16> to vector<8x128xbf16>
    %cst_70 = arith.constant dense<0.000000e+00> : vector<8x128xf32>
    %252 = tpu.matmul %249, %251, %cst_70 {dimension_numbers = #tpu.dot_dimension_numbers<[1], [0], [0], [1], [0, 0, 1, 1], [], []>} : vector<8x8xbf16>, vector<8x128xbf16>, vector<8x128xf32> -> vector<8x128xf32>
    %253 = arith.addf %225, %252 : vector<8x128xf32>
    %254 = vector.extract_strided_slice %30 {offsets = [0, 64], sizes = [8, 8], strides = [1, 1]} : vector<8x384xf32> to vector<8x8xf32>
    %255 = vector.shape_cast %254 : vector<8x8xf32> to vector<1x8x8xf32>
    %256 = vector.extract_strided_slice %30 {offsets = [0, 192], sizes = [8, 8], strides = [1, 1]} : vector<8x384xf32> to vector<8x8xf32>
    %257 = vector.shape_cast %256 : vector<8x8xf32> to vector<1x8x8xf32>
    %258 = vector.extract_strided_slice %30 {offsets = [0, 320], sizes = [8, 8], strides = [1, 1]} : vector<8x384xf32> to vector<8x8xf32>
    %259 = vector.shape_cast %258 : vector<8x8xf32> to vector<1x8x8xf32>
    %260 = arith.truncf %255 : vector<1x8x8xf32> to vector<1x8x8xbf16>
    %261 = arith.truncf %257 : vector<1x8x8xf32> to vector<1x8x8xbf16>
    "tpu.trace_start"() <{level = 10 : i32, message = "nqd,nkd->nqk"}> : () -> ()
    %cst_71 = arith.constant dense<0.000000e+00> : vector<1x8x8xf32>
    %262 = tpu.matmul %260, %261, %cst_71 {dimension_numbers = #tpu.dot_dimension_numbers<[2], [2], [1], [1], [0, 0, 0, 1, 1, 1], [0], [0]>} : vector<1x8x8xbf16>, vector<1x8x8xbf16>, vector<1x8x8xf32> -> vector<1x8x8xf32>
    "tpu.trace_stop"() : () -> ()
    %cst_72 = arith.constant dense<0xFF800000> : vector<1x8xf32>
    %263 = vector.multi_reduction <maximumf>, %262, %cst_72 [2] : vector<1x8x8xf32> to vector<1x8xf32>
    %264 = vector.shape_cast %263 : vector<1x8xf32> to vector<1x8x1xf32>
    %265 = vector.broadcast %264 : vector<1x8x1xf32> to vector<1x8x8xf32>
    %266 = arith.subf %262, %265 : vector<1x8x8xf32>
    %267 = math.exp %266 : vector<1x8x8xf32>
    %cst_73 = arith.constant dense<0.000000e+00> : vector<1x8xf32>
    %268 = vector.multi_reduction <add>, %267, %cst_73 [2] : vector<1x8x8xf32> to vector<1x8xf32>
    %269 = vector.shape_cast %268 : vector<1x8xf32> to vector<1x8x1xf32>
    %270 = tpu.reciprocal %269 {approx = true} : vector<1x8x1xf32> -> vector<1x8x1xf32>
    %271 = vector.broadcast %270 : vector<1x8x1xf32> to vector<1x8x8xf32>
    %272 = arith.mulf %267, %271 : vector<1x8x8xf32>
    %273 = arith.truncf %272 : vector<1x8x8xf32> to vector<1x8x8xbf16>
    %274 = arith.truncf %259 : vector<1x8x8xf32> to vector<1x8x8xbf16>
    "tpu.trace_start"() <{level = 10 : i32, message = "nqk,nkd->nqd"}> : () -> ()
    %cst_74 = arith.constant dense<0.000000e+00> : vector<1x8x8xf32>
    %275 = tpu.matmul %273, %274, %cst_74 {dimension_numbers = #tpu.dot_dimension_numbers<[2], [1], [1], [2], [0, 0, 0, 1, 1, 2], [0], [0]>} : vector<1x8x8xbf16>, vector<1x8x8xbf16>, vector<1x8x8xf32> -> vector<1x8x8xf32>
    "tpu.trace_stop"() : () -> ()
    %276 = vector.shape_cast %275 : vector<1x8x8xf32> to vector<8x8xf32>
    %277 = arith.truncf %276 : vector<8x8xf32> to vector<8x8xbf16>
    %c8 = arith.constant 8 : index
    %c0_75 = arith.constant 0 : index
    %c0_76 = arith.constant 0 : index
    %278 = vector.load %arg6[%c8, %c0_75, %c0_76] : memref<16x8x128xbf16, #tpu.memory_space<vmem>>, vector<1x8x128xbf16>
    %279 = vector.shape_cast %278 : vector<1x8x128xbf16> to vector<8x128xbf16>
    %cst_77 = arith.constant dense<0.000000e+00> : vector<8x128xf32>
    %280 = tpu.matmul %277, %279, %cst_77 {dimension_numbers = #tpu.dot_dimension_numbers<[1], [0], [0], [1], [0, 0, 1, 1], [], []>} : vector<8x8xbf16>, vector<8x128xbf16>, vector<8x128xf32> -> vector<8x128xf32>
    %281 = arith.addf %253, %280 : vector<8x128xf32>
    %282 = vector.extract_strided_slice %30 {offsets = [0, 72], sizes = [8, 8], strides = [1, 1]} : vector<8x384xf32> to vector<8x8xf32>
    %283 = vector.shape_cast %282 : vector<8x8xf32> to vector<1x8x8xf32>
    %284 = vector.extract_strided_slice %30 {offsets = [0, 200], sizes = [8, 8], strides = [1, 1]} : vector<8x384xf32> to vector<8x8xf32>
    %285 = vector.shape_cast %284 : vector<8x8xf32> to vector<1x8x8xf32>
    %286 = vector.extract_strided_slice %30 {offsets = [0, 328], sizes = [8, 8], strides = [1, 1]} : vector<8x384xf32> to vector<8x8xf32>
    %287 = vector.shape_cast %286 : vector<8x8xf32> to vector<1x8x8xf32>
    %288 = arith.truncf %283 : vector<1x8x8xf32> to vector<1x8x8xbf16>
    %289 = arith.truncf %285 : vector<1x8x8xf32> to vector<1x8x8xbf16>
    "tpu.trace_start"() <{level = 10 : i32, message = "nqd,nkd->nqk"}> : () -> ()
    %cst_78 = arith.constant dense<0.000000e+00> : vector<1x8x8xf32>
    %290 = tpu.matmul %288, %289, %cst_78 {dimension_numbers = #tpu.dot_dimension_numbers<[2], [2], [1], [1], [0, 0, 0, 1, 1, 1], [0], [0]>} : vector<1x8x8xbf16>, vector<1x8x8xbf16>, vector<1x8x8xf32> -> vector<1x8x8xf32>
    "tpu.trace_stop"() : () -> ()
    %cst_79 = arith.constant dense<0xFF800000> : vector<1x8xf32>
    %291 = vector.multi_reduction <maximumf>, %290, %cst_79 [2] : vector<1x8x8xf32> to vector<1x8xf32>
    %292 = vector.shape_cast %291 : vector<1x8xf32> to vector<1x8x1xf32>
    %293 = vector.broadcast %292 : vector<1x8x1xf32> to vector<1x8x8xf32>
    %294 = arith.subf %290, %293 : vector<1x8x8xf32>
    %295 = math.exp %294 : vector<1x8x8xf32>
    %cst_80 = arith.constant dense<0.000000e+00> : vector<1x8xf32>
    %296 = vector.multi_reduction <add>, %295, %cst_80 [2] : vector<1x8x8xf32> to vector<1x8xf32>
    %297 = vector.shape_cast %296 : vector<1x8xf32> to vector<1x8x1xf32>
    %298 = tpu.reciprocal %297 {approx = true} : vector<1x8x1xf32> -> vector<1x8x1xf32>
    %299 = vector.broadcast %298 : vector<1x8x1xf32> to vector<1x8x8xf32>
    %300 = arith.mulf %295, %299 : vector<1x8x8xf32>
    %301 = arith.truncf %300 : vector<1x8x8xf32> to vector<1x8x8xbf16>
    %302 = arith.truncf %287 : vector<1x8x8xf32> to vector<1x8x8xbf16>
    "tpu.trace_start"() <{level = 10 : i32, message = "nqk,nkd->nqd"}> : () -> ()
    %cst_81 = arith.constant dense<0.000000e+00> : vector<1x8x8xf32>
    %303 = tpu.matmul %301, %302, %cst_81 {dimension_numbers = #tpu.dot_dimension_numbers<[2], [1], [1], [2], [0, 0, 0, 1, 1, 2], [0], [0]>} : vector<1x8x8xbf16>, vector<1x8x8xbf16>, vector<1x8x8xf32> -> vector<1x8x8xf32>
    "tpu.trace_stop"() : () -> ()
    %304 = vector.shape_cast %303 : vector<1x8x8xf32> to vector<8x8xf32>
    %305 = arith.truncf %304 : vector<8x8xf32> to vector<8x8xbf16>
    %c9 = arith.constant 9 : index
    %c0_82 = arith.constant 0 : index
    %c0_83 = arith.constant 0 : index
    %306 = vector.load %arg6[%c9, %c0_82, %c0_83] : memref<16x8x128xbf16, #tpu.memory_space<vmem>>, vector<1x8x128xbf16>
    %307 = vector.shape_cast %306 : vector<1x8x128xbf16> to vector<8x128xbf16>
    %cst_84 = arith.constant dense<0.000000e+00> : vector<8x128xf32>
    %308 = tpu.matmul %305, %307, %cst_84 {dimension_numbers = #tpu.dot_dimension_numbers<[1], [0], [0], [1], [0, 0, 1, 1], [], []>} : vector<8x8xbf16>, vector<8x128xbf16>, vector<8x128xf32> -> vector<8x128xf32>
    %309 = arith.addf %281, %308 : vector<8x128xf32>
    %310 = vector.extract_strided_slice %30 {offsets = [0, 80], sizes = [8, 8], strides = [1, 1]} : vector<8x384xf32> to vector<8x8xf32>
    %311 = vector.shape_cast %310 : vector<8x8xf32> to vector<1x8x8xf32>
    %312 = vector.extract_strided_slice %30 {offsets = [0, 208], sizes = [8, 8], strides = [1, 1]} : vector<8x384xf32> to vector<8x8xf32>
    %313 = vector.shape_cast %312 : vector<8x8xf32> to vector<1x8x8xf32>
    %314 = vector.extract_strided_slice %30 {offsets = [0, 336], sizes = [8, 8], strides = [1, 1]} : vector<8x384xf32> to vector<8x8xf32>
    %315 = vector.shape_cast %314 : vector<8x8xf32> to vector<1x8x8xf32>
    %316 = arith.truncf %311 : vector<1x8x8xf32> to vector<1x8x8xbf16>
    %317 = arith.truncf %313 : vector<1x8x8xf32> to vector<1x8x8xbf16>
    "tpu.trace_start"() <{level = 10 : i32, message = "nqd,nkd->nqk"}> : () -> ()
    %cst_85 = arith.constant dense<0.000000e+00> : vector<1x8x8xf32>
    %318 = tpu.matmul %316, %317, %cst_85 {dimension_numbers = #tpu.dot_dimension_numbers<[2], [2], [1], [1], [0, 0, 0, 1, 1, 1], [0], [0]>} : vector<1x8x8xbf16>, vector<1x8x8xbf16>, vector<1x8x8xf32> -> vector<1x8x8xf32>
    "tpu.trace_stop"() : () -> ()
    %cst_86 = arith.constant dense<0xFF800000> : vector<1x8xf32>
    %319 = vector.multi_reduction <maximumf>, %318, %cst_86 [2] : vector<1x8x8xf32> to vector<1x8xf32>
    %320 = vector.shape_cast %319 : vector<1x8xf32> to vector<1x8x1xf32>
    %321 = vector.broadcast %320 : vector<1x8x1xf32> to vector<1x8x8xf32>
    %322 = arith.subf %318, %321 : vector<1x8x8xf32>
    %323 = math.exp %322 : vector<1x8x8xf32>
    %cst_87 = arith.constant dense<0.000000e+00> : vector<1x8xf32>
    %324 = vector.multi_reduction <add>, %323, %cst_87 [2] : vector<1x8x8xf32> to vector<1x8xf32>
    %325 = vector.shape_cast %324 : vector<1x8xf32> to vector<1x8x1xf32>
    %326 = tpu.reciprocal %325 {approx = true} : vector<1x8x1xf32> -> vector<1x8x1xf32>
    %327 = vector.broadcast %326 : vector<1x8x1xf32> to vector<1x8x8xf32>
    %328 = arith.mulf %323, %327 : vector<1x8x8xf32>
    %329 = arith.truncf %328 : vector<1x8x8xf32> to vector<1x8x8xbf16>
    %330 = arith.truncf %315 : vector<1x8x8xf32> to vector<1x8x8xbf16>
    "tpu.trace_start"() <{level = 10 : i32, message = "nqk,nkd->nqd"}> : () -> ()
    %cst_88 = arith.constant dense<0.000000e+00> : vector<1x8x8xf32>
    %331 = tpu.matmul %329, %330, %cst_88 {dimension_numbers = #tpu.dot_dimension_numbers<[2], [1], [1], [2], [0, 0, 0, 1, 1, 2], [0], [0]>} : vector<1x8x8xbf16>, vector<1x8x8xbf16>, vector<1x8x8xf32> -> vector<1x8x8xf32>
    "tpu.trace_stop"() : () -> ()
    %332 = vector.shape_cast %331 : vector<1x8x8xf32> to vector<8x8xf32>
    %333 = arith.truncf %332 : vector<8x8xf32> to vector<8x8xbf16>
    %c10 = arith.constant 10 : index
    %c0_89 = arith.constant 0 : index
    %c0_90 = arith.constant 0 : index
    %334 = vector.load %arg6[%c10, %c0_89, %c0_90] : memref<16x8x128xbf16, #tpu.memory_space<vmem>>, vector<1x8x128xbf16>
    %335 = vector.shape_cast %334 : vector<1x8x128xbf16> to vector<8x128xbf16>
    %cst_91 = arith.constant dense<0.000000e+00> : vector<8x128xf32>
    %336 = tpu.matmul %333, %335, %cst_91 {dimension_numbers = #tpu.dot_dimension_numbers<[1], [0], [0], [1], [0, 0, 1, 1], [], []>} : vector<8x8xbf16>, vector<8x128xbf16>, vector<8x128xf32> -> vector<8x128xf32>
    %337 = arith.addf %309, %336 : vector<8x128xf32>
    %338 = vector.extract_strided_slice %30 {offsets = [0, 88], sizes = [8, 8], strides = [1, 1]} : vector<8x384xf32> to vector<8x8xf32>
    %339 = vector.shape_cast %338 : vector<8x8xf32> to vector<1x8x8xf32>
    %340 = vector.extract_strided_slice %30 {offsets = [0, 216], sizes = [8, 8], strides = [1, 1]} : vector<8x384xf32> to vector<8x8xf32>
    %341 = vector.shape_cast %340 : vector<8x8xf32> to vector<1x8x8xf32>
    %342 = vector.extract_strided_slice %30 {offsets = [0, 344], sizes = [8, 8], strides = [1, 1]} : vector<8x384xf32> to vector<8x8xf32>
    %343 = vector.shape_cast %342 : vector<8x8xf32> to vector<1x8x8xf32>
    %344 = arith.truncf %339 : vector<1x8x8xf32> to vector<1x8x8xbf16>
    %345 = arith.truncf %341 : vector<1x8x8xf32> to vector<1x8x8xbf16>
    "tpu.trace_start"() <{level = 10 : i32, message = "nqd,nkd->nqk"}> : () -> ()
    %cst_92 = arith.constant dense<0.000000e+00> : vector<1x8x8xf32>
    %346 = tpu.matmul %344, %345, %cst_92 {dimension_numbers = #tpu.dot_dimension_numbers<[2], [2], [1], [1], [0, 0, 0, 1, 1, 1], [0], [0]>} : vector<1x8x8xbf16>, vector<1x8x8xbf16>, vector<1x8x8xf32> -> vector<1x8x8xf32>
    "tpu.trace_stop"() : () -> ()
    %cst_93 = arith.constant dense<0xFF800000> : vector<1x8xf32>
    %347 = vector.multi_reduction <maximumf>, %346, %cst_93 [2] : vector<1x8x8xf32> to vector<1x8xf32>
    %348 = vector.shape_cast %347 : vector<1x8xf32> to vector<1x8x1xf32>
    %349 = vector.broadcast %348 : vector<1x8x1xf32> to vector<1x8x8xf32>
    %350 = arith.subf %346, %349 : vector<1x8x8xf32>
    %351 = math.exp %350 : vector<1x8x8xf32>
    %cst_94 = arith.constant dense<0.000000e+00> : vector<1x8xf32>
    %352 = vector.multi_reduction <add>, %351, %cst_94 [2] : vector<1x8x8xf32> to vector<1x8xf32>
    %353 = vector.shape_cast %352 : vector<1x8xf32> to vector<1x8x1xf32>
    %354 = tpu.reciprocal %353 {approx = true} : vector<1x8x1xf32> -> vector<1x8x1xf32>
    %355 = vector.broadcast %354 : vector<1x8x1xf32> to vector<1x8x8xf32>
    %356 = arith.mulf %351, %355 : vector<1x8x8xf32>
    %357 = arith.truncf %356 : vector<1x8x8xf32> to vector<1x8x8xbf16>
    %358 = arith.truncf %343 : vector<1x8x8xf32> to vector<1x8x8xbf16>
    "tpu.trace_start"() <{level = 10 : i32, message = "nqk,nkd->nqd"}> : () -> ()
    %cst_95 = arith.constant dense<0.000000e+00> : vector<1x8x8xf32>
    %359 = tpu.matmul %357, %358, %cst_95 {dimension_numbers = #tpu.dot_dimension_numbers<[2], [1], [1], [2], [0, 0, 0, 1, 1, 2], [0], [0]>} : vector<1x8x8xbf16>, vector<1x8x8xbf16>, vector<1x8x8xf32> -> vector<1x8x8xf32>
    "tpu.trace_stop"() : () -> ()
    %360 = vector.shape_cast %359 : vector<1x8x8xf32> to vector<8x8xf32>
    %361 = arith.truncf %360 : vector<8x8xf32> to vector<8x8xbf16>
    %c11 = arith.constant 11 : index
    %c0_96 = arith.constant 0 : index
    %c0_97 = arith.constant 0 : index
    %362 = vector.load %arg6[%c11, %c0_96, %c0_97] : memref<16x8x128xbf16, #tpu.memory_space<vmem>>, vector<1x8x128xbf16>
    %363 = vector.shape_cast %362 : vector<1x8x128xbf16> to vector<8x128xbf16>
    %cst_98 = arith.constant dense<0.000000e+00> : vector<8x128xf32>
    %364 = tpu.matmul %361, %363, %cst_98 {dimension_numbers = #tpu.dot_dimension_numbers<[1], [0], [0], [1], [0, 0, 1, 1], [], []>} : vector<8x8xbf16>, vector<8x128xbf16>, vector<8x128xf32> -> vector<8x128xf32>
    %365 = arith.addf %337, %364 : vector<8x128xf32>
    %366 = vector.extract_strided_slice %30 {offsets = [0, 96], sizes = [8, 8], strides = [1, 1]} : vector<8x384xf32> to vector<8x8xf32>
    %367 = vector.shape_cast %366 : vector<8x8xf32> to vector<1x8x8xf32>
    %368 = vector.extract_strided_slice %30 {offsets = [0, 224], sizes = [8, 8], strides = [1, 1]} : vector<8x384xf32> to vector<8x8xf32>
    %369 = vector.shape_cast %368 : vector<8x8xf32> to vector<1x8x8xf32>
    %370 = vector.extract_strided_slice %30 {offsets = [0, 352], sizes = [8, 8], strides = [1, 1]} : vector<8x384xf32> to vector<8x8xf32>
    %371 = vector.shape_cast %370 : vector<8x8xf32> to vector<1x8x8xf32>
    %372 = arith.truncf %367 : vector<1x8x8xf32> to vector<1x8x8xbf16>
    %373 = arith.truncf %369 : vector<1x8x8xf32> to vector<1x8x8xbf16>
    "tpu.trace_start"() <{level = 10 : i32, message = "nqd,nkd->nqk"}> : () -> ()
    %cst_99 = arith.constant dense<0.000000e+00> : vector<1x8x8xf32>
    %374 = tpu.matmul %372, %373, %cst_99 {dimension_numbers = #tpu.dot_dimension_numbers<[2], [2], [1], [1], [0, 0, 0, 1, 1, 1], [0], [0]>} : vector<1x8x8xbf16>, vector<1x8x8xbf16>, vector<1x8x8xf32> -> vector<1x8x8xf32>
    "tpu.trace_stop"() : () -> ()
    %cst_100 = arith.constant dense<0xFF800000> : vector<1x8xf32>
    %375 = vector.multi_reduction <maximumf>, %374, %cst_100 [2] : vector<1x8x8xf32> to vector<1x8xf32>
    %376 = vector.shape_cast %375 : vector<1x8xf32> to vector<1x8x1xf32>
    %377 = vector.broadcast %376 : vector<1x8x1xf32> to vector<1x8x8xf32>
    %378 = arith.subf %374, %377 : vector<1x8x8xf32>
    %379 = math.exp %378 : vector<1x8x8xf32>
    %cst_101 = arith.constant dense<0.000000e+00> : vector<1x8xf32>
    %380 = vector.multi_reduction <add>, %379, %cst_101 [2] : vector<1x8x8xf32> to vector<1x8xf32>
    %381 = vector.shape_cast %380 : vector<1x8xf32> to vector<1x8x1xf32>
    %382 = tpu.reciprocal %381 {approx = true} : vector<1x8x1xf32> -> vector<1x8x1xf32>
    %383 = vector.broadcast %382 : vector<1x8x1xf32> to vector<1x8x8xf32>
    %384 = arith.mulf %379, %383 : vector<1x8x8xf32>
    %385 = arith.truncf %384 : vector<1x8x8xf32> to vector<1x8x8xbf16>
    %386 = arith.truncf %371 : vector<1x8x8xf32> to vector<1x8x8xbf16>
    "tpu.trace_start"() <{level = 10 : i32, message = "nqk,nkd->nqd"}> : () -> ()
    %cst_102 = arith.constant dense<0.000000e+00> : vector<1x8x8xf32>
    %387 = tpu.matmul %385, %386, %cst_102 {dimension_numbers = #tpu.dot_dimension_numbers<[2], [1], [1], [2], [0, 0, 0, 1, 1, 2], [0], [0]>} : vector<1x8x8xbf16>, vector<1x8x8xbf16>, vector<1x8x8xf32> -> vector<1x8x8xf32>
    "tpu.trace_stop"() : () -> ()
    %388 = vector.shape_cast %387 : vector<1x8x8xf32> to vector<8x8xf32>
    %389 = arith.truncf %388 : vector<8x8xf32> to vector<8x8xbf16>
    %c12 = arith.constant 12 : index
    %c0_103 = arith.constant 0 : index
    %c0_104 = arith.constant 0 : index
    %390 = vector.load %arg6[%c12, %c0_103, %c0_104] : memref<16x8x128xbf16, #tpu.memory_space<vmem>>, vector<1x8x128xbf16>
    %391 = vector.shape_cast %390 : vector<1x8x128xbf16> to vector<8x128xbf16>
    %cst_105 = arith.constant dense<0.000000e+00> : vector<8x128xf32>
    %392 = tpu.matmul %389, %391, %cst_105 {dimension_numbers = #tpu.dot_dimension_numbers<[1], [0], [0], [1], [0, 0, 1, 1], [], []>} : vector<8x8xbf16>, vector<8x128xbf16>, vector<8x128xf32> -> vector<8x128xf32>
    %393 = arith.addf %365, %392 : vector<8x128xf32>
    %394 = vector.extract_strided_slice %30 {offsets = [0, 104], sizes = [8, 8], strides = [1, 1]} : vector<8x384xf32> to vector<8x8xf32>
    %395 = vector.shape_cast %394 : vector<8x8xf32> to vector<1x8x8xf32>
    %396 = vector.extract_strided_slice %30 {offsets = [0, 232], sizes = [8, 8], strides = [1, 1]} : vector<8x384xf32> to vector<8x8xf32>
    %397 = vector.shape_cast %396 : vector<8x8xf32> to vector<1x8x8xf32>
    %398 = vector.extract_strided_slice %30 {offsets = [0, 360], sizes = [8, 8], strides = [1, 1]} : vector<8x384xf32> to vector<8x8xf32>
    %399 = vector.shape_cast %398 : vector<8x8xf32> to vector<1x8x8xf32>
    %400 = arith.truncf %395 : vector<1x8x8xf32> to vector<1x8x8xbf16>
    %401 = arith.truncf %397 : vector<1x8x8xf32> to vector<1x8x8xbf16>
    "tpu.trace_start"() <{level = 10 : i32, message = "nqd,nkd->nqk"}> : () -> ()
    %cst_106 = arith.constant dense<0.000000e+00> : vector<1x8x8xf32>
    %402 = tpu.matmul %400, %401, %cst_106 {dimension_numbers = #tpu.dot_dimension_numbers<[2], [2], [1], [1], [0, 0, 0, 1, 1, 1], [0], [0]>} : vector<1x8x8xbf16>, vector<1x8x8xbf16>, vector<1x8x8xf32> -> vector<1x8x8xf32>
    "tpu.trace_stop"() : () -> ()
    %cst_107 = arith.constant dense<0xFF800000> : vector<1x8xf32>
    %403 = vector.multi_reduction <maximumf>, %402, %cst_107 [2] : vector<1x8x8xf32> to vector<1x8xf32>
    %404 = vector.shape_cast %403 : vector<1x8xf32> to vector<1x8x1xf32>
    %405 = vector.broadcast %404 : vector<1x8x1xf32> to vector<1x8x8xf32>
    %406 = arith.subf %402, %405 : vector<1x8x8xf32>
    %407 = math.exp %406 : vector<1x8x8xf32>
    %cst_108 = arith.constant dense<0.000000e+00> : vector<1x8xf32>
    %408 = vector.multi_reduction <add>, %407, %cst_108 [2] : vector<1x8x8xf32> to vector<1x8xf32>
    %409 = vector.shape_cast %408 : vector<1x8xf32> to vector<1x8x1xf32>
    %410 = tpu.reciprocal %409 {approx = true} : vector<1x8x1xf32> -> vector<1x8x1xf32>
    %411 = vector.broadcast %410 : vector<1x8x1xf32> to vector<1x8x8xf32>
    %412 = arith.mulf %407, %411 : vector<1x8x8xf32>
    %413 = arith.truncf %412 : vector<1x8x8xf32> to vector<1x8x8xbf16>
    %414 = arith.truncf %399 : vector<1x8x8xf32> to vector<1x8x8xbf16>
    "tpu.trace_start"() <{level = 10 : i32, message = "nqk,nkd->nqd"}> : () -> ()
    %cst_109 = arith.constant dense<0.000000e+00> : vector<1x8x8xf32>
    %415 = tpu.matmul %413, %414, %cst_109 {dimension_numbers = #tpu.dot_dimension_numbers<[2], [1], [1], [2], [0, 0, 0, 1, 1, 2], [0], [0]>} : vector<1x8x8xbf16>, vector<1x8x8xbf16>, vector<1x8x8xf32> -> vector<1x8x8xf32>
    "tpu.trace_stop"() : () -> ()
    %416 = vector.shape_cast %415 : vector<1x8x8xf32> to vector<8x8xf32>
    %417 = arith.truncf %416 : vector<8x8xf32> to vector<8x8xbf16>
    %c13 = arith.constant 13 : index
    %c0_110 = arith.constant 0 : index
    %c0_111 = arith.constant 0 : index
    %418 = vector.load %arg6[%c13, %c0_110, %c0_111] : memref<16x8x128xbf16, #tpu.memory_space<vmem>>, vector<1x8x128xbf16>
    %419 = vector.shape_cast %418 : vector<1x8x128xbf16> to vector<8x128xbf16>
    %cst_112 = arith.constant dense<0.000000e+00> : vector<8x128xf32>
    %420 = tpu.matmul %417, %419, %cst_112 {dimension_numbers = #tpu.dot_dimension_numbers<[1], [0], [0], [1], [0, 0, 1, 1], [], []>} : vector<8x8xbf16>, vector<8x128xbf16>, vector<8x128xf32> -> vector<8x128xf32>
    %421 = arith.addf %393, %420 : vector<8x128xf32>
    %422 = vector.extract_strided_slice %30 {offsets = [0, 112], sizes = [8, 8], strides = [1, 1]} : vector<8x384xf32> to vector<8x8xf32>
    %423 = vector.shape_cast %422 : vector<8x8xf32> to vector<1x8x8xf32>
    %424 = vector.extract_strided_slice %30 {offsets = [0, 240], sizes = [8, 8], strides = [1, 1]} : vector<8x384xf32> to vector<8x8xf32>
    %425 = vector.shape_cast %424 : vector<8x8xf32> to vector<1x8x8xf32>
    %426 = vector.extract_strided_slice %30 {offsets = [0, 368], sizes = [8, 8], strides = [1, 1]} : vector<8x384xf32> to vector<8x8xf32>
    %427 = vector.shape_cast %426 : vector<8x8xf32> to vector<1x8x8xf32>
    %428 = arith.truncf %423 : vector<1x8x8xf32> to vector<1x8x8xbf16>
    %429 = arith.truncf %425 : vector<1x8x8xf32> to vector<1x8x8xbf16>
    "tpu.trace_start"() <{level = 10 : i32, message = "nqd,nkd->nqk"}> : () -> ()
    %cst_113 = arith.constant dense<0.000000e+00> : vector<1x8x8xf32>
    %430 = tpu.matmul %428, %429, %cst_113 {dimension_numbers = #tpu.dot_dimension_numbers<[2], [2], [1], [1], [0, 0, 0, 1, 1, 1], [0], [0]>} : vector<1x8x8xbf16>, vector<1x8x8xbf16>, vector<1x8x8xf32> -> vector<1x8x8xf32>
    "tpu.trace_stop"() : () -> ()
    %cst_114 = arith.constant dense<0xFF800000> : vector<1x8xf32>
    %431 = vector.multi_reduction <maximumf>, %430, %cst_114 [2] : vector<1x8x8xf32> to vector<1x8xf32>
    %432 = vector.shape_cast %431 : vector<1x8xf32> to vector<1x8x1xf32>
    %433 = vector.broadcast %432 : vector<1x8x1xf32> to vector<1x8x8xf32>
    %434 = arith.subf %430, %433 : vector<1x8x8xf32>
    %435 = math.exp %434 : vector<1x8x8xf32>
    %cst_115 = arith.constant dense<0.000000e+00> : vector<1x8xf32>
    %436 = vector.multi_reduction <add>, %435, %cst_115 [2] : vector<1x8x8xf32> to vector<1x8xf32>
    %437 = vector.shape_cast %436 : vector<1x8xf32> to vector<1x8x1xf32>
    %438 = tpu.reciprocal %437 {approx = true} : vector<1x8x1xf32> -> vector<1x8x1xf32>
    %439 = vector.broadcast %438 : vector<1x8x1xf32> to vector<1x8x8xf32>
    %440 = arith.mulf %435, %439 : vector<1x8x8xf32>
    %441 = arith.truncf %440 : vector<1x8x8xf32> to vector<1x8x8xbf16>
    %442 = arith.truncf %427 : vector<1x8x8xf32> to vector<1x8x8xbf16>
    "tpu.trace_start"() <{level = 10 : i32, message = "nqk,nkd->nqd"}> : () -> ()
    %cst_116 = arith.constant dense<0.000000e+00> : vector<1x8x8xf32>
    %443 = tpu.matmul %441, %442, %cst_116 {dimension_numbers = #tpu.dot_dimension_numbers<[2], [1], [1], [2], [0, 0, 0, 1, 1, 2], [0], [0]>} : vector<1x8x8xbf16>, vector<1x8x8xbf16>, vector<1x8x8xf32> -> vector<1x8x8xf32>
    "tpu.trace_stop"() : () -> ()
    %444 = vector.shape_cast %443 : vector<1x8x8xf32> to vector<8x8xf32>
    %445 = arith.truncf %444 : vector<8x8xf32> to vector<8x8xbf16>
    %c14 = arith.constant 14 : index
    %c0_117 = arith.constant 0 : index
    %c0_118 = arith.constant 0 : index
    %446 = vector.load %arg6[%c14, %c0_117, %c0_118] : memref<16x8x128xbf16, #tpu.memory_space<vmem>>, vector<1x8x128xbf16>
    %447 = vector.shape_cast %446 : vector<1x8x128xbf16> to vector<8x128xbf16>
    %cst_119 = arith.constant dense<0.000000e+00> : vector<8x128xf32>
    %448 = tpu.matmul %445, %447, %cst_119 {dimension_numbers = #tpu.dot_dimension_numbers<[1], [0], [0], [1], [0, 0, 1, 1], [], []>} : vector<8x8xbf16>, vector<8x128xbf16>, vector<8x128xf32> -> vector<8x128xf32>
    %449 = arith.addf %421, %448 : vector<8x128xf32>
    %450 = vector.extract_strided_slice %30 {offsets = [0, 120], sizes = [8, 8], strides = [1, 1]} : vector<8x384xf32> to vector<8x8xf32>
    %451 = vector.shape_cast %450 : vector<8x8xf32> to vector<1x8x8xf32>
    %452 = vector.extract_strided_slice %30 {offsets = [0, 248], sizes = [8, 8], strides = [1, 1]} : vector<8x384xf32> to vector<8x8xf32>
    %453 = vector.shape_cast %452 : vector<8x8xf32> to vector<1x8x8xf32>
    %454 = vector.extract_strided_slice %30 {offsets = [0, 376], sizes = [8, 8], strides = [1, 1]} : vector<8x384xf32> to vector<8x8xf32>
    %455 = vector.shape_cast %454 : vector<8x8xf32> to vector<1x8x8xf32>
    %456 = arith.truncf %451 : vector<1x8x8xf32> to vector<1x8x8xbf16>
    %457 = arith.truncf %453 : vector<1x8x8xf32> to vector<1x8x8xbf16>
    "tpu.trace_start"() <{level = 10 : i32, message = "nqd,nkd->nqk"}> : () -> ()
    %cst_120 = arith.constant dense<0.000000e+00> : vector<1x8x8xf32>
    %458 = tpu.matmul %456, %457, %cst_120 {dimension_numbers = #tpu.dot_dimension_numbers<[2], [2], [1], [1], [0, 0, 0, 1, 1, 1], [0], [0]>} : vector<1x8x8xbf16>, vector<1x8x8xbf16>, vector<1x8x8xf32> -> vector<1x8x8xf32>
    "tpu.trace_stop"() : () -> ()
    %cst_121 = arith.constant dense<0xFF800000> : vector<1x8xf32>
    %459 = vector.multi_reduction <maximumf>, %458, %cst_121 [2] : vector<1x8x8xf32> to vector<1x8xf32>
    %460 = vector.shape_cast %459 : vector<1x8xf32> to vector<1x8x1xf32>
    %461 = vector.broadcast %460 : vector<1x8x1xf32> to vector<1x8x8xf32>
    %462 = arith.subf %458, %461 : vector<1x8x8xf32>
    %463 = math.exp %462 : vector<1x8x8xf32>
    %cst_122 = arith.constant dense<0.000000e+00> : vector<1x8xf32>
    %464 = vector.multi_reduction <add>, %463, %cst_122 [2] : vector<1x8x8xf32> to vector<1x8xf32>
    %465 = vector.shape_cast %464 : vector<1x8xf32> to vector<1x8x1xf32>
    %466 = tpu.reciprocal %465 {approx = true} : vector<1x8x1xf32> -> vector<1x8x1xf32>
    %467 = vector.broadcast %466 : vector<1x8x1xf32> to vector<1x8x8xf32>
    %468 = arith.mulf %463, %467 : vector<1x8x8xf32>
    %469 = arith.truncf %468 : vector<1x8x8xf32> to vector<1x8x8xbf16>
    %470 = arith.truncf %455 : vector<1x8x8xf32> to vector<1x8x8xbf16>
    "tpu.trace_start"() <{level = 10 : i32, message = "nqk,nkd->nqd"}> : () -> ()
    %cst_123 = arith.constant dense<0.000000e+00> : vector<1x8x8xf32>
    %471 = tpu.matmul %469, %470, %cst_123 {dimension_numbers = #tpu.dot_dimension_numbers<[2], [1], [1], [2], [0, 0, 0, 1, 1, 2], [0], [0]>} : vector<1x8x8xbf16>, vector<1x8x8xbf16>, vector<1x8x8xf32> -> vector<1x8x8xf32>
    "tpu.trace_stop"() : () -> ()
    %472 = vector.shape_cast %471 : vector<1x8x8xf32> to vector<8x8xf32>
    %473 = arith.truncf %472 : vector<8x8xf32> to vector<8x8xbf16>
    %c15 = arith.constant 15 : index
    %c0_124 = arith.constant 0 : index
    %c0_125 = arith.constant 0 : index
    %474 = vector.load %arg6[%c15, %c0_124, %c0_125] : memref<16x8x128xbf16, #tpu.memory_space<vmem>>, vector<1x8x128xbf16>
    %475 = vector.shape_cast %474 : vector<1x8x128xbf16> to vector<8x128xbf16>
    %cst_126 = arith.constant dense<0.000000e+00> : vector<8x128xf32>
    %476 = tpu.matmul %473, %475, %cst_126 {dimension_numbers = #tpu.dot_dimension_numbers<[1], [0], [0], [1], [0, 0, 1, 1], [], []>} : vector<8x8xbf16>, vector<8x128xbf16>, vector<8x128xf32> -> vector<8x128xf32>
    %477 = arith.addf %449, %476 : vector<8x128xf32>
    %478 = arith.addf %0, %477 : vector<8x128xf32>
    %c0_127 = arith.constant 0 : index
    %c0_128 = arith.constant 0 : index
    %479 = vector.load %arg7[%c0_127, %c0_128] : memref<1x128xf32, #tpu.memory_space<vmem>>, vector<1x128xf32>
    %480 = vector.broadcast %479 : vector<1x128xf32> to vector<8x128xf32>
    %481 = arith.addf %478, %480 : vector<8x128xf32>
    %c0_129 = arith.constant 0 : index
    %c0_130 = arith.constant 0 : index
    %482 = vector.load %arg8[%c0_129, %c0_130] : memref<1x128xf32, #tpu.memory_space<vmem>>, vector<1x128xf32>
    %c0_131 = arith.constant 0 : index
    %c0_132 = arith.constant 0 : index
    %483 = vector.load %arg9[%c0_131, %c0_132] : memref<1x128xf32, #tpu.memory_space<vmem>>, vector<1x128xf32>
    %cst_133 = arith.constant dense<0.000000e+00> : vector<8xf32>
    %484 = vector.multi_reduction <add>, %481, %cst_133 [1] : vector<8x128xf32> to vector<8xf32>
    %485 = vector.shape_cast %484 : vector<8xf32> to vector<8x1xf32>
    %cst_134 = arith.constant 1.280000e+02 : f32
    %486 = vector.broadcast %cst_134 : f32 to vector<8x1xf32>
    %487 = arith.divf %485, %486 : vector<8x1xf32>
    %488 = vector.broadcast %487 : vector<8x1xf32> to vector<8x128xf32>
    %489 = arith.subf %481, %488 : vector<8x128xf32>
    %490 = arith.mulf %489, %489 : vector<8x128xf32>
    %cst_135 = arith.constant dense<0.000000e+00> : vector<8xf32>
    %491 = vector.multi_reduction <add>, %490, %cst_135 [1] : vector<8x128xf32> to vector<8xf32>
    %492 = vector.shape_cast %491 : vector<8xf32> to vector<8x1xf32>
    %cst_136 = arith.constant 1.280000e+02 : f32
    %493 = vector.broadcast %cst_136 : f32 to vector<8x1xf32>
    %494 = arith.divf %492, %493 : vector<8x1xf32>
    %495 = vector.broadcast %487 : vector<8x1xf32> to vector<8x128xf32>
    %496 = arith.subf %481, %495 : vector<8x128xf32>
    %cst_137 = arith.constant 9.99999974E-6 : f32
    %497 = vector.broadcast %cst_137 : f32 to vector<8x1xf32>
    %498 = arith.addf %494, %497 : vector<8x1xf32>
    %499 = math.rsqrt %498 : vector<8x1xf32>
    %500 = vector.broadcast %499 : vector<8x1xf32> to vector<8x128xf32>
    %501 = arith.mulf %496, %500 : vector<8x128xf32>
    %502 = vector.broadcast %482 : vector<1x128xf32> to vector<8x128xf32>
    %503 = arith.mulf %501, %502 : vector<8x128xf32>
    %504 = vector.broadcast %483 : vector<1x128xf32> to vector<8x128xf32>
    %505 = arith.addf %503, %504 : vector<8x128xf32>
    %506 = arith.truncf %505 : vector<8x128xf32> to vector<8x128xbf16>
    %c0_138 = arith.constant 0 : index
    %c0_139 = arith.constant 0 : index
    %507 = vector.load %arg10[%c0_138, %c0_139] : memref<128x512xbf16, #tpu.memory_space<vmem>>, vector<128x512xbf16>
    %cst_140 = arith.constant dense<0.000000e+00> : vector<8x512xf32>
    %508 = tpu.matmul %506, %507, %cst_140 {dimension_numbers = #tpu.dot_dimension_numbers<[1], [0], [0], [1], [0, 0, 1, 1], [], []>} : vector<8x128xbf16>, vector<128x512xbf16>, vector<8x512xf32> -> vector<8x512xf32>
    %c0_141 = arith.constant 0 : index
    %c0_142 = arith.constant 0 : index
    %509 = vector.load %arg11[%c0_141, %c0_142] : memref<1x512xf32, #tpu.memory_space<vmem>>, vector<1x512xf32>
    %510 = vector.broadcast %509 : vector<1x512xf32> to vector<8x512xf32>
    %511 = arith.addf %508, %510 : vector<8x512xf32>
    %cst_143 = arith.constant 5.000000e-01 : f32
    %512 = vector.broadcast %cst_143 : f32 to vector<8x512xf32>
    %513 = arith.mulf %512, %511 : vector<8x512xf32>
    %cst_144 = arith.constant 1.41421354 : f32
    %514 = vector.broadcast %cst_144 : f32 to vector<8x512xf32>
    %515 = arith.divf %511, %514 : vector<8x512xf32>
    %516 = math.erf %515 : vector<8x512xf32>
    %cst_145 = arith.constant 1.000000e+00 : f32
    %517 = vector.broadcast %cst_145 : f32 to vector<8x512xf32>
    %518 = arith.addf %517, %516 : vector<8x512xf32>
    %519 = arith.mulf %513, %518 : vector<8x512xf32>
    %520 = arith.truncf %519 : vector<8x512xf32> to vector<8x512xbf16>
    %c0_146 = arith.constant 0 : index
    %c0_147 = arith.constant 0 : index
    %521 = vector.load %arg12[%c0_146, %c0_147] : memref<512x128xbf16, #tpu.memory_space<vmem>>, vector<512x128xbf16>
    %cst_148 = arith.constant dense<0.000000e+00> : vector<8x128xf32>
    %522 = tpu.matmul %520, %521, %cst_148 {dimension_numbers = #tpu.dot_dimension_numbers<[1], [0], [0], [1], [0, 0, 1, 1], [], []>} : vector<8x512xbf16>, vector<512x128xbf16>, vector<8x128xf32> -> vector<8x128xf32>
    %c0_149 = arith.constant 0 : index
    %c0_150 = arith.constant 0 : index
    %523 = vector.load %arg13[%c0_149, %c0_150] : memref<1x128xf32, #tpu.memory_space<vmem>>, vector<1x128xf32>
    %524 = vector.broadcast %523 : vector<1x128xf32> to vector<8x128xf32>
    %525 = arith.addf %522, %524 : vector<8x128xf32>
    %526 = arith.addf %481, %525 : vector<8x128xf32>
    %c0_151 = arith.constant 0 : index
    %c0_152 = arith.constant 0 : index
    %527 = vector.load %arg14[%c0_151, %c0_152] : memref<8x128xf32, #tpu.memory_space<vmem>>, vector<8x128xf32>
    tpu.vector_store %arg14[%c0_151, %c0_152], %526 {strides = array<i32>} : memref<8x128xf32, #tpu.memory_space<vmem>>, vector<8x128xf32>,
    return
  }
  func.func @transform_0(%arg0: i32) -> (i32, i32) {
    %c0_i32 = arith.constant 0 : i32
    %c0_i32_0 = arith.constant 0 : i32
    return %arg0, %c0_i32 : i32, i32
  }
  func.func @transform_1(%arg0: i32) -> (i32, i32) {
    %c0_i32 = arith.constant 0 : i32
    %c0_i32_0 = arith.constant 0 : i32
    %c0_i32_1 = arith.constant 0 : i32
    return %c0_i32, %c0_i32_0 : i32, i32
  }
  func.func @transform_2(%arg0: i32) -> (i32, i32) {
    %c0_i32 = arith.constant 0 : i32
    %c0_i32_0 = arith.constant 0 : i32
    %c0_i32_1 = arith.constant 0 : i32
    return %c0_i32, %c0_i32_0 : i32, i32
  }
  func.func @transform_3(%arg0: i32) -> (i32, i32) {
    %c0_i32 = arith.constant 0 : i32
    %c0_i32_0 = arith.constant 0 : i32
    %c0_i32_1 = arith.constant 0 : i32
    return %c0_i32, %c0_i32_0 : i32, i32
  }
  func.func @transform_4(%arg0: i32) -> (i32, i32) {
    %c0_i32 = arith.constant 0 : i32
    %c0_i32_0 = arith.constant 0 : i32
    %c0_i32_1 = arith.constant 0 : i32
    return %c0_i32, %c0_i32_0 : i32, i32
  }
  func.func @transform_5(%arg0: i32) -> (i32, i32, i32) {
    %c0_i32 = arith.constant 0 : i32
    %c0_i32_0 = arith.constant 0 : i32
    %c0_i32_1 = arith.constant 0 : i32
    %c0_i32_2 = arith.constant 0 : i32
    return %c0_i32, %c0_i32_0, %c0_i32_1 : i32, i32, i32
  }
  func.func @transform_6(%arg0: i32) -> (i32, i32) {
    %c0_i32 = arith.constant 0 : i32
    %c0_i32_0 = arith.constant 0 : i32
    %c0_i32_1 = arith.constant 0 : i32
    return %c0_i32, %c0_i32_0 : i32, i32
  }
  func.func @transform_7(%arg0: i32) -> (i32, i32) {
    %c0_i32 = arith.constant 0 : i32
    %c0_i32_0 = arith.constant 0 : i32
    %c0_i32_1 = arith.constant 0 : i32
    return %c0_i32, %c0_i32_0 : i32, i32
  }
  func.func @transform_8(%arg0: i32) -> (i32, i32) {
    %c0_i32 = arith.constant 0 : i32
    %c0_i32_0 = arith.constant 0 : i32
    %c0_i32_1 = arith.constant 0 : i32
    return %c0_i32, %c0_i32_0 : i32, i32
  }
  func.func @transform_9(%arg0: i32) -> (i32, i32) {
    %c0_i32 = arith.constant 0 : i32
    %c0_i32_0 = arith.constant 0 : i32
    %c0_i32_1 = arith.constant 0 : i32
    return %c0_i32, %c0_i32_0 : i32, i32
  }
  func.func @transform_10(%arg0: i32) -> (i32, i32) {
    %c0_i32 = arith.constant 0 : i32
    %c0_i32_0 = arith.constant 0 : i32
    %c0_i32_1 = arith.constant 0 : i32
    return %c0_i32, %c0_i32_0 : i32, i32
  }
  func.func @transform_11(%arg0: i32) -> (i32, i32) {
    %c0_i32 = arith.constant 0 : i32
    %c0_i32_0 = arith.constant 0 : i32
    %c0_i32_1 = arith.constant 0 : i32
    return %c0_i32, %c0_i32_0 : i32, i32
  }
  func.func @transform_12(%arg0: i32) -> (i32, i32) {
    %c0_i32 = arith.constant 0 : i32
    %c0_i32_0 = arith.constant 0 : i32
    %c0_i32_1 = arith.constant 0 : i32
    return %c0_i32, %c0_i32_0 : i32, i32
  }
  func.func @transform_13(%arg0: i32) -> (i32, i32) {
    %c0_i32 = arith.constant 0 : i32
    %c0_i32_0 = arith.constant 0 : i32
    return %arg0, %c0_i32 : i32, i32
  }
}

</mosaic_0001>

<bundles_post_ra>
// kernel: tpu_custom_call.1
= control target key start
LH: loop header
LB: loop body
LE: loop exit
PB: predicated region body
PF: predicated region fallthrough
CT: control target
= control target key end

     0   :  { %s4567_s0 = inlined_call_operand.hbm [shape: f32[16,128], index: 0, kind: input, shape index: {}, may-alias: {0,13}]   ;;  %s4568_s1 = inlined_call_operand.vmem [shape: f32[1,128], index: 1, kind: input, shape index: {}]   ;;  %s4569_s2 = inlined_call_operand.vmem [shape: f32[1,128], index: 2, kind: input, shape index: {}]   ;;  %s4570_s3 = inlined_call_operand.hbm [shape: bf16[128,384], index: 3, kind: input, shape index: {}]   ;;  %s4571_s4 = inlined_call_operand.vmem [shape: f32[1,384], index: 4, kind: input, shape index: {}]   ;;  %s4572_s5 = inlined_call_operand.hbm [shape: bf16[16,8,128], index: 5, kind: input, shape index: {}]   ;;  %s4573_s6 = inlined_call_operand.vmem [shape: f32[1,128], index: 6, kind: input, shape index: {}]   ;;  %s4574_s7 = inlined_call_operand.vmem [shape: f32[1,128], index: 7, kind: input, shape index: {}]   ;;  %s4575_s8 = inlined_call_operand.vmem [shape: f32[1,128], index: 8, kind: input, shape index: {}]   ;;  %s4576_s9 = inlined_call_operand.hbm [shape: bf16[128,512], index: 9, kind: input, shape index: {}]   ;;  %s4577_s10 = inlined_call_operand.vmem [shape: f32[1,512], index: 10, kind: input, shape index: {}]   ;;  %s4578_s11 = inlined_call_operand.hbm [shape: bf16[512,128], index: 11, kind: input, shape index: {}]   ;;  %s4579_s12 = inlined_call_operand.vmem [shape: f32[1,128], index: 12, kind: input, shape index: {}]   ;;  %s4580_s13 = inlined_call_operand.hbm [shape: f32[16,128], index: 13, kind: output, shape index: {}, may-alias: {0,13}]  }
   0x1   :  { %4585 = sst [smem:[#allocation19_spill]] %s4570_s3 }
   0x2   :  { %4586 = sst [smem:[#allocation20_spill]] %s4572_s5 }
   0x3   :  { %4587 = sst [smem:[#allocation21_spill]] %s4576_s9 }
   0x4   :  { %4588 = sst [smem:[#allocation22_spill]] %s4578_s11 }
   0x5   :  { %4589 = sst [smem:[#allocation23_spill]] %s4580_s13 }
   0x6   :  { %18 = vsyncpa [#allocation3], 0 }
   0x7   :  { %20 = vsyncpa [#allocation3 + $0x1], 0 }
   0x8   :  { %21 = vsyncpa [#allocation6], 0 }
   0x9   :  { %22 = vsyncpa [#allocation9], 0 }
   0xa   :  { %23 = vsyncpa [#allocation4], 0 }
   0xb   :  { %25 = vsyncpa [#allocation4 + $0x1], 0  ;;  %s3988_s25 = smov 0   ;;  %s3990_s26 = smov 0  }
   0xc   :  { %s3992_s27 = smov 0   ;;  %s3994_s28 = smov 0  }
   0xd LB: > { %4590 = sst [smem:[#allocation16_spill]] %s3885_s27  ;;  %s4012_s15 = sadd.s32 4294967295, %s3889_s28   ;;  %s3889_s28 = sphi %s3994_s28, %s4606_s28   ;;  %s3885_s27 = sphi %s3992_s27, %s4608_s27   ;;  %s3881_s26 = sphi %s3990_s26, %s4610_s26   ;;  %s3877_s25 = sphi %s3988_s25, %s4609_s25  }
   0xe   : > { %s4591_s3 = sld [smem:[#allocation19_spill]]  ;;  %p2957_p0 = scmp.ge.s32.totalorder %s3889_s28, 1 }
   0xf   : > { %p52_p1 = scmp.eq.s32.totalorder %s4012_s15, 0  ;;  %p340_p2 = scmp.lt.s32.totalorder %s3889_s28, 3 }
  0x10   : > { %s3891_s17 = smov [#allocation5]   ;;  %s4593_s9 = sld [smem:[#allocation21_spill]] }
  0x11   : > { %p4017_p3 = pnand %p2957_p0, %p340_p2  ;;  %s359_s18 = sshll.u32 %s3891_s17, 4  ;;  %s360_s18 = int_to_ptr.vmem [resolvable:$true] %s359_s18 }
  0x12   : > { %s3892_s23 = smov [#allocation8]   ;;  %s3893_s29 = smov 192  }
  0x13   : > { %p3488_p4 = pneg %p4017_p3  ;;  %s399_s24 = sshll.u32 %s3892_s23, 4  ;;  %s400_s24 = int_to_ptr.vmem [resolvable:$true] %s399_s24 }
  0x14   : > { %s357_s14 = sshll.u32 %s4591_s3, 4  ;;  %s3894_s30 = smov 12   ;;  %s358_s14 = int_to_ptr.hbm [resolvable:$true] %s357_s14 }
  0x15   : > { %p4029_p6 = pnand %p3488_p4, %p52_p1  ;;  %s3895_s17 = smov 256  }
  0x16   : > { %s397_s21 = sshll.u32 %s4593_s9, 4  ;;  %s3896_s19 = smov 16   ;;  %s398_s21 = int_to_ptr.hbm [resolvable:$true] %s397_s21 }
  0x17   : > { %3491 = dma.hbm_to_vmem [thread:$0]  (!%p4029_p6), %s358_s14, 3072, %s360_s18, [#allocation6], %s3893_s29, %s3893_s29, %s3894_s30  }
  0x18   : > { %3497 = dma.hbm_to_vmem [thread:$0]  (!%p4029_p6), %s398_s21, 4096, %s400_s24, [#allocation9], %s3895_s17, %s3895_s17, %s3896_s19  }
  0x19   : > { %s4595_s5 = sld [smem:[#allocation20_spill]]  ;;  %s3897_s23 = smov [#allocation7]  }
  0x1a   : > { %s376_s13 = sshll.u32 %s3897_s23, 4  ;;  %s4596_s11 = sld [smem:[#allocation22_spill]]  ;;  %s377_s13 = int_to_ptr.vmem [resolvable:$true] %s376_s13 }
  0x1b   : > { %s3898_s21 = smov 64   ;;  %s3899_s3 = smov 4  }
  0x1c   : > { %s3900_s24 = smov [#allocation10]   ;;  %s2956_s17 = sadd.s32 4294967294, %s3889_s28  }
  0x1d   : > { %s416_s30 = sshll.u32 %s3900_s24, 4  ;;  %s4049_s19 = sadd.s32 1, %s3889_s28   ;;  %s417_s30 = int_to_ptr.vmem [resolvable:$true] %s416_s30 }
  0x1e   : > { %4597 = sst [smem:[#allocation17_spill]] %s4049_s19  ;;  %s35_s20 = ssub.s32 %s3889_s28, %s4049_s19 }
  0x1f   : > { %s374_s9 = sshll.u32 %s4595_s5, 4  ;;  %s38_s23 = sadd.s32 1, %s3885_s27  ;;  %s375_s9 = int_to_ptr.hbm [resolvable:$true] %s374_s9 }
  0x20   : > { %s414_s29 = sshll.u32 %s4596_s11, 4  ;;  %p36_p7 = scmp.eq.s32.totalorder %s35_s20, 0  ;;  %s415_s29 = int_to_ptr.hbm [resolvable:$true] %s414_s29 }
  0x21   : > { %3494 = dma.hbm_to_vmem [thread:$0]  (!%p4029_p6), %s375_s9, 1024, %s377_s13, [#allocation6], %s3898_s21, %s3898_s21, %s3899_s3  }
  0x22   : > { %3500 = dma.hbm_to_vmem [thread:$0]  (!%p4029_p6), %s415_s29, 4096, %s417_s30, [#allocation9], %s3898_s21, %s3898_s21, %s3899_s3  }
  0x23   : > { %p45_p8 = scmp.ne.s32.totalorder %s3885_s27, %s3881_s26  ;;  %p46_p9 = scmp.eq.s32.totalorder %s3889_s28, 0 }
  0x24   : > { %p51_p10 = scmp.ne.s32.totalorder %s3881_s26, %s3877_s25  ;;  %p327_p13 = scmp.eq.s32.totalorder %s4012_s15, 1 }
  0x25   : > { %s4060_s9 = scalar_select %p36_p7, %s3885_s27, %s38_s23  }
  0x26   : > { %p4062_p11 = por %p46_p9, %p45_p8  ;;  %p4068_p12 = por %p52_p1, %p51_p10 }
  0x27   : > { %4598 = sst [smem:[#allocation18_spill]] %s4060_s9  ;;  %p333_p0 = scmp.eq.s32.totalorder %s2956_s17, 1 }
  0x28   : > { %p3513_p2 = scmp.lt.s32.totalorder %s3889_s28, 2  ;;  %s433_s14 = sand.u32 1, %s3885_s27  }
  0x29   : > { %p4075_p4 = por %p327_p13, %p45_p8  ;;  %p4079_p6 = por %p333_p0, %p51_p10 }
  0x2a   : > { %s2963_s21 = sshll.u32 %s433_s14, 3  ;;  %s2964_s3 = sshll.u32 %s3889_s28, 3 }
  0x2b   : > { %s441_s20 = scalar_lea.hbm %s4567_s0, %s2964_s3  ;;  %s437_s23 = scalar_lea.vmem [#allocation2], %s2963_s21 }
  0x2c   : > { %s445_s5 = sshll.u32 %s437_s23, 4  ;;  %s443_s11 = sshll.u32 %s441_s20, 4  ;;  %s446_s5 = int_to_ptr.vmem [resolvable:$true] %s445_s5  ;;  %s444_s11 = int_to_ptr.hbm [resolvable:$true] %s443_s11 }
  0x2d   : > { %p4089_p7 = pnand %p3513_p2, %p4062_p11  ;;  %s434_s9 = scalar_lea.sflag [#allocation3], %s433_s14 }
  0x2e   : > { %s3785_s27 = sshra.s32 %s444_s11, 4  ;;  %s3792_s24 = scalar_lea.hbm %s4567_s0, 16  ;;  %s3786_s27 = int_to_ptr.hbm [resolvable:$true] %s3785_s27 }
  0x2f   : > { %s3787_s19 = scalar_lea.hbm %s3786_s27, 8  ;;  %p3789_p9 = pneg %p4089_p7 }
  0x30   : > { %p3788_p8 = scmp.ne.s32.totalorder %s3786_s27, %s3787_s19  ;;  %p3793_p11 = scmp.lt.s32.totalorder %s3786_s27, %s4567_s0 }
  0x31   : > { %p3794_p0 = scmp.lt.s32.totalorder %s3792_s24, %s3787_s19 }
  0x32   : > { %p3790_p10 = pnand %p3789_p9, %p3788_p8 }
  0x33   : > { %p3795_p2 = por %p3794_p0, %p3793_p11 }
  0x34   : > { %p3791_p13 = pneg %p3790_p10 }
  0x36   : > { %p3796_p5 = pnand %p3795_p2, %p3791_p13 }
  0x38   : > { %3799 = shalt.err (!%p3796_p5)
}
  0x39   : > { %3504 = dma.hbm_to_vmem [thread:$0]  (!%p4089_p7), %s444_s11, 128, %s446_s5, %s434_s9  }
  0x3a   : > { %454 = sbr.rel (%p4017_p3) target bundleno = 5502 (0x157e), region = 72  ;;  %s4106_s14 = sand.u32 (!%p4017_p3), 1, %s3881_s26  }
  0x3b   : > { %s2966_s20 = sshll.u32 (!%p4017_p3), %s4106_s14, 3  ;;  %s457_s23 = scalar_lea.sflag (!%p4017_p3), [#allocation3], %s4106_s14 }
  0x3c   : > { %s4112_s27 = scalar_lea.vmem (!%p4017_p3), [#allocation2], %s2966_s20 }
  0x3f   : > { %3860 = dma.done.wait (%p4068_p12), %s457_s23, 128  }
  0x40   : > { %3862 = vsyncadd (%p4068_p12), %s457_s23, 4294967168 }
  0x41   : > { %3864 = dma.done.wait (%p52_p1), [#allocation6], 4096  }
  0x42   : > { %3866 = vsyncadd (%p52_p1), [#allocation6], 4294963200 }
  0x43   : > { %3868 = dma.done.wait (%p52_p1), [#allocation9], 8192  }
  0x44   : > { %3870 = vsyncadd (%p52_p1), [#allocation9], 4294959104  ;;  %v525_v0 = vld [vmem:[%s4112_s27] sm:$0xff]  ;;  %v3901_v1 = vmov 128.0   ;;  %v3058_v2 = vld [vmem:[#allocation5 + $0xa8] sm:$0xf] }
  0x45   : > { %528 = vadd.xlane.f32.xlu0 %v525_v0  ;;  %3584 = vrcp.f32 %v3901_v1  ;;  %v3402_v3 = vld [vmem:[#allocation5 + $0xb0] sm:$0xf0]  ;;  %v3401_v4 = vld [vmem:[#allocation5 + $0xac] sm:$0xf]  ;;  %v3060_v6 = vld [vmem:[#allocation5 + $0xb4] sm:$0xf0] }
  0x46   : > { %v3059_v5 = vor.u32 %v3402_v3, %v3058_v2  ;;  %v3066_v7 = vld [vmem:[#allocation5 + $0xb0] sm:$0xf]  ;;  %v3403_v8 = vld [vmem:[#allocation5 + $0xb8] sm:$0xf0]  ;;  %v3063_v9 = vor.u32 %v3401_v4, %v3060_v6  ;;  %v3398_v23 = vld [vmem:[#allocation5 + $0x94] sm:$0xf] }
  0x47   : > { %v3067_v10 = vor.u32 %v3403_v8, %v3066_v7  ;;  %v3046_v21 = vld [vmem:[#allocation5 + $0x90] sm:$0xf]  ;;  %v3399_v22 = vld [vmem:[#allocation5 + $0x98] sm:$0xf0]  ;;  %v3048_v25 = vld [vmem:[#allocation5 + $0x9c] sm:$0xf0] }
  0x48   : > { %732 = vmatpush.bf16.msra.mxu0 %v3059_v5  ;;  %745 = vmatpush.bf16.msra.mxu1 %v3063_v9  ;;  %v3047_v24 = vor.u32 %v3399_v22, %v3046_v21  ;;  %v3054_v26 = vld [vmem:[#allocation5 + $0x98] sm:$0xf]  ;;  %v3400_v27 = vld [vmem:[#allocation5 + $0xa0] sm:$0xf0]  ;;  %v3051_v28 = vor.u32 %v3398_v23, %v3048_v25  ;;  %v3395_v32 = vld [vmem:[#allocation5 + $0x7c] sm:$0xf] }
  0x49   : > { %758 = vmatpush.bf16.msra.mxu2 %v3067_v10  ;;  %v3055_v29 = vor.u32 %v3400_v27, %v3054_v26  ;;  %v3034_v30 = vld [vmem:[#allocation5 + $0x78] sm:$0xf]  ;;  %v3396_v31 = vld [vmem:[#allocation5 + $0x80] sm:$0xf0]  ;;  %v3036_v34 = vld [vmem:[#allocation5 + $0x84] sm:$0xf0] }
  0x4a   : > { %v3035_v33 = vor.u32 %v3396_v31, %v3034_v30  ;;  %v3042_v35 = vld [vmem:[#allocation5 + $0x80] sm:$0xf]  ;;  %v3397_v36 = vld [vmem:[#allocation5 + $0x88] sm:$0xf0]  ;;  %v3039_v37 = vor.u32 %v3395_v32, %v3036_v34  ;;  %v3392_v41 = vld [vmem:[#allocation5 + $0x64] sm:$0xf] }
  0x4b   : > { %v3585_v11 = vpop.eup %3584  ;;  %v3043_v38 = vor.u32 %v3397_v36, %v3042_v35  ;;  %v3022_v39 = vld [vmem:[#allocation5 + $0x60] sm:$0xf]  ;;  %v3393_v40 = vld [vmem:[#allocation5 + $0x68] sm:$0xf0]  ;;  %v3024_v43 = vld [vmem:[#allocation5 + $0x6c] sm:$0xf0] }
  0x4c   : > { %v531_v12 = vmul.f32 128.0, %v3585_v11  ;;  %vm535_vm0 = vweird.f32 %v3585_v11  ;;  %733 = vmatpush.bf16.msra.mxu0 %v3047_v24  ;;  %746 = vmatpush.bf16.msra.mxu1 %v3051_v28  ;;  %v3023_v42 = vor.u32 %v3393_v40, %v3022_v39  ;;  %v3030_v44 = vld [vmem:[#allocation5 + $0x68] sm:$0xf]  ;;  %v3394_v45 = vld [vmem:[#allocation5 + $0x70] sm:$0xf0]  ;;  %v3027_v46 = vor.u32 %v3392_v41, %v3024_v43  ;;  %s3902_s17 = smov 104  }
  0x4d   : > { %759 = vmatpush.bf16.msra.mxu2 %v3055_v29  ;;  %v3031_v47 = vor.u32 %v3394_v45, %v3030_v44  ;;  %v3010_v48 = vld [vmem:[#allocation5 + $0x48] sm:$0xf]  ;;  %v3390_v49 = vld [vmem:[#allocation5 + $0x50] sm:$0xf0]  ;;  %v3389_v50 = vld [vmem:[#allocation5 + $0x4c] sm:$0xf] }
  0x4e   : > { %v532_v13 = vsub.f32 1.0, %v531_v12  ;;  %v3011_v51 = vor.u32 %v3390_v49, %v3010_v48  ;;  %v3012_v52 = vld [vmem:[#allocation5 + $0x54] sm:$0xf0]  ;;  %v3018_v53 = vld [vmem:[#allocation5 + $0x50] sm:$0xf]  ;;  %vm773_vm4 = vcmask 64512  }
  0x4f   : > { %v3391_v54 = vld [vmem:[#allocation5 + $0x58] sm:$0xf0]  ;;  %v3015_v55 = vor.u32 %v3389_v50, %v3012_v52  ;;  %v2998_v57 = vld [vmem:[#allocation5 + $0x30] sm:$0xf]  ;;  %v3386_v59 = vld [vmem:[#allocation5 + $0x34] sm:$0xf] }
  0x50   : > { %v533_v14 = vmul.f32 %v3585_v11, %v532_v13  ;;  %734 = vmatpush.bf16.msra.mxu0 %v3035_v33  ;;  %747 = vmatpush.bf16.msra.mxu1 %v3039_v37  ;;  %v3019_v56 = vor.u32 %v3391_v54, %v3018_v53  ;;  %v3387_v58 = vld [vmem:[#allocation5 + $0x38] sm:$0xf0]  ;;  %v3000_v61 = vld [vmem:[#allocation5 + $0x3c] sm:$0xf0]  ;;  %v3006_v62 = vld [vmem:[#allocation5 + $0x38] sm:$0xf] }
  0x51   : > { %760 = vmatpush.bf16.msra.mxu2 %v3043_v38  ;;  %v2999_v60 = vor.u32 %v3387_v58, %v2998_v57  ;;  %v3388_v63 = vld [vmem:[#allocation5 + $0x40] sm:$0xf0]  ;;  %v2986_v2 = vld [vmem:[#allocation5 + $0x18] sm:$0xf]  ;;  %v3383_v4 = vld [vmem:[#allocation5 + $0x1c] sm:$0xf] }
  0x52   : > { %v534_v15 = vadd.f32 %v3585_v11, %v533_v14  ;;  %v3007_v1 = vor.u32 %v3388_v63, %v3006_v62  ;;  %v3384_v3 = vld [vmem:[#allocation5 + $0x20] sm:$0xf0]  ;;  %v2988_v6 = vld [vmem:[#allocation5 + $0x24] sm:$0xf0]  ;;  %v2994_v7 = vld [vmem:[#allocation5 + $0x20] sm:$0xf] }
  0x53   : > { %v2987_v5 = vor.u32 %v3384_v3, %v2986_v2  ;;  %v3385_v8 = vld [vmem:[#allocation5 + $0x28] sm:$0xf0]  ;;  %v2991_v9 = vor.u32 %v3383_v4, %v2988_v6  ;;  %v3380_v13 = vld [vmem:[#allocation5 + $0x4] sm:$0xf]  ;;  %v3578_v31 = vld [vmem:[%s4568_s1] ss:$0 sm:$0xff] }
  0x54   : > { %v4127_v16 = vsel %vm535_vm0, %v3585_v11, %v534_v15  ;;  %735 = vmatpush.bf16.msra.mxu0 %v3023_v42  ;;  %748 = vmatpush.bf16.msra.mxu1 %v3027_v46  ;;  %v2995_v10 = vor.u32 %v3385_v8, %v2994_v7  ;;  %v2974_v11 = vld [vmem:[#allocation5] sm:$0xf]  ;;  %v3381_v12 = vld [vmem:[#allocation5 + $0x8] sm:$0xf0]  ;;  %v2976_v15 = vld [vmem:[#allocation5 + $0xc] sm:$0xf0] }
  0x55   : > { %761 = vmatpush.bf16.msra.mxu2 %v3031_v47  ;;  %v2975_v14 = vor.u32 %v3381_v12, %v2974_v11  ;;  %v3579_v34 = vld [vmem:[%s4569_s2] ss:$0 sm:$0xff]  ;;  %s3903_s21 = smov 120   ;;  %vm809_vm5 = vcmask 1043456   ;;  %s3904_s3 = smov 112  }
  0x56   : > { %v596_v38 = vld [vmem:[%s4571_s4] sm:$0x7]  ;;  %s3905_s24 = smov 96   ;;  %s3906_s30 = smov 88  }
  0x57   : > { %v599_v39 = vperm.slane %v596_v38, 1  ;;  %v598_v40 = vperm.slane %v596_v38, 0  ;;  %v600_v45 = vperm.slane %v596_v38, 2  ;;  %s3907_s13 = smov 72   ;;  %s3908_s23 = smov 80  }
  0x58   : > { %736 = vmatpush.bf16.msra.mxu0 %v3011_v51  ;;  %749 = vmatpush.bf16.msra.mxu1 %v3015_v55  ;;  %s3909_s5 = smov 56   ;;  %s3910_s11 = smov 64  }
  0x59   : > { %762 = vmatpush.bf16.msra.mxu2 %v3019_v56  ;;  %s3911_s16 = smov 48   ;;  %s3912_s19 = smov 40  }
  0x5a   : > { %s3913_s9 = smov 24   ;;  %s3914_s22 = smov 32  }
  0x5c   : > { %737 = vmatpush.bf16.msra.mxu0 %v2999_v60 }
  0x5d   : > { %763 = vmatpush.bf16.msra.mxu2 %v3007_v1 }
  0x60   : > { %738 = vmatpush.bf16.msra.mxu0 %v2987_v5 }
  0x61   : > { %764 = vmatpush.bf16.msra.mxu2 %v2995_v10 }
  0x64   : > { %739 = vmatpush.bf16.msra.mxu0 %v2975_v14 }
  0xb8   : > { %v529_v17 = vpop.xlane.xlu0 %528 }
  0xb9   : > { %v537_v18 = vmul.f32 %v4127_v16, %v529_v17  ;;  %v2982_v17 = vld [vmem:[#allocation5 + $0x8] sm:$0xf] }
  0xbb   : > { %v4130_v19 = vsub.f32 %v525_v0, %v537_v18  ;;  %v3003_v0 = vor.u32 %v3386_v59, %v3000_v61  ;;  %v3382_v18 = vld [vmem:[#allocation5 + $0x10] sm:$0xf0]  ;;  %v827_v59 = vld [vmem:[#allocation7] sm:$0xf] }
  0xbc   : > { %v2983_v21 = vor.u32 %v3382_v18, %v2982_v17  ;;  %v919_v60 = vsel %vm809_vm5, %v827_v59, 0 }
  0xbd   : > { %v539_v20 = vmul.f32 %v4130_v19, %v4130_v19  ;;  %750 = vmatpush.bf16.msra.mxu1 %v3003_v0 }
  0xbe   : > { %765 = vmatpush.bf16.msra.mxu2 %v2983_v21 }
  0xbf   : > { %540 = vadd.xlane.f32.xlu0 %v539_v20  ;;  %v2979_v20 = vor.u32 %v3380_v13, %v2976_v15 }
  0xc1   : > { %751 = vmatpush.bf16.msra.mxu1 %v2991_v9 }
  0xc2   : > { %928 = vmatpush.bf16.msrb.mxu2 %v919_v60 }
  0xc5   : > { %752 = vmatpush.bf16.msra.mxu1 %v2979_v20 }
 0x132   : > { %v541_v22 = vpop.xlane.xlu0 %540 }
 0x133   : > { %v542_v23 = vmul.f32 %v541_v22, %v4127_v16 }
 0x135   : > { %v543_v24 = vadd.f32 1e-05, %v542_v23 }
 0x137   : > { %3586 = vrsqrt.f32 %v543_v24  ;;  %vm550_vm2 = vweird.f32 %v543_v24 }
 0x13d   : > { %v3587_v25 = vpop.eup %3586 }
 0x13e   : > { %v545_v26 = vmul.f32 %v3587_v25, %v543_v24  ;;  %vm551_vm1 = vweird.f32 %v3587_v25 }
 0x13f   : > { %vm552_vm3 = vmor %vm550_vm2, %vm551_vm1 }
 0x140   : > { %v546_v27 = vmul.f32 %v3587_v25, %v545_v26 }
 0x142   : > { %v547_v28 = vmul.f32 0.5, %v546_v27 }
 0x144   : > { %v548_v29 = vsub.f32 1.5, %v547_v28 }
 0x146   : > { %v549_v30 = vmul.f32 %v3587_v25, %v548_v29 }
 0x148   : > { %v553_v32 = vsel %vm552_vm3, %v3587_v25, %v549_v30 }
 0x149   : > { %v554_v33 = vmul.f32 %v553_v32, %v4130_v19 }
 0x14b   : > { %v558_v35 = vmul.f32 %v3578_v31, %v554_v33 }
 0x14d   : > { %v562_v36 = vadd.f32 %v3579_v34, %v558_v35 }
 0x14f   : > { %v563_v37 = vpack.c.bf16 %v562_v36, %v562_v36 }
 0x151   : > { %740 = vmatmul.bf16.vlgmr.msra.gmra.mxu0 %v563_v37  ;;  %753 = vmatmul.bf16.vlgmr.msra.gmra.mxu1 %v563_v37 }
 0x152   : > { %766 = vmatmul.bf16.vlgmr.msra.gmra.mxu2 %v563_v37 }
 0x1ce   : > { %v741_v41 = vpop.f32.mrf.mxu0  ;;  %v754_v42 = vpop.f32.mrf.mxu1 }
 0x1cf   : > { %v755_v43 = vadd.f32 %v754_v42, %v599_v39  ;;  %v742_v19 = vadd.f32 %v741_v41, %v598_v40 }
 0x1d1   : > { %v772_v44 = vpack.c.bf16 %v755_v43, %v755_v43  ;;  %v771_v48 = vpack.c.bf16 %v742_v19, %v742_v19 }
 0x1d3   : > { %v834_v46 = vunpack.c.l.b16 %v772_v44  ;;  %v778_v47 = vsel %vm773_vm4, %v772_v44, 0  ;;  %v829_v55 = vunpack.c.l.b16 %v771_v48 }
 0x1d4   : > { %787 = vmatpush.bf16.xpose.msra.mxu3 %v778_v47 }
 0x1d5   : > { %v4146_v49 = vpack.c.b16 %v834_v46, %v834_v46  ;;  %v767_v50 = vpop.f32.mrf.mxu2  ;;  %v4157_v57 = vpack.c.b16 %v829_v55, %v829_v55 }
 0x1d6   : > { %v768_v51 = vadd.f32 %v767_v50, %v600_v45  ;;  %v743_v52 = vpop.f32.mrf.mxu0  ;;  %v756_v53 = vpop.f32.mrf.mxu1 }
 0x1d7   : > { %1015 = vrot.lane.b32.xlu0 %v4146_v49, %s3902_s17  ;;  %836 = vrot.lane.b32.xlu2 %v4146_v49, %s3903_s21 }
 0x1d8   : > { %v4152_v54 = vpack.c.bf16 %v768_v51, %v768_v51 }
 0x1da   : > { %v811_v56 = vsel %vm809_vm5, %v4152_v54, 0  ;;  %v870_v19 = vunpack.c.l.b16 %v4152_v54 }
 0x1db   : > { %3068 = vmatmul.msk.bf16.vlgmr.msra.gmra.mxu3 %vm773_vm4, %v771_v48 }
 0x1dc   : > { %820 = vmatpush.bf16.msrb.mxu3 %v811_v56  ;;  %v4186_v44 = vpack.c.b16 %v870_v19, %v870_v19 }
 0x1dd   : > { %v769_v58 = vpop.f32.mrf.mxu2 }
 0x1df   : > { %831 = vrot.lane.b32.xlu2 %v4157_v57, %s3903_s21 }
 0x1e7   : > { %1013 = vrot.lane.b32.xlu2 %v4157_v57, %s3902_s17 }
 0x1ef   : > { %934 = vrot.lane.b32.xlu2 %v4157_v57, %s3904_s3 }
 0x231   : > { %v837_v61 = vpop.permute.xlu2 %836 }
 0x232   : > { %v842_v62 = vsel %vm773_vm4, %v837_v61, 0  ;;  %v1071_v61 = vld [vmem:[#allocation7 + $0xc] sm:$0xf] }
 0x233   : > { %851 = vmatpush.bf16.xpose.msra.mxu3 %v842_v62 }
 0x239   : > { %v832_v13 = vpop.permute.xlu2 %831 }
 0x241   : > { %v1014_v17 = vpop.permute.xlu2 %1013 }
 0x249   : > { %v1016_v63 = vpop.permute.xlu0 %1015  ;;  %v935_v18 = vpop.permute.xlu2 %934 }
 0x24a   : > { %v1021_v0 = vsel %vm773_vm4, %v1016_v63, 0 }
 0x24b   : > { %1030 = vmatpush.bf16.xpose.msra.mxu2 %v1021_v0  ;;  %v1076_v0 = vsel %vm809_vm5, %v1071_v61, 0 }
 0x25e   : > { %v789_v1 = vpop.f32.mrf.mxu3 }
 0x25f   : > { %v793_v2 = vsel %vm773_vm4, %v789_v1, -inf }
 0x260   : > { %794 = vmax.xlane.f32.xlu1 %v793_v2 }
 0x266   : > { %v791_v3 = vpop.f32.mrf.mxu3 }
 0x2d3   : > { %v795_v4 = vpop.xlane.xlu1 %794 }
 0x2d4   : > { %v796_v5 = vsub.f32 %v789_v1, %v795_v4 }
 0x2d6   : > { %v797_v6 = vmul.f32 1.442695, %v796_v5  ;;  %v895_v5 = vld [vmem:[#allocation7 + $0x4] sm:$0xf] }
 0x2d8   : > { %3588 = vpow2.f32 %v797_v6  ;;  %v900_v6 = vsel %vm809_vm5, %v895_v5, 0 }
 0x2d9   : > { %909 = vmatpush.bf16.msrb.mxu1 %v900_v6 }
 0x2de   : > { %v3589_v7 = vpop.eup %3588 }
 0x2df   : > { %v799_v8 = vsel %vm773_vm4, %v3589_v7, 0.0 }
 0x2e0   : > { %800 = vadd.xlane.f32.xlu1 %v799_v8 }
 0x2f9   : > { %936 = vrot.lane.b32.xlu1 %v4146_v49, %s3904_s3 }
 0x353   : > { %v801_v9 = vpop.xlane.xlu1 %800 }
 0x354   : > { %3590 = vrcp.f32 %v801_v9 }
 0x35a   : > { %v3591_v10 = vpop.eup %3590 }
 0x35b   : > { %v803_v11 = vmul.f32 %v3591_v10, %v3589_v7  ;;  %v992_v7 = vld [vmem:[#allocation7 + $0x8] sm:$0xf] }
 0x35c   : > { %v997_v8 = vsel %vm809_vm5, %v992_v7, 0 }
 0x35d   : > { %v804_v12 = vpack.c.bf16 %v803_v11, %v803_v11  ;;  %1006 = vmatpush.bf16.msra.mxu1 %v997_v8 }
 0x35f   : > { %3069 = vmatmul.msk.bf16.vlgmr.msrb.gmra.mxu3 %vm773_vm4, %v804_v12 }
 0x36b   : > { %v937_v14 = vpop.permute.xlu1 %936 }
 0x36c   : > { %v942_v15 = vsel %vm773_vm4, %v937_v14, 0 }
 0x36d   : > { %951 = vmatpush.bf16.xpose.msrb.mxu3 %v942_v15 }
 0x36f   : > { %3070 = vmatmul.msk.bf16.vlgmr.msra.gmra.mxu3 %vm773_vm4, %v832_v13 }
 0x37f   : > { %3074 = vmatmul.msk.bf16.vlgmr.msrb.gmra.mxu3 %vm773_vm4, %v935_v18 }
 0x3e2   : > { %v822_v20 = vpop.f32.mrf.mxu3 }
 0x3e3   : > { %v826_v21 = vpack.c.bf16 %v822_v20, %v822_v20 }
 0x3e5   : > { %3073 = vmatmul.msk.bf16.vlgmr.msrb.gmra.mxu2 %vm773_vm4, %v826_v21 }
 0x3ea   : > { %v824_v22 = vpop.f32.mrf.mxu3 }
 0x3f2   : > { %v853_v23 = vpop.f32.mrf.mxu3 }
 0x3f3   : > { %v857_v24 = vsel %vm773_vm4, %v853_v23, -inf }
 0x3f4   : > { %858 = vmax.xlane.f32.xlu2 %v857_v24 }
 0x3f5   : > { %3077 = vmatmul.msk.bf16.vlgmr.msra.gmra.mxu2 %vm773_vm4, %v1014_v17 }
 0x3fa   : > { %v855_v25 = vpop.f32.mrf.mxu3 }
 0x402   : > { %v953_v26 = vpop.f32.mrf.mxu3 }
 0x403   : > { %v957_v27 = vsel %vm773_vm4, %v953_v26, -inf }
 0x404   : > { %958 = vmax.xlane.f32.xlu1 %v957_v27 }
 0x40a   : > { %v955_v28 = vpop.f32.mrf.mxu3 }
 0x467   : > { %v859_v29 = vpop.xlane.xlu2 %858 }
 0x468   : > { %v860_v30 = vsub.f32 %v853_v23, %v859_v29  ;;  %v4180_v31 = vpop.f32.mrf.mxu2 }
 0x46a   : > { %v861_v32 = vmul.f32 1.442695, %v860_v30 }
 0x46c   : > { %3592 = vpow2.f32 %v861_v32 }
 0x470   : > { %v932_v33 = vpop.f32.mrf.mxu2 }
 0x472   : > { %v3593_v34 = vpop.eup %3592 }
 0x473   : > { %v863_v35 = vsel %vm773_vm4, %v3593_v34, 0.0 }
 0x474   : > { %864 = vadd.xlane.f32.xlu2 %v863_v35 }
 0x477   : > { %v959_v36 = vpop.xlane.xlu1 %958 }
 0x478   : > { %v960_v37 = vsub.f32 %v953_v26, %v959_v36  ;;  %v1032_v38 = vpop.f32.mrf.mxu2 }
 0x479   : > { %v1036_v39 = vsel %vm773_vm4, %v1032_v38, -inf }
 0x47a   : > { %v961_v40 = vmul.f32 1.442695, %v960_v37  ;;  %1037 = vmax.xlane.f32.xlu0 %v1036_v39 }
 0x47c   : > { %3594 = vpow2.f32 %v961_v40 }
 0x480   : > { %v1034_v41 = vpop.f32.mrf.mxu2 }
 0x482   : > { %v3595_v42 = vpop.eup %3594 }
 0x483   : > { %v963_v43 = vsel %vm773_vm4, %v3595_v42, 0.0 }
 0x484   : > { %964 = vadd.xlane.f32.xlu1 %v963_v43 }
 0x48e   : > { %872 = vrot.lane.b32.xlu0 %v4186_v44, %s3903_s21  ;;  %s3916_s21 = smov 8  }
 0x496   : > { %1094 = vrot.lane.b32.xlu0 %v4146_v49, %s3905_s24 }
 0x49d   : > { %969 = vrot.lane.b32.xlu1 %v4186_v44, %s3904_s3 }
 0x49e   : > { %1173 = vrot.lane.b32.xlu0 %v4146_v49, %s3906_s30 }
 0x4a6   : > { %1171 = vrot.lane.b32.xlu0 %v4157_v57, %s3906_s30 }
 0x4e7   : > { %v865_v48 = vpop.xlane.xlu2 %864 }
 0x4ed   : > { %v1038_v45 = vpop.xlane.xlu0 %1037 }
 0x4ee   : > { %v1039_v46 = vsub.f32 %v1032_v38, %v1038_v45 }
 0x4f0   : > { %v1040_v47 = vmul.f32 1.442695, %v1039_v46 }
 0x4f2   : > { %3596 = vpow2.f32 %v1040_v47 }
 0x4f3   : > { %3598 = vrcp.f32 %v865_v48 }
 0x4f7   : > { %v965_v56 = vpop.xlane.xlu1 %964 }
 0x4f8   : > { %v3597_v50 = vpop.eup %3596  ;;  %3600 = vrcp.f32 %v965_v56 }
 0x4f9   : > { %v1042_v51 = vsel %vm773_vm4, %v3597_v50, 0.0  ;;  %v3599_v52 = vpop.eup %3598 }
 0x4fa   : > { %1043 = vadd.xlane.f32.xlu2 %v1042_v51  ;;  %v867_v53 = vmul.f32 %v3599_v52, %v3593_v34 }
 0x4fc   : > { %v868_v58 = vpack.c.bf16 %v867_v53, %v867_v53 }
 0x4fe   : > { %v3601_v60 = vpop.eup %3600 }
 0x4ff   : > { %v967_v62 = vmul.f32 %v3601_v60, %v3595_v42 }
 0x500   : > { %v873_v54 = vpop.permute.xlu0 %872 }
 0x501   : > { %v878_v55 = vsel %vm809_vm5, %v873_v54, 0  ;;  %v968_v3 = vpack.c.bf16 %v967_v62, %v967_v62 }
 0x502   : > { %887 = vmatpush.bf16.msrb.mxu0 %v878_v55 }
 0x505   : > { %3071 = vmatmul.msk.bf16.vlgmr.msrb.gmra.mxu0 %vm773_vm4, %v868_v58  ;;  %v1150_v58 = vld [vmem:[#allocation7 + $0x10] sm:$0xf] }
 0x508   : > { %v1095_v59 = vpop.permute.xlu0 %1094 }
 0x509   : > { %v1100_v18 = vsel %vm773_vm4, %v1095_v59, 0  ;;  %v1155_v59 = vsel %vm809_vm5, %v1150_v58, 0  ;;  %v1387_v58 = vld [vmem:[#allocation7 + $0x1c] sm:$0xf] }
 0x50f   : > { %v970_v63 = vpop.permute.xlu1 %969 }
 0x510   : > { %v975_v1 = vsel %vm809_vm5, %v970_v63, 0  ;;  %v1174_v2 = vpop.permute.xlu0 %1173 }
 0x511   : > { %984 = vmatpush.bf16.msra.mxu0 %v975_v1  ;;  %v1179_v4 = vsel %vm773_vm4, %v1174_v2, 0 }
 0x512   : > { %1048 = vrot.lane.b32.xlu2 %v4186_v44, %s3902_s17  ;;  %s3915_s17 = smov 16  }
 0x515   : > { %1085 = vmatpush.bf16.msrb.mxu0 %v1076_v0 }
 0x516   : > { %3075 = vmatmul.msk.bf16.vlgmr.msra.gmra.mxu0 %vm773_vm4, %v968_v3 }
 0x518   : > { %v1172_v30 = vpop.permute.xlu0 %1171 }
 0x519   : > { %1188 = vmatpush.bf16.xpose.msra.mxu0 %v1179_v4  ;;  %v1229_v4 = vld [vmem:[#allocation7 + $0x14] sm:$0xf] }
 0x51a   : > { %1092 = vrot.lane.b32.xlu2 %v4157_v57, %s3905_s24  ;;  %v1234_v5 = vsel %vm809_vm5, %v1229_v4, 0 }
 0x56d   : > { %v1044_v9 = vpop.xlane.xlu2 %1043 }
 0x56e   : > { %3602 = vrcp.f32 %v1044_v9 }
 0x574   : > { %v3603_v10 = vpop.eup %3602 }
 0x575   : > { %v1046_v11 = vmul.f32 %v3603_v10, %v3597_v50  ;;  %v1049_v12 = vpop.permute.xlu2 %1048 }
 0x576   : > { %v1054_v13 = vsel %vm809_vm5, %v1049_v12, 0 }
 0x577   : > { %v1047_v14 = vpack.c.bf16 %v1046_v11, %v1046_v11  ;;  %1063 = vmatpush.bf16.msra.mxu3 %v1054_v13 }
 0x57a   : > { %3078 = vmatmul.msk.bf16.vlgmr.msra.gmra.mxu3 %vm773_vm4, %v1047_v14 }
 0x57b   : > { %1164 = vmatpush.bf16.msrb.mxu3 %v1155_v59 }
 0x57d   : > { %v1093_v24 = vpop.permute.xlu2 %1092 }
 0x582   : > { %v889_v15 = vpop.f32.mrf.mxu0 }
 0x583   : > { %v893_v17 = vpack.c.bf16 %v889_v15, %v889_v15 }
 0x585   : > { %3072 = vmatmul.msk.bf16.vlgmr.msrb.gmra.mxu1 %vm773_vm4, %v893_v17 }
 0x586   : > { %1109 = vmatpush.bf16.xpose.msrb.mxu1 %v1100_v18 }
 0x58a   : > { %v891_v20 = vpop.f32.mrf.mxu0 }
 0x593   : > { %v986_v21 = vpop.f32.mrf.mxu0 }
 0x594   : > { %v990_v22 = vpack.c.bf16 %v986_v21, %v986_v21 }
 0x596   : > { %3076 = vmatmul.msk.bf16.vlgmr.msra.gmra.mxu1 %vm773_vm4, %v990_v22 }
 0x59b   : > { %v988_v23 = vpop.f32.mrf.mxu0 }
 0x5a6   : > { %3080 = vmatmul.msk.bf16.vlgmr.msrb.gmra.mxu1 %vm773_vm4, %v1093_v24 }
 0x5fd   : > { %v1065_v25 = vpop.f32.mrf.mxu3 }
 0x5fe   : > { %v1069_v26 = vpack.c.bf16 %v1065_v25, %v1065_v25 }
 0x600   : > { %3079 = vmatmul.msk.bf16.vlgmr.msrb.gmra.mxu0 %vm773_vm4, %v1069_v26 }
 0x602   : > { %v911_v27 = vpop.f32.mrf.mxu1 }
 0x603   : > { %v931_v32 = vadd.f32 %v4180_v31, %v911_v27 }
 0x605   : > { %v1067_v28 = vpop.f32.mrf.mxu3 }
 0x60a   : > { %v913_v29 = vpop.f32.mrf.mxu1 }
 0x610   : > { %3083 = vmatmul.msk.bf16.vlgmr.msra.gmra.mxu0 %vm773_vm4, %v1172_v30 }
 0x613   : > { %v1008_v33 = vpop.f32.mrf.mxu1 }
 0x614   : > { %v1012_v34 = vadd.f32 %v1008_v33, %v931_v32 }
 0x61b   : > { %v1010_v35 = vpop.f32.mrf.mxu1 }
 0x623   : > { %v1111_v36 = vpop.f32.mrf.mxu1 }
 0x624   : > { %v1115_v37 = vsel %vm773_vm4, %v1111_v36, -inf }
 0x625   : > { %1116 = vmax.xlane.f32.xlu1 %v1115_v37 }
 0x62b   : > { %v1113_v38 = vpop.f32.mrf.mxu1 }
 0x67d   : > { %v1087_v39 = vpop.f32.mrf.mxu0 }
 0x67e   : > { %v4221_v40 = vadd.f32 %v1087_v39, %v1012_v34 }
 0x685   : > { %v1089_v41 = vpop.f32.mrf.mxu0 }
 0x68d   : > { %v1190_v42 = vpop.f32.mrf.mxu0 }
 0x68e   : > { %v1194_v43 = vsel %vm773_vm4, %v1190_v42, -inf }
 0x68f   : > { %1195 = vmax.xlane.f32.xlu2 %v1194_v43 }
 0x695   : > { %v1192_v19 = vpop.f32.mrf.mxu0 }
 0x698   : > { %v1117_v45 = vpop.xlane.xlu1 %1116 }
 0x699   : > { %v1118_v46 = vsub.f32 %v1111_v36, %v1117_v45 }
 0x69b   : > { %v1119_v31 = vmul.f32 1.442695, %v1118_v46 }
 0x69d   : > { %3604 = vpow2.f32 %v1119_v31  ;;  %v1308_v31 = vld [vmem:[#allocation7 + $0x18] sm:$0xf] }
 0x6a3   : > { %v3605_v47 = vpop.eup %3604 }
 0x6a4   : > { %v1121_v48 = vsel %vm773_vm4, %v3605_v47, 0.0 }
 0x6a5   : > { %1122 = vadd.xlane.f32.xlu0 %v1121_v48 }
 0x6a7   : > { %1127 = vrot.lane.b32.xlu2 %v4186_v44, %s3905_s24  ;;  %s523_s24 = scalar_lea.vmem [#allocation11], %s2966_s20 }
 0x6af   : > { %1329 = vrot.lane.b32.xlu2 %v4157_v57, %s3907_s13 }
 0x6b9   : > { %1206 = vrot.lane.b32.xlu0 %v4186_v44, %s3906_s30 }
 0x6c1   : > { %1252 = vrot.lane.b32.xlu0 %v4146_v49, %s3908_s23 }
 0x702   : > { %v1196_v50 = vpop.xlane.xlu2 %1195 }
 0x703   : > { %v1197_v51 = vsub.f32 %v1190_v42, %v1196_v50 }
 0x705   : > { %v1198_v52 = vmul.f32 1.442695, %v1197_v51 }
 0x707   : > { %3606 = vpow2.f32 %v1198_v52 }
 0x70a   : > { %v1128_v53 = vpop.permute.xlu2 %1127 }
 0x70b   : > { %v1133_v54 = vsel %vm809_vm5, %v1128_v53, 0 }
 0x70c   : > { %1142 = vmatpush.bf16.msrb.mxu2 %v1133_v54 }
 0x70d   : > { %v3607_v55 = vpop.eup %3606 }
 0x70e   : > { %v1200_v56 = vsel %vm773_vm4, %v3607_v55, 0.0 }
 0x70f   : > { %1201 = vadd.xlane.f32.xlu1 %v1200_v56 }
 0x710   : > { %1243 = vmatpush.bf16.msra.mxu2 %v1234_v5 }
 0x712   : > { %v1330_v21 = vpop.permute.xlu2 %1329 }
 0x718   : > { %v1123_v60 = vpop.xlane.xlu0 %1122 }
 0x719   : > { %3608 = vrcp.f32 %v1123_v60 }
 0x71f   : > { %v3609_v61 = vpop.eup %3608 }
 0x720   : > { %v1125_v62 = vmul.f32 %v3609_v61, %v3605_v47  ;;  %v1313_v47 = vsel %vm809_vm5, %v1308_v31, 0  ;;  %v1392_v61 = vsel %vm809_vm5, %v1387_v58, 0 }
 0x722   : > { %v1126_v63 = vpack.c.bf16 %v1125_v62, %v1125_v62 }
 0x724   : > { %3081 = vmatmul.msk.bf16.vlgmr.msrb.gmra.mxu2 %vm773_vm4, %v1126_v63 }
 0x728   : > { %1331 = vrot.lane.b32.xlu1 %v4146_v49, %s3907_s13 }
 0x72b   : > { %v1207_v0 = vpop.permute.xlu0 %1206 }
 0x72c   : > { %v1212_v1 = vsel %vm809_vm5, %v1207_v0, 0 }
 0x72d   : > { %1221 = vmatpush.bf16.msra.mxu1 %v1212_v1 }
 0x730   : > { %1250 = vrot.lane.b32.xlu1 %v4157_v57, %s3908_s23 }
 0x731   : > { %1322 = vmatpush.bf16.msrb.mxu1 %v1313_v47 }
 0x733   : > { %v1253_v2 = vpop.permute.xlu0 %1252 }
 0x734   : > { %v1258_v3 = vsel %vm773_vm4, %v1253_v2, 0 }
 0x735   : > { %1267 = vmatpush.bf16.xpose.msra.mxu3 %v1258_v3 }
 0x782   : > { %v1202_v6 = vpop.xlane.xlu1 %1201 }
 0x783   : > { %3610 = vrcp.f32 %v1202_v6 }
 0x789   : > { %v3611_v7 = vpop.eup %3610 }
 0x78a   : > { %v1204_v8 = vmul.f32 %v3611_v7, %v3607_v55 }
 0x78c   : > { %v1205_v9 = vpack.c.bf16 %v1204_v8, %v1204_v8 }
 0x78e   : > { %3084 = vmatmul.msk.bf16.vlgmr.msra.gmra.mxu1 %vm773_vm4, %v1205_v9 }
 0x79a   : > { %v1332_v10 = vpop.permute.xlu1 %1331 }
 0x79b   : > { %v1337_v11 = vsel %vm773_vm4, %v1332_v10, 0 }
 0x79c   : > { %1346 = vmatpush.bf16.xpose.msrb.mxu2 %v1337_v11 }
 0x7a2   : > { %v1251_v15 = vpop.permute.xlu1 %1250 }
 0x7a7   : > { %v1144_v12 = vpop.f32.mrf.mxu2 }
 0x7a8   : > { %v1148_v13 = vpack.c.bf16 %v1144_v12, %v1144_v12 }
 0x7aa   : > { %3082 = vmatmul.msk.bf16.vlgmr.msrb.gmra.mxu3 %vm773_vm4, %v1148_v13 }
 0x7af   : > { %v1146_v14 = vpop.f32.mrf.mxu2 }
 0x7ba   : > { %3086 = vmatmul.msk.bf16.vlgmr.msra.gmra.mxu3 %vm773_vm4, %v1251_v15 }
 0x80b   : > { %v1223_v17 = vpop.f32.mrf.mxu1 }
 0x80c   : > { %v1227_v18 = vpack.c.bf16 %v1223_v17, %v1223_v17 }
 0x80e   : > { %3085 = vmatmul.msk.bf16.vlgmr.msra.gmra.mxu2 %vm773_vm4, %v1227_v18 }
 0x813   : > { %v1225_v20 = vpop.f32.mrf.mxu1 }
 0x81e   : > { %3089 = vmatmul.msk.bf16.vlgmr.msrb.gmra.mxu2 %vm773_vm4, %v1330_v21 }
 0x82d   : > { %v1166_v22 = vpop.f32.mrf.mxu3 }
 0x82e   : > { %v1170_v23 = vadd.f32 %v1166_v22, %v4221_v40 }
 0x835   : > { %v1168_v24 = vpop.f32.mrf.mxu3 }
 0x836   : > { %v1466_v24 = vld [vmem:[#allocation7 + $0x20] sm:$0xf] }
 0x83d   : > { %v1269_v25 = vpop.f32.mrf.mxu3 }
 0x83e   : > { %v1273_v26 = vsel %vm773_vm4, %v1269_v25, -inf }
 0x83f   : > { %1274 = vmax.xlane.f32.xlu2 %v1273_v26 }
 0x845   : > { %v1271_v27 = vpop.f32.mrf.mxu3 }
 0x857   : > { %1364 = vrot.lane.b32.xlu2 %v4186_v44, %s3907_s13 }
 0x85f   : > { %1489 = vrot.lane.b32.xlu2 %v4146_v49, %s3909_s5 }
 0x891   : > { %v1245_v28 = vpop.f32.mrf.mxu2 }
 0x892   : > { %v4256_v29 = vadd.f32 %v1245_v28, %v1170_v23 }
 0x899   : > { %v1247_v30 = vpop.f32.mrf.mxu2 }
 0x8a1   : > { %v1348_v32 = vpop.f32.mrf.mxu2 }
 0x8a2   : > { %v1352_v33 = vsel %vm773_vm4, %v1348_v32, -inf }
 0x8a3   : > { %1353 = vmax.xlane.f32.xlu0 %v1352_v33 }
 0x8a9   : > { %v1350_v34 = vpop.f32.mrf.mxu2 }
 0x8b2   : > { %v1275_v35 = vpop.xlane.xlu2 %1274 }
 0x8b3   : > { %v1276_v36 = vsub.f32 %v1269_v25, %v1275_v35  ;;  %v1471_v25 = vsel %vm809_vm5, %v1466_v24, 0 }
 0x8b5   : > { %v1277_v37 = vmul.f32 1.442695, %v1276_v36 }
 0x8b7   : > { %3612 = vpow2.f32 %v1277_v37 }
 0x8ba   : > { %v1365_v38 = vpop.permute.xlu2 %1364 }
 0x8bb   : > { %v1370_v39 = vsel %vm809_vm5, %v1365_v38, 0 }
 0x8bc   : > { %1379 = vmatpush.bf16.msrb.mxu3 %v1370_v39 }
 0x8bd   : > { %v3613_v40 = vpop.eup %3612 }
 0x8be   : > { %v1279_v41 = vsel %vm773_vm4, %v3613_v40, 0.0 }
 0x8bf   : > { %1280 = vadd.xlane.f32.xlu0 %v1279_v41  ;;  %v1545_v41 = vld [vmem:[#allocation7 + $0x24] sm:$0xf] }
 0x8c0   : > { %1480 = vmatpush.bf16.msra.mxu3 %v1471_v25 }
 0x8c2   : > { %v1490_v63 = vpop.permute.xlu2 %1489 }
 0x8c3   : > { %v1495_v1 = vsel %vm773_vm4, %v1490_v63, 0 }
 0x8d3   : > { %1410 = vrot.lane.b32.xlu0 %v4146_v49, %s3910_s11 }
 0x8db   : > { %1408 = vrot.lane.b32.xlu0 %v4157_v57, %s3910_s11 }
 0x916   : > { %v1354_v42 = vpop.xlane.xlu0 %1353 }
 0x917   : > { %v1355_v43 = vsub.f32 %v1348_v32, %v1354_v42  ;;  %v1550_v42 = vsel %vm809_vm5, %v1545_v41, 0 }
 0x919   : > { %v1356_v19 = vmul.f32 1.442695, %v1355_v43 }
 0x91b   : > { %3614 = vpow2.f32 %v1356_v19 }
 0x921   : > { %v3615_v45 = vpop.eup %3614 }
 0x922   : > { %v1358_v46 = vsel %vm773_vm4, %v3615_v45, 0.0 }
 0x923   : > { %1359 = vadd.xlane.f32.xlu1 %v1358_v46 }
 0x932   : > { %v1281_v48 = vpop.xlane.xlu0 %1280 }
 0x93c   : > { %1285 = vrot.lane.b32.xlu1 %v4186_v44, %s3908_s23 }
 0x944   : > { %1487 = vrot.lane.b32.xlu1 %v4157_v57, %s3909_s5 }
 0x945   : > { %v1411_v50 = vpop.permute.xlu0 %1410 }
 0x946   : > { %v1416_v51 = vsel %vm773_vm4, %v1411_v50, 0 }
 0x947   : > { %1425 = vmatpush.bf16.xpose.msra.mxu1 %v1416_v51 }
 0x94d   : > { %v1409_v9 = vpop.permute.xlu0 %1408 }
 0x996   : > { %v1360_v52 = vpop.xlane.xlu1 %1359 }
 0x997   : > { %3616 = vrcp.f32 %v1360_v52 }
 0x998   : > { %3618 = vrcp.f32 %v1281_v48 }
 0x99d   : > { %v3617_v53 = vpop.eup %3616 }
 0x99e   : > { %v1362_v54 = vmul.f32 %v3617_v53, %v3615_v45  ;;  %v3619_v56 = vpop.eup %3618 }
 0x99f   : > { %v1283_v59 = vmul.f32 %v3619_v56, %v3613_v40 }
 0x9a0   : > { %v1363_v55 = vpack.c.bf16 %v1362_v54, %v1362_v54 }
 0x9a1   : > { %v1284_v0 = vpack.c.bf16 %v1283_v59, %v1283_v59 }
 0x9a2   : > { %3090 = vmatmul.msk.bf16.vlgmr.msrb.gmra.mxu3 %vm773_vm4, %v1363_v55 }
 0x9ae   : > { %v1286_v60 = vpop.permute.xlu1 %1285 }
 0x9af   : > { %v1291_v62 = vsel %vm809_vm5, %v1286_v60, 0 }
 0x9b0   : > { %1300 = vmatpush.bf16.msrb.mxu0 %v1291_v62 }
 0x9b3   : > { %3087 = vmatmul.msk.bf16.vlgmr.msrb.gmra.mxu0 %vm773_vm4, %v1284_v0 }
 0x9b4   : > { %1401 = vmatpush.bf16.msra.mxu0 %v1392_v61 }
 0x9b6   : > { %v1488_v7 = vpop.permute.xlu1 %1487 }
 0x9b8   : > { %1504 = vmatpush.bf16.xpose.msrb.mxu0 %v1495_v1 }
 0xa25   : > { %v1381_v2 = vpop.f32.mrf.mxu3 }
 0xa26   : > { %v1385_v3 = vpack.c.bf16 %v1381_v2, %v1381_v2 }
 0xa28   : > { %3091 = vmatmul.msk.bf16.vlgmr.msra.gmra.mxu0 %vm773_vm4, %v1385_v3 }
 0xa2d   : > { %v1383_v4 = vpop.f32.mrf.mxu3 }
 0xa30   : > { %v1302_v5 = vpop.f32.mrf.mxu0 }
 0xa31   : > { %v1306_v6 = vpack.c.bf16 %v1302_v5, %v1302_v5 }
 0xa33   : > { %3088 = vmatmul.msk.bf16.vlgmr.msrb.gmra.mxu1 %vm773_vm4, %v1306_v6 }
 0xa38   : > { %v1304_v8 = vpop.f32.mrf.mxu0  ;;  %3095 = vmatmul.msk.bf16.vlgmr.msrb.gmra.mxu0 %vm773_vm4, %v1488_v7 }
 0xa43   : > { %3092 = vmatmul.msk.bf16.vlgmr.msra.gmra.mxu1 %vm773_vm4, %v1409_v9 }
 0xaa5   : > { %v1403_v10 = vpop.f32.mrf.mxu0 }
 0xaad   : > { %v1405_v11 = vpop.f32.mrf.mxu0 }
 0xab0   : > { %v1324_v12 = vpop.f32.mrf.mxu1 }
 0xab1   : > { %v1328_v13 = vadd.f32 %v1324_v12, %v4256_v29 }
 0xab3   : > { %v4282_v14 = vadd.f32 %v1403_v10, %v1328_v13 }
 0xab5   : > { %v1506_v15 = vpop.f32.mrf.mxu0 }
 0xab6   : > { %v1510_v17 = vsel %vm773_vm4, %v1506_v15, -inf }
 0xab7   : > { %1511 = vmax.xlane.f32.xlu0 %v1510_v17 }
 0xab8   : > { %v1326_v18 = vpop.f32.mrf.mxu1 }
 0xabd   : > { %v1508_v20 = vpop.f32.mrf.mxu0 }
 0xac0   : > { %v1427_v21 = vpop.f32.mrf.mxu1 }
 0xac1   : > { %v1431_v22 = vsel %vm773_vm4, %v1427_v21, -inf }
 0xac2   : > { %1432 = vmax.xlane.f32.xlu2 %v1431_v22 }
 0xac8   : > { %v1429_v23 = vpop.f32.mrf.mxu1 }
 0xacb   : > { %1443 = vrot.lane.b32.xlu0 %v4186_v44, %s3910_s11 }
 0xad3   : > { %1568 = vrot.lane.b32.xlu0 %v4146_v49, %s3911_s16 }
 0xadb   : > { %1645 = vrot.lane.b32.xlu0 %v4157_v57, %s3912_s19 }
 0xb2a   : > { %v1512_v26 = vpop.xlane.xlu0 %1511 }
 0xb2b   : > { %v1513_v27 = vsub.f32 %v1506_v15, %v1512_v26  ;;  %v1703_v26 = vld [vmem:[#allocation7 + $0x2c] sm:$0xf] }
 0xb2d   : > { %v1514_v28 = vmul.f32 1.442695, %v1513_v27  ;;  %v1708_v27 = vsel %vm809_vm5, %v1703_v26, 0 }
 0xb2f   : > { %3620 = vpow2.f32 %v1514_v28  ;;  %v1624_v28 = vld [vmem:[#allocation7 + $0x28] sm:$0xf] }
 0xb35   : > { %v3621_v29 = vpop.eup %3620  ;;  %v1433_v30 = vpop.xlane.xlu2 %1432 }
 0xb36   : > { %v1434_v32 = vsub.f32 %v1427_v21, %v1433_v30  ;;  %v1516_v33 = vsel %vm773_vm4, %v3621_v29, 0.0 }
 0xb37   : > { %1517 = vadd.xlane.f32.xlu2 %v1516_v33 }
 0xb38   : > { %v1435_v34 = vmul.f32 1.442695, %v1434_v32 }
 0xb3a   : > { %3622 = vpow2.f32 %v1435_v34 }
 0xb3d   : > { %v1444_v35 = vpop.permute.xlu0 %1443 }
 0xb3e   : > { %v1449_v36 = vsel %vm809_vm5, %v1444_v35, 0 }
 0xb3f   : > { %1458 = vmatpush.bf16.msra.mxu2 %v1449_v36 }
 0xb40   : > { %v3623_v37 = vpop.eup %3622 }
 0xb41   : > { %v1437_v38 = vsel %vm773_vm4, %v3623_v37, 0.0 }
 0xb42   : > { %1438 = vadd.xlane.f32.xlu1 %v1437_v38 }
 0xb43   : > { %1559 = vmatpush.bf16.msrb.mxu2 %v1550_v42 }
 0xb45   : > { %v1569_v39 = vpop.permute.xlu0 %1568 }
 0xb46   : > { %v1574_v40 = vsel %vm773_vm4, %v1569_v39, 0 }
 0xb47   : > { %1583 = vmatpush.bf16.xpose.msrb.mxu3 %v1574_v40 }
 0xb4d   : > { %v1646_v63 = vpop.permute.xlu0 %1645 }
 0xb4f   : > { %1647 = vrot.lane.b32.xlu2 %v4146_v49, %s3912_s19 }
 0xb57   : > { %1566 = vrot.lane.b32.xlu2 %v4157_v57, %s3911_s16 }
 0xb5b   : > { %1522 = vrot.lane.b32.xlu1 %v4186_v44, %s3909_s5 }
 0xbaa   : > { %v1518_v43 = vpop.xlane.xlu2 %1517 }
 0xbb2   : > { %v1648_v31 = vpop.permute.xlu2 %1647 }
 0xbb3   : > { %v1653_v48 = vsel %vm773_vm4, %v1648_v31, 0 }
 0xbb5   : > { %v1439_v19 = vpop.xlane.xlu1 %1438 }
 0xbb6   : > { %3624 = vrcp.f32 %v1439_v19 }
 0xbb7   : > { %3626 = vrcp.f32 %v1518_v43 }
 0xbba   : > { %v1567_v61 = vpop.permute.xlu2 %1566 }
 0xbbc   : > { %v3625_v45 = vpop.eup %3624 }
 0xbbd   : > { %v1441_v46 = vmul.f32 %v3625_v45, %v3623_v37  ;;  %v3627_v50 = vpop.eup %3626 }
 0xbbe   : > { %v1520_v51 = vmul.f32 %v3627_v50, %v3621_v29  ;;  %v1629_v29 = vsel %vm809_vm5, %v1624_v28, 0 }
 0xbbf   : > { %v1442_v47 = vpack.c.bf16 %v1441_v46, %v1441_v46 }
 0xbc0   : > { %v1521_v54 = vpack.c.bf16 %v1520_v51, %v1520_v51 }
 0xbc1   : > { %3093 = vmatmul.msk.bf16.vlgmr.msra.gmra.mxu2 %vm773_vm4, %v1442_v47 }
 0xbc2   : > { %1662 = vmatpush.bf16.xpose.msra.mxu2 %v1653_v48 }
 0xbcd   : > { %v1523_v52 = vpop.permute.xlu1 %1522 }
 0xbce   : > { %v1528_v53 = vsel %vm809_vm5, %v1523_v52, 0 }
 0xbcf   : > { %1537 = vmatpush.bf16.msrb.mxu1 %v1528_v53 }
 0xbd2   : > { %3096 = vmatmul.msk.bf16.vlgmr.msrb.gmra.mxu1 %vm773_vm4, %v1521_v54 }
 0xbd3   : > { %1638 = vmatpush.bf16.msra.mxu1 %v1629_v29 }
 0xc44   : > { %v1460_v55 = vpop.f32.mrf.mxu2 }
 0xc45   : > { %v1464_v56 = vpack.c.bf16 %v1460_v55, %v1460_v55 }
 0xc47   : > { %3094 = vmatmul.msk.bf16.vlgmr.msra.gmra.mxu3 %vm773_vm4, %v1464_v56 }
 0xc4c   : > { %v1462_v58 = vpop.f32.mrf.mxu2 }
 0xc4f   : > { %v1539_v59 = vpop.f32.mrf.mxu1 }
 0xc50   : > { %v1543_v60 = vpack.c.bf16 %v1539_v59, %v1539_v59 }
 0xc52   : > { %3097 = vmatmul.msk.bf16.vlgmr.msrb.gmra.mxu2 %vm773_vm4, %v1543_v60 }
 0xc57   : > { %v1541_v62 = vpop.f32.mrf.mxu1  ;;  %3098 = vmatmul.msk.bf16.vlgmr.msrb.gmra.mxu3 %vm773_vm4, %v1567_v61 }
 0xc62   : > { %3101 = vmatmul.msk.bf16.vlgmr.msra.gmra.mxu2 %vm773_vm4, %v1646_v63 }
 0xcca   : > { %v1482_v0 = vpop.f32.mrf.mxu3 }
 0xccb   : > { %v1486_v1 = vadd.f32 %v1482_v0, %v4282_v14 }
 0xcd2   : > { %v1484_v2 = vpop.f32.mrf.mxu3 }
 0xcd5   : > { %v1561_v3 = vpop.f32.mrf.mxu2 }
 0xcd6   : > { %v4313_v4 = vadd.f32 %v1561_v3, %v1486_v1 }
 0xcda   : > { %v1585_v5 = vpop.f32.mrf.mxu3 }
 0xcdb   : > { %v1589_v6 = vsel %vm773_vm4, %v1585_v5, -inf }
 0xcdc   : > { %1590 = vmax.xlane.f32.xlu0 %v1589_v6 }
 0xcdd   : > { %v1563_v7 = vpop.f32.mrf.mxu2 }
 0xce2   : > { %v1587_v8 = vpop.f32.mrf.mxu3 }
 0xce5   : > { %v1664_v9 = vpop.f32.mrf.mxu2 }
 0xce6   : > { %v1668_v10 = vsel %vm773_vm4, %v1664_v9, -inf }
 0xce7   : > { %1669 = vmax.xlane.f32.xlu1 %v1668_v10 }
 0xced   : > { %v1666_v11 = vpop.f32.mrf.mxu2 }
 0xcf0   : > { %1601 = vrot.lane.b32.xlu0 %v4186_v44, %s3911_s16 }
 0xcf8   : > { %1805 = vrot.lane.b32.xlu0 %v4146_v49, %s3913_s9 }
 0xd4f   : > { %v1591_v12 = vpop.xlane.xlu0 %1590 }
 0xd50   : > { %v1592_v13 = vsub.f32 %v1585_v5, %v1591_v12 }
 0xd52   : > { %v1593_v14 = vmul.f32 1.442695, %v1592_v13 }
 0xd54   : > { %3628 = vpow2.f32 %v1593_v14 }
 0xd5a   : > { %v3629_v15 = vpop.eup %3628  ;;  %v1670_v17 = vpop.xlane.xlu1 %1669 }
 0xd5b   : > { %v1671_v18 = vsub.f32 %v1664_v9, %v1670_v17  ;;  %v1595_v20 = vsel %vm773_vm4, %v3629_v15, 0.0 }
 0xd5c   : > { %1596 = vadd.xlane.f32.xlu1 %v1595_v20 }
 0xd5d   : > { %v1672_v21 = vmul.f32 1.442695, %v1671_v18 }
 0xd5f   : > { %3630 = vpow2.f32 %v1672_v21  ;;  %v1861_v21 = vld [vmem:[#allocation7 + $0x34] sm:$0xf] }
 0xd62   : > { %v1602_v22 = vpop.permute.xlu0 %1601 }
 0xd63   : > { %v1607_v23 = vsel %vm809_vm5, %v1602_v22, 0  ;;  %v1866_v22 = vsel %vm809_vm5, %v1861_v21, 0 }
 0xd64   : > { %1616 = vmatpush.bf16.msra.mxu0 %v1607_v23 }
 0xd65   : > { %v3631_v24 = vpop.eup %3630 }
 0xd66   : > { %v1674_v25 = vsel %vm773_vm4, %v3631_v24, 0.0 }
 0xd67   : > { %1675 = vadd.xlane.f32.xlu2 %v1674_v25 }
 0xd68   : > { %1717 = vmatpush.bf16.msrb.mxu0 %v1708_v27 }
 0xd6a   : > { %v1806_v34 = vpop.permute.xlu0 %1805 }
 0xd6b   : > { %v1811_v37 = vsel %vm773_vm4, %v1806_v34, 0 }
 0xd75   : > { %1726 = vrot.lane.b32.xlu1 %v4146_v49, %s3914_s22 }
 0xd7d   : > { %1803 = vrot.lane.b32.xlu1 %v4157_v57, %s3913_s9 }
 0xd7f   : > { %1680 = vrot.lane.b32.xlu2 %v4186_v44, %s3912_s19 }
 0xd87   : > { %1724 = vrot.lane.b32.xlu2 %v4157_v57, %s3914_s22 }
 0xdcf   : > { %v1597_v30 = vpop.xlane.xlu1 %1596 }
 0xdd0   : > { %3632 = vrcp.f32 %v1597_v30 }
 0xdd6   : > { %v3633_v32 = vpop.eup %3632 }
 0xdd7   : > { %v1599_v33 = vmul.f32 %v3633_v32, %v3629_v15 }
 0xdd9   : > { %v1600_v35 = vpack.c.bf16 %v1599_v33, %v1599_v33 }
 0xdda   : > { %v1676_v36 = vpop.xlane.xlu2 %1675 }
 0xddb   : > { %3634 = vrcp.f32 %v1676_v36  ;;  %3099 = vmatmul.msk.bf16.vlgmr.msra.gmra.mxu0 %vm773_vm4, %v1600_v35 }
 0xddc   : > { %1820 = vmatpush.bf16.xpose.msra.mxu0 %v1811_v37 }
 0xde1   : > { %v3635_v38 = vpop.eup %3634 }
 0xde2   : > { %v1678_v39 = vmul.f32 %v3635_v38, %v3631_v24  ;;  %v1681_v40 = vpop.permute.xlu2 %1680 }
 0xde3   : > { %v1686_v41 = vsel %vm809_vm5, %v1681_v40, 0 }
 0xde4   : > { %v1679_v42 = vpack.c.bf16 %v1678_v39, %v1678_v39  ;;  %1695 = vmatpush.bf16.msra.mxu3 %v1686_v41 }
 0xde7   : > { %3102 = vmatmul.msk.bf16.vlgmr.msra.gmra.mxu3 %vm773_vm4, %v1679_v42  ;;  %v1727_v43 = vpop.permute.xlu1 %1726 }
 0xde8   : > { %v1732_v19 = vsel %vm773_vm4, %v1727_v43, 0 }
 0xde9   : > { %1741 = vmatpush.bf16.xpose.msrb.mxu1 %v1732_v19 }
 0xdea   : > { %v1725_v47 = vpop.permute.xlu2 %1724 }
 0xdef   : > { %v1804_v52 = vpop.permute.xlu1 %1803 }
 0xe58   : > { %v1618_v45 = vpop.f32.mrf.mxu0 }
 0xe59   : > { %v1622_v46 = vpack.c.bf16 %v1618_v45, %v1618_v45 }
 0xe5b   : > { %3100 = vmatmul.msk.bf16.vlgmr.msra.gmra.mxu1 %vm773_vm4, %v1622_v46 }
 0xe60   : > { %v1620_v31 = vpop.f32.mrf.mxu0 }
 0xe6a   : > { %v1697_v48 = vpop.f32.mrf.mxu3 }
 0xe6b   : > { %v1701_v50 = vpack.c.bf16 %v1697_v48, %v1697_v48  ;;  %3104 = vmatmul.msk.bf16.vlgmr.msrb.gmra.mxu1 %vm773_vm4, %v1725_v47 }
 0xe6d   : > { %3103 = vmatmul.msk.bf16.vlgmr.msrb.gmra.mxu0 %vm773_vm4, %v1701_v50 }
 0xe72   : > { %v1699_v51 = vpop.f32.mrf.mxu3 }
 0xe7d   : > { %3107 = vmatmul.msk.bf16.vlgmr.msra.gmra.mxu0 %vm773_vm4, %v1804_v52 }
 0xed8   : > { %v1640_v53 = vpop.f32.mrf.mxu1 }
 0xed9   : > { %v1644_v54 = vadd.f32 %v1640_v53, %v4313_v4  ;;  %v1782_v4 = vld [vmem:[#allocation7 + $0x30] sm:$0xf] }
 0xeda   : > { %v1787_v6 = vsel %vm809_vm5, %v1782_v4, 0 }
 0xedb   : > { %1796 = vmatpush.bf16.msrb.mxu3 %v1787_v6 }
 0xee0   : > { %v1642_v55 = vpop.f32.mrf.mxu1 }
 0xee8   : > { %v1743_v56 = vpop.f32.mrf.mxu1 }
 0xee9   : > { %v1747_v58 = vsel %vm773_vm4, %v1743_v56, -inf }
 0xeea   : > { %1748 = vmax.xlane.f32.xlu0 %v1747_v58  ;;  %v1719_v59 = vpop.f32.mrf.mxu0 }
 0xeeb   : > { %v4345_v60 = vadd.f32 %v1719_v59, %v1644_v54 }
 0xef0   : > { %v1745_v61 = vpop.f32.mrf.mxu1 }
 0xef2   : > { %v1721_v62 = vpop.f32.mrf.mxu0 }
 0xefa   : > { %v1822_v63 = vpop.f32.mrf.mxu0 }
 0xefb   : > { %v1826_v0 = vsel %vm773_vm4, %v1822_v63, -inf }
 0xefc   : > { %1827 = vmax.xlane.f32.xlu2 %v1826_v0 }
 0xf02   : > { %v1824_v1 = vpop.f32.mrf.mxu0 }
 0xf14   : > { %1759 = vrot.lane.b32.xlu2 %v4186_v44, %s3914_s22 }
 0xf1c   : > { %1884 = vrot.lane.b32.xlu2 %v4146_v49, %s3915_s17 }
 0xf5d   : > { %v1749_v2 = vpop.xlane.xlu0 %1748 }
 0xf5e   : > { %v1750_v3 = vsub.f32 %v1743_v56, %v1749_v2 }
 0xf60   : > { %v1751_v5 = vmul.f32 1.442695, %v1750_v3 }
 0xf62   : > { %3636 = vpow2.f32 %v1751_v5 }
 0xf68   : > { %v3637_v7 = vpop.eup %3636 }
 0xf69   : > { %v1753_v8 = vsel %vm773_vm4, %v3637_v7, 0.0 }
 0xf6a   : > { %1754 = vadd.xlane.f32.xlu1 %v1753_v8 }
 0xf6f   : > { %v1828_v9 = vpop.xlane.xlu2 %1827 }
 0xf70   : > { %v1829_v10 = vsub.f32 %v1822_v63, %v1828_v9 }
 0xf72   : > { %v1830_v11 = vmul.f32 1.442695, %v1829_v10 }
 0xf74   : > { %3638 = vpow2.f32 %v1830_v11 }
 0xf77   : > { %v1760_v12 = vpop.permute.xlu2 %1759 }
 0xf78   : > { %v1765_v13 = vsel %vm809_vm5, %v1760_v12, 0  ;;  %v2019_v12 = vld [vmem:[#allocation7 + $0x3c] sm:$0xf] }
 0xf79   : > { %1774 = vmatpush.bf16.msrb.mxu2 %v1765_v13  ;;  %v1940_v13 = vld [vmem:[#allocation7 + $0x38] sm:$0xf] }
 0xf7a   : > { %v3639_v14 = vpop.eup %3638 }
 0xf7b   : > { %v1832_v15 = vsel %vm773_vm4, %v3639_v14, 0.0 }
 0xf7c   : > { %1833 = vadd.xlane.f32.xlu0 %v1832_v15 }
 0xf7d   : > { %1875 = vmatpush.bf16.msra.mxu2 %v1866_v22 }
 0xf7f   : > { %v1885_v17 = vpop.permute.xlu2 %1884 }
 0xf80   : > { %v1890_v18 = vsel %vm773_vm4, %v1885_v17, 0 }
 0xf81   : > { %1899 = vmatpush.bf16.xpose.msra.mxu3 %v1890_v18 }
 0xf83   : > { %1838 = vrot.lane.b32.xlu1 %v4186_v44, %s3913_s9  ;;  %s3377_s9 = sshll.u32 %s4012_s15, 3  ;;  %s2833_s15 = scalar_lea.sflag [#allocation4], %s4106_s14 }
 0xf8b   : > { %1882 = vrot.lane.b32.xlu1 %v4157_v57, %s3915_s17 }
 0xf90   : > { %1963 = vrot.lane.b32.xlu0 %v4146_v49, %s3916_s21 }
 0xf98   : > { %1961 = vrot.lane.b32.xlu0 %v4157_v57, %s3916_s21 }
 0xfdd   : > { %v1755_v20 = vpop.xlane.xlu1 %1754 }
 0xfde   : > { %3640 = vrcp.f32 %v1755_v20 }
 0xfe4   : > { %v3641_v23 = vpop.eup %3640 }
 0xfe5   : > { %v1757_v24 = vmul.f32 %v3641_v23, %v3637_v7 }
 0xfe7   : > { %v1758_v25 = vpack.c.bf16 %v1757_v24, %v1757_v24 }
 0xfe9   : > { %3105 = vmatmul.msk.bf16.vlgmr.msrb.gmra.mxu2 %vm773_vm4, %v1758_v25 }
 0xfef   : > { %v1834_v26 = vpop.xlane.xlu0 %1833 }
 0xff0   : > { %3642 = vrcp.f32 %v1834_v26 }
 0xff5   : > { %v1839_v27 = vpop.permute.xlu1 %1838 }
 0xff6   : > { %v3643_v28 = vpop.eup %3642  ;;  %v1844_v49 = vsel %vm809_vm5, %v1839_v27, 0 }
 0xff7   : > { %v1836_v29 = vmul.f32 %v3643_v28, %v3639_v14  ;;  %1853 = vmatpush.bf16.msra.mxu1 %v1844_v49  ;;  %v1945_v14 = vsel %vm809_vm5, %v1940_v13, 0  ;;  %v3580_v28 = vld [vmem:[%s4573_s6] ss:$0 sm:$0xff]  ;;  %v3190_v13 = vld [vmem:[#allocation8 + $0x88] sm:$0xf] }
 0xff8   : > { %v3664_v49 = vld [vmem:[%s4112_s27] sm:$0xff]  ;;  %s2845_s27 = sshll.u32 %s523_s24, 4  ;;  %s2846_s27 = int_to_ptr.vmem [resolvable:$true] %s2845_s27 }
 0xff9   : > { %v1837_v57 = vpack.c.bf16 %v1836_v29, %v1836_v29 }
 0xffb   : > { %3108 = vmatmul.msk.bf16.vlgmr.msra.gmra.mxu1 %vm773_vm4, %v1837_v57 }
 0xffc   : > { %1954 = vmatpush.bf16.msrb.mxu1 %v1945_v14  ;;  %v3423_v14 = vld [vmem:[#allocation8 + $0x94] sm:$0xf0] }
 0xffd   : > { %v1883_v38 = vpop.permute.xlu1 %1882 }
0x1002   : > { %v1964_v30 = vpop.permute.xlu0 %1963 }
0x1003   : > { %v1969_v32 = vsel %vm773_vm4, %v1964_v30, 0 }
0x1004   : > { %1978 = vmatpush.bf16.xpose.msrb.mxu2 %v1969_v32  ;;  %v3230_v32 = vld [vmem:[#allocation8 + $0xe0] sm:$0xf] }
0x100a   : > { %v1962_v40 = vpop.permute.xlu0 %1961 }
0x106c   : > { %v1776_v33 = vpop.f32.mrf.mxu2 }
0x106d   : > { %v1780_v34 = vpack.c.bf16 %v1776_v33, %v1776_v33  ;;  %v3434_v33 = vld [vmem:[#allocation8 + $0xec] sm:$0xf0] }
0x106f   : > { %3106 = vmatmul.msk.bf16.vlgmr.msrb.gmra.mxu3 %vm773_vm4, %v1780_v34  ;;  %v3432_v34 = vld [vmem:[#allocation8 + $0xe4] sm:$0xf] }
0x1074   : > { %v1778_v35 = vpop.f32.mrf.mxu2 }
0x1075   : > { %v3231_v35 = vor.u32 %v3434_v33, %v3230_v32  ;;  %v3176_v32 = vld [vmem:[#allocation8 + $0x78] sm:$0xf0] }
0x1077   : > { %2279 = vmatpush.bf16.msra.mxu1 %v3231_v35  ;;  %v3414_v35 = vld [vmem:[#allocation8 + $0x4c] sm:$0xf0] }
0x1078   : > { %v1855_v36 = vpop.f32.mrf.mxu1 }
0x1079   : > { %v1859_v37 = vpack.c.bf16 %v1855_v36, %v1855_v36  ;;  %v3232_v36 = vld [vmem:[#allocation8 + $0xf0] sm:$0xf0] }
0x107b   : > { %3109 = vmatmul.msk.bf16.vlgmr.msra.gmra.mxu2 %vm773_vm4, %v1859_v37  ;;  %v3238_v37 = vld [vmem:[#allocation8 + $0xe8] sm:$0xf] }
0x107f   : > { %3110 = vmatmul.msk.bf16.vlgmr.msra.gmra.mxu3 %vm773_vm4, %v1883_v38  ;;  %v3435_v38 = vld [vmem:[#allocation8 + $0xf4] sm:$0xf0] }
0x1080   : > { %v1857_v39 = vpop.f32.mrf.mxu1 }
0x1081   : > { %v3235_v39 = vor.u32 %v3432_v34, %v3232_v36  ;;  %v3150_v34 = vld [vmem:[#allocation8 + $0x40] sm:$0xf]  ;;  %v3412_v36 = vld [vmem:[#allocation8 + $0x44] sm:$0xf] }
0x1083   : > { %2292 = vmatpush.bf16.msra.mxu2 %v3235_v39  ;;  %v3158_v39 = vld [vmem:[#allocation8 + $0x48] sm:$0xf] }
0x108b   : > { %3113 = vmatmul.msk.bf16.vlgmr.msrb.gmra.mxu2 %vm773_vm4, %v1962_v40  ;;  %v3239_v40 = vor.u32 %v3435_v38, %v3238_v37  ;;  %v3151_v37 = vor.u32 %v3414_v35, %v3150_v34  ;;  %v3152_v38 = vld [vmem:[#allocation8 + $0x50] sm:$0xf0] }
0x10f2   : > { %v1798_v41 = vpop.f32.mrf.mxu3 }
0x10f3   : > { %v1802_v42 = vadd.f32 %v1798_v41, %v4345_v60  ;;  %v3433_v41 = vld [vmem:[#allocation8 + $0xec] sm:$0xf] }
0x10fa   : > { %v1800_v43 = vpop.f32.mrf.mxu3 }
0x10fe   : > { %v1877_v19 = vpop.f32.mrf.mxu2 }
0x10ff   : > { %v1881_v45 = vadd.f32 %v1877_v19, %v1802_v42  ;;  %v3240_v42 = vld [vmem:[#allocation8 + $0xf8] sm:$0xf0] }
0x1100   : > { %v3243_v43 = vor.u32 %v3433_v41, %v3240_v42  ;;  %v3155_v41 = vor.u32 %v3412_v36, %v3152_v38 }
0x1102   : > { %v1901_v46 = vpop.f32.mrf.mxu3 }
0x1103   : > { %v1905_v31 = vsel %vm773_vm4, %v1901_v46, -inf }
0x1104   : > { %1906 = vmax.xlane.f32.xlu0 %v1905_v31 }
0x1106   : > { %v1879_v47 = vpop.f32.mrf.mxu2 }
0x1107   : > { %v3214_v47 = vld [vmem:[#allocation8 + $0xc0] sm:$0xf] }
0x110a   : > { %v1903_v48 = vpop.f32.mrf.mxu3 }
0x110b   : > { %v3430_v48 = vld [vmem:[#allocation8 + $0xcc] sm:$0xf0] }
0x110e   : > { %v1980_v50 = vpop.f32.mrf.mxu2 }
0x110f   : > { %v1984_v51 = vsel %vm773_vm4, %v1980_v50, -inf }
0x1110   : > { %1985 = vmax.xlane.f32.xlu2 %v1984_v51  ;;  %v3215_v51 = vor.u32 %v3430_v48, %v3214_v47  ;;  %v3410_v47 = vld [vmem:[#allocation8 + $0x2c] sm:$0xf0]  ;;  %v3408_v48 = vld [vmem:[#allocation8 + $0x24] sm:$0xf] }
0x1112   : > { %2280 = vmatpush.bf16.msra.mxu1 %v3215_v51  ;;  %v3136_v51 = vld [vmem:[#allocation8 + $0x30] sm:$0xf0] }
0x1116   : > { %v1982_v52 = vpop.f32.mrf.mxu2 }
0x1117   : > { %v3216_v52 = vld [vmem:[#allocation8 + $0xd0] sm:$0xf0] }
0x1118   : > { %1996 = vrot.lane.b32.xlu0 %v4186_v44, %s3916_s21  ;;  %s4604_s21 = sld [smem:[#allocation23_spill]] }
0x111e   : > { %s2843_s3 = scalar_lea.hbm %s4604_s21, %s3377_s9  ;;  %s3835_s11 = scalar_lea.hbm %s4604_s21, 16 }
0x111f   : > { %s2847_s30 = sshll.u32 %s2843_s3, 4  ;;  %s2848_s30 = int_to_ptr.hbm [resolvable:$true] %s2847_s30 }
0x1120   : > { %s3829_s13 = sshra.s32 %s2848_s30, 4  ;;  %s3830_s13 = int_to_ptr.hbm [resolvable:$true] %s3829_s13 }
0x1121   : > { %s3831_s23 = scalar_lea.hbm %s3830_s13, 8  ;;  %p3836_p12 = scmp.lt.s32.totalorder %s3830_s13, %s4604_s21 }
0x1122   : > { %p3832_p1 = scmp.ne.s32.totalorder %s3830_s13, %s3831_s23  ;;  %p3837_p7 = scmp.lt.s32.totalorder %s3835_s11, %s3831_s23 }
0x1124   : > { %p3833_p3 = pnand %p3832_p1, %p4075_p4  ;;  %p3838_p8 = por %p3837_p7, %p3836_p12 }
0x1126   : > { %p3834_p5 = pneg %p3833_p3 }
0x1128   : > { %p3839_p9 = pnand %p3838_p8, %p3834_p5 }
0x1177   : > { %v1907_v53 = vpop.xlane.xlu0 %1906 }
0x1178   : > { %v1908_v54 = vsub.f32 %v1901_v46, %v1907_v53  ;;  %v3222_v53 = vld [vmem:[#allocation8 + $0xc8] sm:$0xf] }
0x117a   : > { %v1909_v55 = vmul.f32 1.442695, %v1908_v54  ;;  %v3431_v54 = vld [vmem:[#allocation8 + $0xd4] sm:$0xf0] }
0x117c   : > { %3644 = vpow2.f32 %v1909_v55 }
0x1182   : > { %v3645_v56 = vpop.eup %3644 }
0x1183   : > { %v1986_v58 = vpop.xlane.xlu2 %1985  ;;  %v1911_v59 = vsel %vm773_vm4, %v3645_v56, 0.0 }
0x1184   : > { %v1987_v60 = vsub.f32 %v1980_v50, %v1986_v58  ;;  %1912 = vadd.xlane.f32.xlu2 %v1911_v59  ;;  %v3428_v50 = vld [vmem:[#allocation8 + $0xc4] sm:$0xf]  ;;  %v3429_v58 = vld [vmem:[#allocation8 + $0xcc] sm:$0xf]  ;;  %v3224_v59 = vld [vmem:[#allocation8 + $0xd8] sm:$0xf0] }
0x1185   : > { %v3219_v55 = vor.u32 %v3428_v50, %v3216_v52  ;;  %v3142_v52 = vld [vmem:[#allocation8 + $0x28] sm:$0xf] }
0x1186   : > { %v1988_v61 = vmul.f32 1.442695, %v1987_v60  ;;  %v3227_v60 = vor.u32 %v3429_v58, %v3224_v59  ;;  %v3144_v58 = vld [vmem:[#allocation8 + $0x38] sm:$0xf0] }
0x1187   : > { %2293 = vmatpush.bf16.msra.mxu2 %v3219_v55 }
0x1188   : > { %3646 = vpow2.f32 %v1988_v61  ;;  %v3198_v61 = vld [vmem:[#allocation8 + $0xa0] sm:$0xf] }
0x118a   : > { %v1997_v62 = vpop.permute.xlu0 %1996 }
0x118b   : > { %v2002_v63 = vsel %vm809_vm5, %v1997_v62, 0  ;;  %v3426_v62 = vld [vmem:[#allocation8 + $0xac] sm:$0xf0] }
0x118c   : > { %2011 = vmatpush.bf16.msrb.mxu3 %v2002_v63  ;;  %v3424_v63 = vld [vmem:[#allocation8 + $0xa4] sm:$0xf] }
0x118e   : > { %v3647_v0 = vpop.eup %3646 }
0x118f   : > { %v1990_v1 = vsel %vm773_vm4, %v3647_v0, 0.0 }
0x1190   : > { %1991 = vadd.xlane.f32.xlu1 %v1990_v1  ;;  %2305 = vmatpush.bf16.msra.mxu3 %v3239_v40  ;;  %v3200_v1 = vld [vmem:[#allocation8 + $0xb0] sm:$0xf0]  ;;  %v3415_v40 = vld [vmem:[#allocation8 + $0x54] sm:$0xf0] }
0x1191   : > { %v3159_v42 = vor.u32 %v3415_v40, %v3158_v39  ;;  %v3442_v39 = vld [vmem:[#allocation10 + $0x30] sm:$0xff] }
0x1192   : > { %v3466_v40 = vld [vmem:[#allocation10 + $0xf0] sm:$0xff] }
0x11a9   : > { %1917 = vrot.lane.b32.xlu1 %v4186_v44, %s3915_s17  ;;  %v2024_v44 = vsel %vm809_vm5, %v2019_v12, 0 }
0x11f7   : > { %v1913_v6 = vpop.xlane.xlu2 %1912 }
0x1203   : > { %v1992_v2 = vpop.xlane.xlu1 %1991 }
0x1204   : > { %3648 = vrcp.f32 %v1992_v2  ;;  %v3206_v2 = vld [vmem:[#allocation8 + $0xa8] sm:$0xf] }
0x1205   : > { %3650 = vrcp.f32 %v1913_v6  ;;  %v3425_v6 = vld [vmem:[#allocation8 + $0xac] sm:$0xf] }
0x120a   : > { %v3649_v3 = vpop.eup %3648 }
0x120b   : > { %v1994_v4 = vmul.f32 %v3649_v3, %v3647_v0  ;;  %v3651_v7 = vpop.eup %3650  ;;  %v3199_v0 = vor.u32 %v3426_v62, %v3198_v61  ;;  %v3427_v3 = vld [vmem:[#allocation8 + $0xb4] sm:$0xf0]  ;;  %v3406_v61 = vld [vmem:[#allocation8 + $0xc] sm:$0xf0]  ;;  %v3404_v62 = vld [vmem:[#allocation8 + $0x4] sm:$0xf] }
0x120c   : > { %v1915_v8 = vmul.f32 %v3651_v7, %v3645_v56  ;;  %v3223_v56 = vor.u32 %v3431_v54, %v3222_v53  ;;  %v3208_v7 = vld [vmem:[#allocation8 + $0xb8] sm:$0xf0]  ;;  %v3411_v53 = vld [vmem:[#allocation8 + $0x34] sm:$0xf0]  ;;  %v3139_v54 = vor.u32 %v3408_v48, %v3136_v51  ;;  %v3441_v51 = vld [vmem:[#allocation10 + $0x28] sm:$0xff] }
0x120d   : > { %v1995_v5 = vpack.c.bf16 %v1994_v4, %v1994_v4  ;;  %v3203_v4 = vor.u32 %v3424_v63, %v3200_v1  ;;  %2281 = vmatpush.bf16.msra.mxu1 %v3199_v0  ;;  %v3143_v55 = vor.u32 %v3411_v53, %v3142_v52  ;;  %v3120_v0 = vld [vmem:[#allocation8 + $0x10] sm:$0xf0]  ;;  %v3126_v1 = vld [vmem:[#allocation8 + $0x8] sm:$0xf] }
0x120e   : > { %v1916_v11 = vpack.c.bf16 %v1915_v8, %v1915_v8  ;;  %2306 = vmatpush.bf16.msra.mxu3 %v3223_v56  ;;  %v3211_v8 = vor.u32 %v3425_v6, %v3208_v7  ;;  %v3409_v56 = vld [vmem:[#allocation8 + $0x2c] sm:$0xf]  ;;  %v3128_v6 = vld [vmem:[#allocation8 + $0x18] sm:$0xf0] }
0x120f   : > { %3114 = vmatmul.msk.bf16.vlgmr.msrb.gmra.mxu3 %vm773_vm4, %v1995_v5  ;;  %v3207_v5 = vor.u32 %v3427_v3, %v3206_v2  ;;  %2294 = vmatpush.bf16.msra.mxu2 %v3203_v4  ;;  %v3147_v59 = vor.u32 %v3409_v56, %v3144_v58  ;;  %v3407_v2 = vld [vmem:[#allocation8 + $0x14] sm:$0xf0]  ;;  %v3123_v3 = vor.u32 %v3404_v62, %v3120_v0  ;;  %v3465_v52 = vld [vmem:[#allocation10 + $0xe8] sm:$0xff] }
0x1210   : > { %v3127_v4 = vor.u32 %v3407_v2, %v3126_v1 }
0x1212   : > { %2307 = vmatpush.bf16.msra.mxu3 %v3207_v5  ;;  %v3405_v5 = vld [vmem:[#allocation8 + $0xc] sm:$0xf] }
0x1213   : > { %v3131_v7 = vor.u32 %v3405_v5, %v3128_v6  ;;  %v3440_v5 = vld [vmem:[#allocation10 + $0x20] sm:$0xff] }
0x121b   : > { %v1918_v9 = vpop.permute.xlu1 %1917 }
0x121c   : > { %v1923_v10 = vsel %vm809_vm5, %v1918_v9, 0  ;;  %v3182_v9 = vld [vmem:[#allocation8 + $0x80] sm:$0xf] }
0x121d   : > { %1932 = vmatpush.bf16.msrb.mxu0 %v1923_v10  ;;  %v3422_v10 = vld [vmem:[#allocation8 + $0x8c] sm:$0xf0] }
0x121e   : > { %v3183_v12 = vor.u32 %v3422_v10, %v3182_v9 }
0x1220   : > { %3111 = vmatmul.msk.bf16.vlgmr.msrb.gmra.mxu0 %vm773_vm4, %v1916_v11  ;;  %v3420_v11 = vld [vmem:[#allocation8 + $0x84] sm:$0xf]  ;;  %2282 = vmatpush.bf16.msra.mxu1 %v3183_v12 }
0x1221   : > { %2033 = vmatpush.bf16.msra.mxu0 %v2024_v44  ;;  %v3184_v44 = vld [vmem:[#allocation8 + $0x90] sm:$0xf0] }
0x1225   : > { %2318 = vmatpush.bf16.msrb.mxu0 %v3243_v43  ;;  %v3413_v43 = vld [vmem:[#allocation8 + $0x4c] sm:$0xf] }
0x1229   : > { %2319 = vmatpush.bf16.msrb.mxu0 %v3227_v60  ;;  %v3118_v60 = vld [vmem:[#allocation8] sm:$0xf] }
0x122a   : > { %v3119_v63 = vor.u32 %v3406_v61, %v3118_v60  ;;  %v3450_v60 = vld [vmem:[#allocation10 + $0x70] sm:$0xff] }
0x122b   : > { %v3458_v61 = vld [vmem:[#allocation10 + $0xb0] sm:$0xff] }
0x122d   : > { %2320 = vmatpush.bf16.msrb.mxu0 %v3211_v8 }
0x1292   : > { %v2013_v15 = vpop.f32.mrf.mxu3 }
0x1293   : > { %v2017_v17 = vpack.c.bf16 %v2013_v15, %v2013_v15  ;;  %v3187_v15 = vor.u32 %v3420_v11, %v3184_v44 }
0x1295   : > { %3115 = vmatmul.msk.bf16.vlgmr.msra.gmra.mxu0 %vm773_vm4, %v2017_v17  ;;  %v3191_v17 = vor.u32 %v3423_v14, %v3190_v13  ;;  %2295 = vmatpush.bf16.msra.mxu2 %v3187_v15 }
0x1297   : > { %2308 = vmatpush.bf16.msra.mxu3 %v3191_v17  ;;  %v3581_v17 = vld [vmem:[%s4574_s7] ss:$0 sm:$0xff] }
0x129a   : > { %v2015_v18 = vpop.f32.mrf.mxu3 }
0x129b   : > { %v3421_v18 = vld [vmem:[#allocation8 + $0x8c] sm:$0xf] }
0x129d   : > { %v1934_v20 = vpop.f32.mrf.mxu0 }
0x129e   : > { %v1938_v21 = vpack.c.bf16 %v1934_v20, %v1934_v20  ;;  %v3192_v20 = vld [vmem:[#allocation8 + $0x98] sm:$0xf0] }
0x12a0   : > { %3112 = vmatmul.msk.bf16.vlgmr.msrb.gmra.mxu1 %vm773_vm4, %v1938_v21  ;;  %v3195_v21 = vor.u32 %v3421_v18, %v3192_v20 }
0x12a2   : > { %2321 = vmatpush.bf16.msrb.mxu0 %v3195_v21 }
0x12a5   : > { %v1936_v22 = vpop.f32.mrf.mxu0 }
0x12a6   : > { %v3166_v22 = vld [vmem:[#allocation8 + $0x60] sm:$0xf] }
0x1312   : > { %v2035_v23 = vpop.f32.mrf.mxu0 }
0x131a   : > { %v2037_v24 = vpop.f32.mrf.mxu0 }
0x131b   : > { %v3416_v24 = vld [vmem:[#allocation8 + $0x64] sm:$0xf] }
0x131d   : > { %v1956_v25 = vpop.f32.mrf.mxu1 }
0x131e   : > { %v1960_v26 = vadd.f32 %v1956_v25, %v1881_v45 }
0x1320   : > { %v2039_v27 = vadd.f32 %v2035_v23, %v1960_v26  ;;  %v3418_v23 = vld [vmem:[#allocation8 + $0x6c] sm:$0xf0]  ;;  %v3168_v26 = vld [vmem:[#allocation8 + $0x70] sm:$0xf0] }
0x1321   : > { %v3167_v25 = vor.u32 %v3418_v23, %v3166_v22 }
0x1322   : > { %v2040_v29 = vadd.f32 %v3664_v49, %v2039_v27  ;;  %v3174_v27 = vld [vmem:[#allocation8 + $0x68] sm:$0xf]  ;;  %v3171_v49 = vor.u32 %v3416_v24, %v3168_v26  ;;  %v3917_v24 = vmov 1.4142135  }
0x1323   : > { %2283 = vmatpush.bf16.msra.mxu1 %v3167_v25 }
0x1324   : > { %v4395_v57 = vadd.f32 %v3580_v28, %v2040_v29  ;;  %v3419_v28 = vld [vmem:[#allocation8 + $0x74] sm:$0xf0]  ;;  %2296 = vmatpush.bf16.msra.mxu2 %v3171_v49 }
0x1325   : > { %v1958_v30 = vpop.f32.mrf.mxu1  ;;  %v3175_v29 = vor.u32 %v3419_v28, %v3174_v27 }
0x1326   : > { %2048 = vadd.xlane.f32.xlu2 %v4395_v57  ;;  %v3417_v30 = vld [vmem:[#allocation8 + $0x6c] sm:$0xf] }
0x1327   : > { %v3179_v33 = vor.u32 %v3417_v30, %v3176_v32  ;;  %2309 = vmatpush.bf16.msra.mxu3 %v3175_v29  ;;  %2284 = vmatpush.bf16.msra.mxu1 %v3151_v37  ;;  %v3443_v32 = vld [vmem:[#allocation10 + $0x38] sm:$0xff] }
0x1328   : > { %2297 = vmatpush.bf16.msra.mxu2 %v3155_v41 }
0x1329   : > { %2322 = vmatpush.bf16.msrb.mxu0 %v3179_v33  ;;  %v3467_v33 = vld [vmem:[#allocation10 + $0xf8] sm:$0xff] }
0x132b   : > { %2310 = vmatpush.bf16.msra.mxu3 %v3159_v42 }
0x132c   : > { %2298 = vmatpush.bf16.msra.mxu2 %v3139_v54 }
0x132f   : > { %2311 = vmatpush.bf16.msra.mxu3 %v3143_v55 }
0x1330   : > { %2299 = vmatpush.bf16.msra.mxu2 %v3123_v3 }
0x1333   : > { %2312 = vmatpush.bf16.msra.mxu3 %v3127_v4 }
0x1399   : > { %v2049_v19 = vpop.xlane.xlu2 %2048 }
0x139a   : > { %v2050_v45 = vmul.f32 %v2049_v19, %v4127_v16  ;;  %v3160_v19 = vld [vmem:[#allocation8 + $0x58] sm:$0xf0] }
0x139c   : > { %v4400_v46 = vsub.f32 %v4395_v57, %v2050_v45  ;;  %v3163_v45 = vor.u32 %v3413_v43, %v3160_v19 }
0x139e   : > { %v2052_v31 = vmul.f32 %v4400_v46, %v4400_v46  ;;  %2323 = vmatpush.bf16.msrb.mxu0 %v3163_v45  ;;  %v3451_v45 = vld [vmem:[#allocation10 + $0x78] sm:$0xff] }
0x139f   : > { %2791 = vmatpush.bf16.msrb.mxu2 %v3451_v45  ;;  %v3462_v45 = vld [vmem:[#allocation10 + $0xd0] sm:$0xff] }
0x13a0   : > { %2053 = vadd.xlane.f32.xlu2 %v2052_v31  ;;  %v3134_v31 = vld [vmem:[#allocation8 + $0x20] sm:$0xf] }
0x13a1   : > { %v3135_v50 = vor.u32 %v3410_v47, %v3134_v31  ;;  %v3459_v31 = vld [vmem:[#allocation10 + $0xb8] sm:$0xff] }
0x13a2   : > { %2324 = vmatpush.bf16.msrb.mxu0 %v3147_v59  ;;  %2804 = vmatpush.bf16.msrb.mxu3 %v3459_v31 }
0x13a3   : > { %2285 = vmatpush.bf16.msra.mxu1 %v3135_v50  ;;  %2792 = vmatpush.bf16.msrb.mxu2 %v3450_v60 }
0x13a6   : > { %2325 = vmatpush.bf16.msrb.mxu0 %v3131_v7  ;;  %2805 = vmatpush.bf16.msrb.mxu3 %v3458_v61  ;;  %v3447_v61 = vld [vmem:[#allocation10 + $0x58] sm:$0xff] }
0x13a7   : > { %2286 = vmatpush.bf16.msra.mxu1 %v3119_v63 }
0x13aa   : > { %2817 = vmatpush.bf16.msra.mxu0 %v3467_v33 }
0x13ab   : > { %2778 = vmatpush.bf16.msrb.mxu1 %v3443_v32 }
0x13ae   : > { %2818 = vmatpush.bf16.msra.mxu0 %v3466_v40 }
0x13af   : > { %2779 = vmatpush.bf16.msrb.mxu1 %v3442_v39 }
0x13b2   : > { %2819 = vmatpush.bf16.msra.mxu0 %v3465_v52 }
0x13b3   : > { %2780 = vmatpush.bf16.msrb.mxu1 %v3441_v51 }
0x13b7   : > { %2781 = vmatpush.bf16.msrb.mxu1 %v3440_v5  ;;  %v3437_v5 = vld [vmem:[#allocation10 + $0x8] sm:$0xff] }
0x1413   : > { %v2054_v8 = vpop.xlane.xlu2 %2053 }
0x1414   : > { %v2055_v9 = vmul.f32 %v2054_v8, %v4127_v16  ;;  %v3582_v16 = vld [vmem:[%s4575_s8] ss:$0 sm:$0xff] }
0x1416   : > { %v2056_v10 = vadd.f32 1e-05, %v2055_v9  ;;  %v3464_v9 = vld [vmem:[#allocation10 + $0xe0] sm:$0xff] }
0x1417   : > { %2820 = vmatpush.bf16.msra.mxu0 %v3464_v9 }
0x1418   : > { %3652 = vrsqrt.f32 %v2056_v10  ;;  %vm2063_vm7 = vweird.f32 %v2056_v10 }
0x1419   : > { %3654 = vrcp.f32 %v3917_v24 }
0x141e   : > { %v3653_v11 = vpop.eup %3652 }
0x141f   : > { %v2058_v12 = vmul.f32 %v3653_v11, %v2056_v10  ;;  %vm2064_vm6 = vweird.f32 %v3653_v11  ;;  %v3655_v25 = vpop.eup %3654 }
0x1420   : > { %vm2065_vm8 = vmor %vm2063_vm7, %vm2064_vm6  ;;  %v2336_v26 = vmul.f32 1.4142135, %v3655_v25  ;;  %vm2340_vm9 = vweird.f32 %v3655_v25 }
0x1421   : > { %v2059_v44 = vmul.f32 %v3653_v11, %v2058_v12 }
0x1422   : > { %v2337_v27 = vsub.f32 1.0, %v2336_v26 }
0x1423   : > { %v2060_v13 = vmul.f32 0.5, %v2059_v44  ;;  %v3449_v44 = vld [vmem:[#allocation10 + $0x68] sm:$0xff] }
0x1424   : > { %v2338_v28 = vmul.f32 %v3655_v25, %v2337_v27  ;;  %2793 = vmatpush.bf16.msrb.mxu2 %v3449_v44 }
0x1425   : > { %v2061_v14 = vsub.f32 1.5, %v2060_v13  ;;  %v3457_v13 = vld [vmem:[#allocation10 + $0xa8] sm:$0xff] }
0x1426   : > { %v2339_v49 = vadd.f32 %v3655_v25, %v2338_v28  ;;  %2806 = vmatpush.bf16.msrb.mxu3 %v3457_v13 }
0x1427   : > { %v2062_v15 = vmul.f32 %v3653_v11, %v2061_v14 }
0x1428   : > { %v2341_v35 = vsel %vm2340_vm9, %v3655_v25, %v2339_v49 }
0x1429   : > { %v2066_v18 = vsel %vm2065_vm8, %v3653_v11, %v2062_v15 }
0x142a   : > { %v2067_v20 = vmul.f32 %v2066_v18, %v4400_v46  ;;  %v2109_v46 = vld [vmem:[%s4577_s10] sm:$0xf] }
0x142b   : > { %v2111_v29 = vperm.slane %v2109_v46, 0  ;;  %v2114_v30 = vperm.slane %v2109_v46, 3  ;;  %v2112_v42 = vperm.slane %v2109_v46, 1  ;;  %v2113_v19 = vperm.slane %v2109_v46, 2 }
0x142c   : > { %v2071_v21 = vmul.f32 %v3581_v17, %v2067_v20 }
0x142e   : > { %v2075_v22 = vadd.f32 %v3582_v16, %v2071_v21 }
0x1430   : > { %v2076_v23 = vpack.c.bf16 %v2075_v22, %v2075_v22  ;;  %v3439_v22 = vld [vmem:[#allocation10 + $0x18] sm:$0xff] }
0x1431   : > { %2782 = vmatpush.bf16.msrb.mxu1 %v3439_v22 }
0x1432   : > { %2287 = vmatmul.bf16.vlgmr.msra.gmra.mxu1 %v2076_v23  ;;  %2300 = vmatmul.bf16.vlgmr.msra.gmra.mxu2 %v2076_v23 }
0x1433   : > { %2313 = vmatmul.bf16.vlgmr.msra.gmra.mxu3 %v2076_v23  ;;  %2326 = vmatmul.bf16.vlgmr.msrb.gmra.mxu0 %v2076_v23  ;;  %v3463_v23 = vld [vmem:[#allocation10 + $0xd8] sm:$0xff] }
0x1434   : > { %2821 = vmatpush.bf16.msra.mxu0 %v3463_v23  ;;  %v3436_v23 = vld [vmem:[#allocation10] sm:$0xff] }
0x1438   : > { %2822 = vmatpush.bf16.msra.mxu0 %v3462_v45 }
0x14af   : > { %v2288_v34 = vpop.f32.mrf.mxu1 }
0x14b0   : > { %v4415_v36 = vadd.f32 %v2288_v34, %v2111_v29  ;;  %v2327_v37 = vpop.f32.mrf.mxu0  ;;  %v3448_v34 = vld [vmem:[#allocation10 + $0x60] sm:$0xff] }
0x14b1   : > { %v4417_v38 = vadd.f32 %v2327_v37, %v2114_v30  ;;  %2794 = vmatpush.bf16.msrb.mxu2 %v3448_v34 }
0x14b2   : > { %v4420_v41 = vmul.f32 %v2341_v35, %v4415_v36 }
0x14b3   : > { %v4423_v43 = vmul.f32 %v2341_v35, %v4417_v38 }
0x14b4   : > { %v2346_v47 = vmul.f32 %v4420_v41, %v4420_v41 }
0x14b5   : > { %v2466_v48 = vmul.f32 %v4423_v43, %v4423_v43  ;;  %v2301_v50 = vpop.f32.mrf.mxu2  ;;  %2795 = vmatpush.bf16.msrb.mxu2 %v3447_v61 }
0x14b6   : > { %v4429_v53 = vmin.f32 %v2346_v47, 16.0  ;;  %v4431_v54 = vadd.f32 %v2301_v50, %v2112_v42  ;;  %v2314_v55 = vpop.f32.mrf.mxu3 }
0x14b7   : > { %v4433_v56 = vmin.f32 %v2466_v48, 16.0  ;;  %v4435_v58 = vadd.f32 %v2314_v55, %v2113_v19  ;;  %v2290_v59 = vpop.f32.mrf.mxu1  ;;  %v3438_v19 = vld [vmem:[#allocation10 + $0x10] sm:$0xff] }
0x14b8   : > { %v2348_v62 = vmul.f32 2.1237322e-06, %v4429_v53  ;;  %v2359_v63 = vmul.f32 3.8918573e-05, %v4429_v53  ;;  %v4440_v0 = vmul.f32 %v2341_v35, %v4431_v54  ;;  %v2329_v1 = vpop.f32.mrf.mxu0  ;;  %2783 = vmatpush.bf16.msrb.mxu1 %v3438_v19 }
0x14b9   : > { %v2468_v2 = vmul.f32 2.1237322e-06, %v4433_v56  ;;  %v2479_v3 = vmul.f32 3.8918573e-05, %v4433_v56  ;;  %v4445_v4 = vmul.f32 %v2341_v35, %v4435_v58  ;;  %v3456_v35 = vld [vmem:[#allocation10 + $0xa0] sm:$0xff] }
0x14ba   : > { %v2349_v6 = vadd.f32 0.00028619796, %v2348_v62  ;;  %v2360_v7 = vadd.f32 0.001143296, %v2359_v63  ;;  %v2386_v8 = vmul.f32 %v4440_v0, %v4440_v0  ;;  %2807 = vmatpush.bf16.msrb.mxu3 %v3456_v35  ;;  %v3455_v62 = vld [vmem:[#allocation10 + $0x98] sm:$0xff] }
0x14bb   : > { %v2469_v10 = vadd.f32 0.00028619796, %v2468_v2  ;;  %v2480_v11 = vadd.f32 0.001143296, %v2479_v3  ;;  %v2426_v12 = vmul.f32 %v4445_v4, %v4445_v4 }
0x14bc   : > { %v2350_v14 = vmul.f32 %v2349_v6, %v4429_v53  ;;  %v2361_v15 = vmul.f32 %v2360_v7, %v4429_v53  ;;  %v4453_v17 = vmin.f32 %v2386_v8, 16.0  ;;  %v3461_v6 = vld [vmem:[#allocation10 + $0xc8] sm:$0xff]  ;;  %2784 = vmatpush.bf16.msrb.mxu1 %v3437_v5 }
0x14bd   : > { %v2470_v18 = vmul.f32 %v2469_v10, %v4433_v56  ;;  %v2481_v20 = vmul.f32 %v2480_v11, %v4433_v56  ;;  %v4457_v16 = vmin.f32 %v2426_v12, 16.0  ;;  %v2303_v21 = vpop.f32.mrf.mxu2  ;;  %2823 = vmatpush.bf16.msra.mxu0 %v3461_v6 }
0x14be   : > { %v2351_v24 = vadd.f32 0.0036580483, %v2350_v14  ;;  %v2362_v25 = vadd.f32 0.014752088, %v2361_v15  ;;  %v2388_v26 = vmul.f32 2.1237322e-06, %v4453_v17  ;;  %v2316_v27 = vpop.f32.mrf.mxu3  ;;  %2808 = vmatpush.bf16.msrb.mxu3 %v3455_v62 }
0x14bf   : > { %v2471_v28 = vadd.f32 0.0036580483, %v2470_v18  ;;  %v2482_v46 = vadd.f32 0.014752088, %v2481_v20  ;;  %v2399_v49 = vmul.f32 3.8918573e-05, %v4453_v17 }
0x14c0   : > { %v2352_v29 = vmul.f32 %v2351_v24, %v4429_v53  ;;  %v2363_v30 = vmul.f32 %v2362_v25, %v4429_v53  ;;  %v2389_v32 = vadd.f32 0.00028619796, %v2388_v26  ;;  %v2428_v33 = vmul.f32 2.1237322e-06, %v4457_v16  ;;  %v3446_v14 = vld [vmem:[#allocation10 + $0x50] sm:$0xff]  ;;  %v3460_v24 = vld [vmem:[#allocation10 + $0xc0] sm:$0xff]  ;;  %2785 = vmatpush.bf16.msrb.mxu1 %v3436_v23 }
0x14c1   : > { %v2472_v37 = vmul.f32 %v2471_v28, %v4433_v56  ;;  %v2483_v39 = vmul.f32 %v2482_v46, %v4433_v56  ;;  %v2400_v40 = vadd.f32 0.001143296, %v2399_v49  ;;  %v2439_v42 = vmul.f32 3.8918573e-05, %v4457_v16  ;;  %v3454_v15 = vld [vmem:[#allocation10 + $0x90] sm:$0xff]  ;;  %2796 = vmatpush.bf16.msrb.mxu2 %v3446_v14  ;;  %v3445_v49 = vld [vmem:[#allocation10 + $0x48] sm:$0xff]  ;;  %2824 = vmatpush.bf16.msra.mxu0 %v3460_v24 }
0x14c2   : > { %v2364_v31 = vadd.f32 0.112945676, %v2363_v30  ;;  %v2429_v47 = vadd.f32 0.00028619796, %v2428_v33  ;;  %v2390_v50 = vmul.f32 %v2389_v32, %v4453_v17  ;;  %v2353_v55 = vadd.f32 0.05243302, %v2352_v29  ;;  %2809 = vmatpush.bf16.msrb.mxu3 %v3454_v15 }
0x14c3   : > { %v2484_v48 = vadd.f32 0.112945676, %v2483_v39  ;;  %v2401_v51 = vmul.f32 %v2400_v40, %v4453_v17  ;;  %v2440_v52 = vadd.f32 0.001143296, %v2439_v42  ;;  %v2473_v60 = vadd.f32 0.05243302, %v2472_v37 }
0x14c4   : > { %v2365_v59 = vmul.f32 %v2364_v31, %v4429_v53  ;;  %v2430_v2 = vmul.f32 %v2429_v47, %v4457_v16  ;;  %v2391_v9 = vadd.f32 0.0036580483, %v2390_v50  ;;  %v2354_v12 = vmul.f32 %v2353_v55, %v4429_v53  ;;  %v3453_v30 = vld [vmem:[#allocation10 + $0x88] sm:$0xff]  ;;  %v3444_v39 = vld [vmem:[#allocation10 + $0x40] sm:$0xff] }
0x14c5   : > { %v2485_v63 = vmul.f32 %v2484_v48, %v4433_v56  ;;  %v2402_v1 = vadd.f32 0.014752088, %v2401_v51  ;;  %v2441_v3 = vmul.f32 %v2440_v52, %v4457_v16  ;;  %v2474_v13 = vmul.f32 %v2473_v60, %v4433_v56  ;;  %2797 = vmatpush.bf16.msrb.mxu2 %v3445_v49  ;;  %v3452_v40 = vld [vmem:[#allocation10 + $0x80] sm:$0xff] }
0x14c6   : > { %v2366_v7 = vadd.f32 0.4994258, %v2365_v59  ;;  %v2431_v21 = vadd.f32 0.0036580483, %v2430_v2  ;;  %v2392_v27 = vmul.f32 %v2391_v9, %v4453_v17  ;;  %v2355_v29 = vadd.f32 0.18741608, %v2354_v12  ;;  %2810 = vmatpush.bf16.msrb.mxu3 %v3453_v30 }
0x14c7   : > { %v2486_v8 = vadd.f32 0.4994258, %v2485_v63  ;;  %v2403_v10 = vmul.f32 %v2402_v1, %v4453_v17  ;;  %v2442_v11 = vadd.f32 0.014752088, %v2441_v3  ;;  %v2475_v32 = vadd.f32 0.18741608, %v2474_v13 }
0x14c8   : > { %v2367_v44 = vmul.f32 %v2366_v7, %v4429_v53  ;;  %v2432_v33 = vmul.f32 %v2431_v21, %v4457_v16  ;;  %v2393_v34 = vadd.f32 0.05243302, %v2392_v27  ;;  %v2356_v42 = vmul.f32 %v2355_v29, %v4429_v53 }
0x14c9   : > { %v2487_v18 = vmul.f32 %v2486_v8, %v4433_v56  ;;  %v2404_v20 = vadd.f32 0.112945676, %v2403_v10  ;;  %v2443_v22 = vmul.f32 %v2442_v11, %v4457_v16  ;;  %v2476_v19 = vmul.f32 %v2475_v32, %v4433_v56  ;;  %2798 = vmatpush.bf16.msrb.mxu2 %v3444_v39 }
0x14ca   : > { %v4479_v25 = vadd.f32 1.0, %v2367_v44  ;;  %v2433_v31 = vadd.f32 0.05243302, %v2432_v33  ;;  %2811 = vmatpush.bf16.msrb.mxu3 %v3452_v40  ;;  %v2394_v52 = vmul.f32 %v2393_v34, %v4453_v17  ;;  %v2357_v59 = vadd.f32 1.1283791, %v2356_v42 }
0x14cb   : > { %v4481_v26 = vadd.f32 1.0, %v2487_v18  ;;  %v2405_v28 = vmul.f32 %v2404_v20, %v4453_v17  ;;  %v2444_v46 = vadd.f32 0.112945676, %v2443_v22  ;;  %v2477_v61 = vadd.f32 1.1283791, %v2476_v19 }
0x14cc   : > { %3656 = vrcp.f32 %v4479_v25  ;;  %v2434_v62 = vmul.f32 %v2433_v31, %v4457_v16  ;;  %v2378_v63 = vand.u32 2147483647, %v4479_v25  ;;  %v2380_v1 = vand.u32 2147483648, %v4479_v25 }
0x14cd   : > { %3658 = vrcp.f32 %v4481_v26  ;;  %v2406_v35 = vadd.f32 0.4994258, %v2405_v28  ;;  %v2445_v37 = vmul.f32 %v2444_v46, %v4457_v16  ;;  %v2500_v6 = vand.u32 2147483648, %v4481_v26 }
0x14ce   : > { %v2395_v7 = vadd.f32 0.18741608, %v2394_v52  ;;  %v2498_v9 = vand.u32 2147483647, %v4481_v26  ;;  %v2358_v10 = vmul.f32 %v2357_v59, %v4420_v41  ;;  %vm2374_vm12 = vweird.f32 %v4479_v25 }
0x14cf   : > { %v2407_v45 = vmul.f32 %v2406_v35, %v4453_v17  ;;  %v2446_v47 = vadd.f32 0.4994258, %v2445_v37  ;;  %v2435_v12 = vadd.f32 0.18741608, %v2434_v62  ;;  %v2381_v44 = vor.u32 1.1754944e-38, %v2380_v1 }
0x14d0   : > { %v2478_v13 = vmul.f32 %v2477_v61, %v4423_v43  ;;  %vm2494_vm14 = vweird.f32 %v4481_v26  ;;  %vm2379_vm15 = vcmp.eq.f32.partialorder %v2378_v63, 8.507059e+37  ;;  %v2501_v20 = vor.u32 1.1754944e-38, %v2500_v6 }
0x14d1   : > { %v4494_v55 = vadd.f32 1.0, %v2407_v45  ;;  %v2447_v53 = vmul.f32 %v2446_v47, %v4457_v16  ;;  %v2396_v21 = vmul.f32 %v2395_v7, %v4453_v17  ;;  %vm2499_vm1 = vcmp.eq.f32.partialorder %v2498_v9, 8.507059e+37 }
0x14d2   : > { %v3657_v48 = vpop.eup %3656  ;;  %v2436_v43 = vmul.f32 %v2435_v12, %v4457_v16  ;;  %v2334_v30 = vmul.f32 0.5, %v4417_v38  ;;  %v2332_v1 = vmul.f32 0.5, %v4431_v54  ;;  %v3583_v54 = vld [vmem:[%s4579_s12] ss:$0 sm:$0xff] }
0x14d3   : > { %v3659_v50 = vpop.eup %3658  ;;  %v2370_v51 = vmul.f32 %v3657_v48, %v4479_v25  ;;  %3660 = vrcp.f32 %v4494_v55  ;;  %v4502_v3 = vadd.f32 1.0, %v2447_v53  ;;  %vm2375_vm10 = vweird.f32 %v3657_v48 }
0x14d4   : > { %v2490_v60 = vmul.f32 %v3659_v50, %v4481_v26  ;;  %vm2495_vm11 = vweird.f32 %v3659_v50  ;;  %vm2376_vm13 = vmor %vm2374_vm12, %vm2375_vm10  ;;  %v2331_v26 = vmul.f32 0.5, %v4415_v36  ;;  %v2420_v49 = vand.u32 2147483648, %v4494_v55 }
0x14d5   : > { %v2371_v56 = vsub.f32 1.0, %v2370_v51  ;;  %3662 = vrcp.f32 %v4502_v3  ;;  %vm2496_vm0 = vmor %vm2494_vm14, %vm2495_vm11  ;;  %v2397_v17 = vadd.f32 1.1283791, %v2396_v21  ;;  %v2418_v35 = vand.u32 2147483647, %v4494_v55 }
0x14d6   : > { %v2491_v2 = vsub.f32 1.0, %v2490_v60  ;;  %vm2414_vm3 = vweird.f32 %v4494_v55  ;;  %v2437_v16 = vadd.f32 1.1283791, %v2436_v43  ;;  %v2421_v42 = vor.u32 1.1754944e-38, %v2420_v49 }
0x14d7   : > { %v2372_v5 = vmul.f32 %v3657_v48, %v2371_v56  ;;  %v2460_v19 = vand.u32 2147483648, %v4502_v3  ;;  %v2458_v31 = vand.u32 2147483647, %v4502_v3  ;;  %vm2419_vm6 = vcmp.eq.f32.partialorder %v2418_v35, 8.507059e+37 }
0x14d8   : > { %v2492_v8 = vmul.f32 %v3659_v50, %v2491_v2  ;;  %vm2454_vm7 = vweird.f32 %v4502_v3  ;;  %v2438_v56 = vmul.f32 %v2437_v16, %v4445_v4 }
0x14d9   : > { %v2373_v11 = vadd.f32 %v3657_v48, %v2372_v5  ;;  %v3661_v15 = vpop.eup %3660  ;;  %v2461_v53 = vor.u32 1.1754944e-38, %v2460_v19  ;;  %vm2459_vm9 = vcmp.eq.f32.partialorder %v2458_v31, 8.507059e+37 }
0x14da   : > { %v2493_v14 = vadd.f32 %v3659_v50, %v2492_v8  ;;  %v2410_v23 = vmul.f32 %v3661_v15, %v4494_v55  ;;  %vm2415_vm2 = vweird.f32 %v3661_v15 }
0x14db   : > { %v2377_v18 = vsel %vm2376_vm13, %v3657_v48, %v2373_v11  ;;  %v3663_v27 = vpop.eup %3662  ;;  %vm2416_vm4 = vmor %vm2414_vm3, %vm2415_vm2  ;;  %v2398_v48 = vmul.f32 %v2397_v17, %v4440_v0 }
0x14dc   : > { %v2382_v41 = vsel %vm2379_vm15, %v2381_v44, %v2377_v18  ;;  %v2497_v22 = vsel %vm2496_vm0, %v3659_v50, %v2493_v14  ;;  %v2411_v46 = vsub.f32 1.0, %v2410_v23  ;;  %v2450_v32 = vmul.f32 %v3663_v27, %v4502_v3 }
0x14dd   : > { %v2383_v24 = vmul.f32 %v2382_v41, %v2358_v10  ;;  %v2502_v25 = vsel %vm2499_vm1, %v2501_v20, %v2497_v22  ;;  %vm2455_vm5 = vweird.f32 %v3663_v27  ;;  %v2333_v3 = vmul.f32 0.5, %v4435_v58 }
0x14de   : > { %v2503_v28 = vmul.f32 %v2502_v25, %v2478_v13  ;;  %v2412_v34 = vmul.f32 %v3661_v15, %v2411_v46  ;;  %v2451_v36 = vsub.f32 1.0, %v2450_v32  ;;  %vm2456_vm8 = vmor %vm2454_vm7, %vm2455_vm5 }
0x14df   : > { %v3244_v29 = vclamps-f32 %v2383_v24, 1.0 }
0x14e0   : > { %v3247_v33 = vclamps-f32 %v2503_v28, 1.0  ;;  %v2413_v40 = vadd.f32 %v3661_v15, %v2412_v34  ;;  %v2452_v38 = vmul.f32 %v3663_v27, %v2451_v36 }
0x14e1   : > { %v2506_v37 = vadd.f32 1.0, %v3244_v29 }
0x14e2   : > { %v2509_v39 = vadd.f32 1.0, %v3247_v33  ;;  %v2417_v50 = vsel %vm2416_vm4, %v3661_v15, %v2413_v40  ;;  %v2453_v55 = vadd.f32 %v3663_v27, %v2452_v38 }
0x14e3   : > { %v2510_v45 = vmul.f32 %v2506_v37, %v2331_v26  ;;  %v2422_v52 = vsel %vm2419_vm6, %v2421_v42, %v2417_v50 }
0x14e4   : > { %v2513_v47 = vmul.f32 %v2509_v39, %v2334_v30  ;;  %v2423_v60 = vmul.f32 %v2422_v52, %v2398_v48  ;;  %v2457_v61 = vsel %vm2456_vm8, %v3663_v27, %v2453_v55 }
0x14e5   : > { %v2514_v51 = vpack.c.bf16 %v2510_v45, %v2510_v45  ;;  %v2462_v63 = vsel %vm2459_vm9, %v2461_v53, %v2457_v61 }
0x14e6   : > { %v2517_v59 = vpack.c.bf16 %v2513_v47, %v2513_v47  ;;  %v3245_v62 = vclamps-f32 %v2423_v60, 1.0  ;;  %v2463_v0 = vmul.f32 %v2462_v63, %v2438_v56 }
0x14e7   : > { %2786 = vmatmul.bf16.vlgmr.msrb.gmra.mxu1 %v2514_v51 }
0x14e8   : > { %2825 = vmatmul.bf16.vlgmr.msra.gmra.mxu0 %v2517_v59  ;;  %v2507_v2 = vadd.f32 1.0, %v3245_v62  ;;  %v3246_v5 = vclamps-f32 %v2463_v0, 1.0 }
0x14ea   : > { %v2511_v6 = vmul.f32 %v2507_v2, %v2332_v1  ;;  %v2508_v7 = vadd.f32 1.0, %v3246_v5 }
0x14ec   : > { %v2515_v8 = vpack.c.bf16 %v2511_v6, %v2511_v6  ;;  %v2512_v9 = vmul.f32 %v2508_v7, %v2333_v3 }
0x14ee   : > { %2799 = vmatmul.bf16.vlgmr.msrb.gmra.mxu2 %v2515_v8  ;;  %v2516_v4 = vpack.c.bf16 %v2512_v9, %v2512_v9 }
0x14f0   : > { %2812 = vmatmul.bf16.vlgmr.msrb.gmra.mxu3 %v2516_v4 }
0x1564   : > { %v2787_v10 = vpop.f32.mrf.mxu1 }
0x1565   : > { %v2826_v11 = vpop.f32.mrf.mxu0  ;;  %v2788_v13 = vadd.f32 %v3583_v54, %v2787_v10 }
0x156c   : > { %v2789_v12 = vpop.f32.mrf.mxu1 }
0x156d   : > { %v2828_v44 = vpop.f32.mrf.mxu0 }
0x1571   : > { %v2800_v14 = vpop.f32.mrf.mxu2 }
0x1572   : > { %v2801_v58 = vadd.f32 %v2800_v14, %v2788_v13 }
0x1573   : > { %v2813_v15 = vpop.f32.mrf.mxu3 }
0x1574   : > { %v2814_v18 = vadd.f32 %v2813_v15, %v2801_v58 }
0x1576   : > { %v2827_v20 = vadd.f32 %v2826_v11, %v2814_v18 }
0x1578   : > { %v2830_v21 = vadd.f32 %v2827_v20, %v4395_v57 }
0x1579   : > { %v2802_v41 = vpop.f32.mrf.mxu2 }
0x157a   : > { %2831 = vst [vmem:[%s523_s24] sm:$0xff] %v2830_v21 }
0x157b   : > { %v2815_v22 = vpop.f32.mrf.mxu3 }
0x157c   : > { %3842 = shalt.err (!%p3839_p9)
}
0x157d   : > { %3486 = dma.vmem_to_hbm [thread:$0]  (%p4075_p4), %s2846_s27, 128, %s2848_s30, %s2833_s15  }
0x157e PF: > { %s2859_s14 = sand.u32 1, %s3877_s25   ;;  %p4605_p10 = scmp.ge.s32.totalorder %s3889_s28, 2 }
0x157f   : > { %s2860_s9 = scalar_lea.sflag [#allocation4], %s2859_s14 }
0x1580   : > { %p3506_p13 = pnand %p4605_p10, %p4079_p6 }
0x1582   : > { %p3507_p11 = pneg %p3506_p13 }
0x1584   : > { %3872 = dma.done.wait (%p3507_p11), %s2860_s9, 128  }
0x1585   : > { %3874 = vsyncadd (%p3507_p11), %s2860_s9, 4294967168  ;;  %s4606_s28 = sld [smem:[#allocation17_spill]]  ;;  %s4609_s25 = smov %s3881_s26 }
0x1586   : > { %s4607_s22 = sld [smem:[#allocation16_spill]] }
0x1587   : > { %s4608_s27 = sld [smem:[#allocation18_spill]] }
0x158b   : > { %p28_p0 = scmp.ge.s32.totalorder %s4606_s28, 4  }
0x158c   : > { %s4610_s26 = smov %s4607_s22 }
0x158d   :  { %30 = sbr.rel (!%p28_p0) target bundleno = 13 (0xd), region = 148 }
0x1592   :  { %2866 = vsyncpa [#allocation3], 1 }
0x1593   :  { %2868 = vsyncpa [#allocation3 + $0x1], 1 }
0x1594   :  { %2869 = vsyncpa [#allocation6], 1 }
0x1595   :  { %2870 = vsyncpa [#allocation9], 1 }
0x1596   :  { %2871 = vsyncpa [#allocation4], 1 }
0x1597   :  { %2873 = vsyncpa [#allocation4 + $0x1], 1 }

</bundles_post_ra>
